<compile_context>
chip_gen: v6e
topology: v6e:2x2x1
jax: 0.10.0
libtpu: 0.0.40
codegen_flags: <defaults>
</compile_context>

<pallas_src>
import functools

import jax
import jax.numpy as jnp
from jax.experimental import pallas as pl
from jax.experimental.pallas import tpu as pltpu

EPS = 1e-5                 # nn.InstanceNorm2d default
MATMUL_IN_BF16 = False     # set True on v6e/v7x for full-rate bf16 MXU (loosen rtol)


def _reflect_pad_1(a):
    """Reflect-pad (H, W, C) by 1 on both spatial dims (PyTorch ReflectionPad2d(1))."""
    a = jnp.concatenate([a[1:2], a, a[-2:-1]], axis=0)
    a = jnp.concatenate([a[:, 1:2], a, a[:, -2:-1]], axis=1)
    return a


def _conv_in_stage(a, w_ref, gamma, beta, H, W, C):
    """reflect-pad -> 3x3 conv (one im2col matmul) -> fused InstanceNorm affine.

    a      : (H, W, C) float32 values
    w_ref  : (9*C, C) ref, taps in row-major (dy, dx, cin) order == (3,3,C,C)->(9C,C)
    gamma, beta : (C,) per-channel affine
    returns (H*W, C) float32  (conv bias omitted: it cancels under InstanceNorm)
    """
    HW = H * W
    ap = _reflect_pad_1(a)                                            # (H+2, W+2, C)

    # im2col slab built once; single MXU matmul with K = 9C.
    patches = [ap[dy:dy + H, dx:dx + W, :] for dy in range(3) for dx in range(3)]
    slab = jnp.concatenate(patches, axis=-1).reshape(HW, 9 * C)       # (HW, 9C)

    w = w_ref[...]
    if MATMUL_IN_BF16:
        slab = slab.astype(jnp.bfloat16)
        w = w.astype(jnp.bfloat16)
    acc = jnp.dot(slab, w, preferred_element_type=jnp.float32)        # (HW, C)

    # InstanceNorm2d (biased variance) in one statistics pass, applied as a single
    # per-channel scale/shift (the caller fuses ReLU / residual into the same pass).
    inv_n = 1.0 / float(HW)
    mean = jnp.sum(acc, axis=0) * inv_n                               # (C,)
    var = jnp.maximum(jnp.sum(acc * acc, axis=0) * inv_n - mean * mean, 0.0)
    rstd = jax.lax.rsqrt(var + EPS)                                   # EUP
    scale = gamma * rstd                                              # (C,)
    shift = beta - mean * scale                                       # (C,)
    return acc * scale + shift                                        # (HW, C)


def _residual_block_kernel(x_ref, w1_ref, w2_ref, aff_ref, o_ref, *, H, W, C):
    x = x_ref[0].astype(jnp.float32)                                  # (H, W, C)
    g1, be1, g2, be2 = aff_ref[0], aff_ref[1], aff_ref[2], aff_ref[3]

    h = jnp.maximum(_conv_in_stage(x, w1_ref, g1, be1, H, W, C), 0.0)  # fused ReLU
    h = h.reshape(H, W, C)                                             # layout-trivial

    y = _conv_in_stage(h, w2_ref, g2, be2, H, W, C).reshape(H, W, C)
    o_ref[0] = (y + x).astype(o_ref.dtype)                             # residual add


def _vmem_limit_bytes(H, W, C):
    f32 = 4
    blk = H * W * C * f32
    pad = (H + 2) * (W + 2) * C * f32
    slab = H * W * 9 * C * f32
    wts = 9 * C * C * f32
    est = 2 * 2 * blk                        # input + output blocks, double buffered
    est += 2 * 2 * wts + 4 * C * f32         # both conv weights (double buffered) + affine
    est += pad + 2 * slab + 3 * blk          # per-stage in-kernel temporaries (peak)
    return int(min(est + (8 << 20), 64 << 20))


def residual_block_pallas(x_nchw, params):
    """Forward pass of ResidualBlock. Input/output NCHW (PyTorch convention)."""
    x = jnp.transpose(x_nchw, (0, 2, 3, 1)).astype(jnp.float32)       # -> NHWC
    B, H, W, C = x.shape

    # Host-side (traced once under jit): im2col weight layout + packed affine params.
    w1 = params["w1"].reshape(9 * C, C).astype(jnp.float32)           # HWIO -> (9C, C)
    w2 = params["w2"].reshape(9 * C, C).astype(jnp.float32)
    affine = jnp.concatenate(
        [params["g1"], params["be1"], params["g2"], params["be2"]], axis=0
    ).astype(jnp.float32)                                             # (4, C)
    # Conv biases b1/b2 are NOT passed: a per-channel constant before InstanceNorm
    # cancels exactly (mean subtraction), so skipping it saves one (HW,C) pass/stage.

    kernel = functools.partial(_residual_block_kernel, H=H, W=W, C=C)
    # TODO(synk): for large images on v7x (64 MiB VMEM) tile spatially over row blocks
    # with a two-pass InstanceNorm instead of whole-image-per-step blocks.
    out = pl.pallas_call(
        kernel,
        out_shape=jax.ShapeDtypeStruct((B, H, W, C), jnp.float32),
        grid=(B,),
        in_specs=[
            pl.BlockSpec((1, H, W, C), lambda i: (i, 0, 0, 0)),       # activations
            pl.BlockSpec((9 * C, C), lambda i: (0, 0)),               # conv1 weight (im2col)
            pl.BlockSpec((9 * C, C), lambda i: (0, 0)),               # conv2 weight (im2col)
            pl.BlockSpec((4, C), lambda i: (0, 0)),                   # [g1, be1, g2, be2]
        ],
        out_specs=pl.BlockSpec((1, H, W, C), lambda i: (i, 0, 0, 0)),
        compiler_params=pltpu.CompilerParams(
            dimension_semantics=("parallel",),
            vmem_limit_bytes=_vmem_limit_bytes(H, W, C),
        ),
    )(x, w1, w2, affine)

    return jnp.transpose(out, (0, 3, 1, 2))                           # -> NCHW


# ------------------------- pure-JAX reference (for check) -------------------------
def _reflect_pad_nhwc(x):
    return jnp.pad(x, ((0, 0), (1, 1), (1, 1), (0, 0)), mode="reflect")


def _ref_block(x_nchw, params):
    x = jnp.transpose(x_nchw, (0, 2, 3, 1)).astype(jnp.float32)

    def conv(a, w_hwio, b):
        ap = _reflect_pad_nhwc(a)
        y = jax.lax.conv_general_dilated(
            ap, w_hwio, window_strides=(1, 1), padding="VALID",
            dimension_numbers=("NHWC", "HWIO", "NHWC"))
        return y + b.reshape(1, 1, 1, -1)

    def inorm(a, g, be):
        m = jnp.mean(a, axis=(1, 2), keepdims=True)
        v = jnp.mean((a - m) ** 2, axis=(1, 2), keepdims=True)
        return (a - m) * jax.lax.rsqrt(v + EPS) * g.reshape(1, 1, 1, -1) + be.reshape(1, 1, 1, -1)

    h = jnp.maximum(inorm(conv(x, params["w1"], params["b1"][0]),
                          params["g1"][0], params["be1"][0]), 0.0)
    out = inorm(conv(h, params["w2"], params["b2"][0]),
                params["g2"][0], params["be2"][0]) + x
    return jnp.transpose(out, (0, 3, 1, 2))


def _init_params(key, channels):
    ks = jax.random.split(key, 8)
    C = channels
    return dict(
        w1=jax.random.normal(ks[0], (3, 3, C, C), jnp.float32) * 0.2,   # HWIO
        w2=jax.random.normal(ks[1], (3, 3, C, C), jnp.float32) * 0.2,
        b1=jax.random.normal(ks[2], (1, C), jnp.float32) * 0.1,
        b2=jax.random.normal(ks[3], (1, C), jnp.float32) * 0.1,
        g1=1.0 + 0.1 * jax.random.normal(ks[4], (1, C), jnp.float32),
        g2=1.0 + 0.1 * jax.random.normal(ks[5], (1, C), jnp.float32),
        be1=0.1 * jax.random.normal(ks[6], (1, C), jnp.float32),
        be2=0.1 * jax.random.normal(ks[7], (1, C), jnp.float32),
    )


if __name__ == "__main__":
    key = jax.random.PRNGKey(0)
    k_x, k_p = jax.random.split(key)

    B, C, H, W = 2, 4, 16, 16
    x = jax.random.normal(k_x, (B, C, H, W), jnp.float32)   # NCHW, like PyTorch
    params = _init_params(k_p, C)

    out = jax.jit(residual_block_pallas)(x, params)
    out = jax.block_until_ready(out)

    ref = _ref_block(x, params)
    assert out.shape == (B, C, H, W)
    assert jnp.allclose(out, ref, rtol=1e-4, atol=1e-4), "mismatch vs reference"

    print("KERNEL_OK")
</pallas_src>

<mosaic_0001>
module attributes {stable_mosaic.version = 11 : i64} {
  func.func @_residual_block_kernel(%arg0: i32, %arg1: memref<1x16x16x4xf32, #tpu.memory_space<vmem>>, %arg2: memref<36x4xf32, #tpu.memory_space<vmem>>, %arg3: memref<36x4xf32, #tpu.memory_space<vmem>>, %arg4: memref<4x4xf32, #tpu.memory_space<vmem>>, %arg5: memref<1x16x16x4xf32, #tpu.memory_space<vmem>>) attributes {dimension_semantics = [#tpu.dimension_semantics<parallel>], iteration_bounds = array<i64: 2>, scalar_prefetch = 0 : i64, scratch_operands = 0 : i64, tpu.core_type = #tpu.core_type<tc>, window_params = [{transform_indices = @transform_0, window_bounds = array<i64: 1, 16, 16, 4>}, {pipeline_mode = #tpu.pipeline_mode<synchronous>, transform_indices = @transform_1, window_bounds = array<i64: 36, 4>}, {pipeline_mode = #tpu.pipeline_mode<synchronous>, transform_indices = @transform_2, window_bounds = array<i64: 36, 4>}, {pipeline_mode = #tpu.pipeline_mode<synchronous>, transform_indices = @transform_3, window_bounds = array<i64: 4, 4>}, {transform_indices = @transform_4, window_bounds = array<i64: 1, 16, 16, 4>}]} {
    %c0 = arith.constant 0 : index
    %c0_0 = arith.constant 0 : index
    %c0_1 = arith.constant 0 : index
    %c0_2 = arith.constant 0 : index
    %0 = vector.load %arg1[%c0, %c0_0, %c0_1, %c0_2] : memref<1x16x16x4xf32, #tpu.memory_space<vmem>>, vector<1x16x16x4xf32>
    %1 = vector.shape_cast %0 : vector<1x16x16x4xf32> to vector<16x16x4xf32>
    %c0_3 = arith.constant 0 : index
    %c0_4 = arith.constant 0 : index
    %2 = vector.load %arg4[%c0_3, %c0_4] : memref<4x4xf32, #tpu.memory_space<vmem>>, vector<1x4xf32>
    %3 = vector.shape_cast %2 : vector<1x4xf32> to vector<4xf32>
    %c1 = arith.constant 1 : index
    %c0_5 = arith.constant 0 : index
    %4 = vector.load %arg4[%c1, %c0_5] : memref<4x4xf32, #tpu.memory_space<vmem>>, vector<1x4xf32>
    %5 = vector.shape_cast %4 : vector<1x4xf32> to vector<4xf32>
    %c2 = arith.constant 2 : index
    %c0_6 = arith.constant 0 : index
    %6 = vector.load %arg4[%c2, %c0_6] : memref<4x4xf32, #tpu.memory_space<vmem>>, vector<1x4xf32>
    %7 = vector.shape_cast %6 : vector<1x4xf32> to vector<4xf32>
    %c3 = arith.constant 3 : index
    %c0_7 = arith.constant 0 : index
    %8 = vector.load %arg4[%c3, %c0_7] : memref<4x4xf32, #tpu.memory_space<vmem>>, vector<1x4xf32>
    %9 = vector.shape_cast %8 : vector<1x4xf32> to vector<4xf32>
    %10 = vector.extract_strided_slice %1 {offsets = [1, 0, 0], sizes = [1, 16, 4], strides = [1, 1, 1]} : vector<16x16x4xf32> to vector<1x16x4xf32>
    %11 = vector.extract_strided_slice %1 {offsets = [14, 0, 0], sizes = [1, 16, 4], strides = [1, 1, 1]} : vector<16x16x4xf32> to vector<1x16x4xf32>
    %12 = tpu.concatenate %10, %1, %11 in 0 : vector<1x16x4xf32>, vector<16x16x4xf32>, vector<1x16x4xf32> -> vector<18x16x4xf32>
    %13 = vector.extract_strided_slice %12 {offsets = [0, 1, 0], sizes = [18, 1, 4], strides = [1, 1, 1]} : vector<18x16x4xf32> to vector<18x1x4xf32>
    %14 = vector.extract_strided_slice %12 {offsets = [0, 14, 0], sizes = [18, 1, 4], strides = [1, 1, 1]} : vector<18x16x4xf32> to vector<18x1x4xf32>
    %15 = tpu.concatenate %13, %12, %14 in 1 : vector<18x1x4xf32>, vector<18x16x4xf32>, vector<18x1x4xf32> -> vector<18x18x4xf32>
    %16 = vector.extract_strided_slice %15 {offsets = [0, 0, 0], sizes = [16, 16, 4], strides = [1, 1, 1]} : vector<18x18x4xf32> to vector<16x16x4xf32>
    %17 = vector.extract_strided_slice %15 {offsets = [0, 1, 0], sizes = [16, 16, 4], strides = [1, 1, 1]} : vector<18x18x4xf32> to vector<16x16x4xf32>
    %18 = vector.extract_strided_slice %15 {offsets = [0, 2, 0], sizes = [16, 16, 4], strides = [1, 1, 1]} : vector<18x18x4xf32> to vector<16x16x4xf32>
    %19 = vector.extract_strided_slice %15 {offsets = [1, 0, 0], sizes = [16, 16, 4], strides = [1, 1, 1]} : vector<18x18x4xf32> to vector<16x16x4xf32>
    %20 = vector.extract_strided_slice %15 {offsets = [1, 1, 0], sizes = [16, 16, 4], strides = [1, 1, 1]} : vector<18x18x4xf32> to vector<16x16x4xf32>
    %21 = vector.extract_strided_slice %15 {offsets = [1, 2, 0], sizes = [16, 16, 4], strides = [1, 1, 1]} : vector<18x18x4xf32> to vector<16x16x4xf32>
    %22 = vector.extract_strided_slice %15 {offsets = [2, 0, 0], sizes = [16, 16, 4], strides = [1, 1, 1]} : vector<18x18x4xf32> to vector<16x16x4xf32>
    %23 = vector.extract_strided_slice %15 {offsets = [2, 1, 0], sizes = [16, 16, 4], strides = [1, 1, 1]} : vector<18x18x4xf32> to vector<16x16x4xf32>
    %24 = vector.extract_strided_slice %15 {offsets = [2, 2, 0], sizes = [16, 16, 4], strides = [1, 1, 1]} : vector<18x18x4xf32> to vector<16x16x4xf32>
    %25 = tpu.concatenate %16, %17, %18, %19, %20, %21, %22, %23, %24 in 2 : vector<16x16x4xf32>, vector<16x16x4xf32>, vector<16x16x4xf32>, vector<16x16x4xf32>, vector<16x16x4xf32>, vector<16x16x4xf32>, vector<16x16x4xf32>, vector<16x16x4xf32>, vector<16x16x4xf32> -> vector<16x16x36xf32>
    %26 = vector.shape_cast %25 : vector<16x16x36xf32> to vector<256x36xf32>
    %c0_8 = arith.constant 0 : index
    %c0_9 = arith.constant 0 : index
    %27 = vector.load %arg2[%c0_8, %c0_9] : memref<36x4xf32, #tpu.memory_space<vmem>>, vector<36x4xf32>
    %cst = arith.constant dense<0.000000e+00> : vector<256x4xf32>
    %28 = tpu.matmul %26, %27, %cst {dimension_numbers = #tpu.dot_dimension_numbers<[1], [0], [0], [1], [0, 0, 1, 1], [], []>} : vector<256x36xf32>, vector<36x4xf32>, vector<256x4xf32> -> vector<256x4xf32>
    %cst_10 = arith.constant dense<0.000000e+00> : vector<4xf32>
    %29 = vector.multi_reduction <add>, %28, %cst_10 [0] : vector<256x4xf32> to vector<4xf32>
    %cst_11 = arith.constant 3.906250e-03 : f32
    %30 = vector.broadcast %cst_11 : f32 to vector<4xf32>
    %31 = arith.mulf %29, %30 : vector<4xf32>
    %32 = arith.mulf %28, %28 : vector<256x4xf32>
    %cst_12 = arith.constant dense<0.000000e+00> : vector<4xf32>
    %33 = vector.multi_reduction <add>, %32, %cst_12 [0] : vector<256x4xf32> to vector<4xf32>
    %cst_13 = arith.constant 3.906250e-03 : f32
    %34 = vector.broadcast %cst_13 : f32 to vector<4xf32>
    %35 = arith.mulf %33, %34 : vector<4xf32>
    %36 = arith.mulf %31, %31 : vector<4xf32>
    %37 = arith.subf %35, %36 : vector<4xf32>
    %cst_14 = arith.constant 0.000000e+00 : f32
    %38 = vector.broadcast %cst_14 : f32 to vector<4xf32>
    %39 = arith.maximumf %37, %38 : vector<4xf32>
    %cst_15 = arith.constant 9.99999974E-6 : f32
    %40 = vector.broadcast %cst_15 : f32 to vector<4xf32>
    %41 = arith.addf %39, %40 : vector<4xf32>
    %42 = math.rsqrt %41 : vector<4xf32>
    %43 = arith.mulf %3, %42 : vector<4xf32>
    %44 = arith.mulf %31, %43 : vector<4xf32>
    %45 = arith.subf %5, %44 : vector<4xf32>
    %46 = vector.shape_cast %43 : vector<4xf32> to vector<1x4xf32>
    %47 = vector.broadcast %46 : vector<1x4xf32> to vector<256x4xf32>
    %48 = arith.mulf %28, %47 : vector<256x4xf32>
    %49 = vector.shape_cast %45 : vector<4xf32> to vector<1x4xf32>
    %50 = vector.broadcast %49 : vector<1x4xf32> to vector<256x4xf32>
    %51 = arith.addf %48, %50 : vector<256x4xf32>
    %cst_16 = arith.constant 0.000000e+00 : f32
    %52 = vector.broadcast %cst_16 : f32 to vector<256x4xf32>
    %53 = arith.maximumf %51, %52 : vector<256x4xf32>
    %54 = vector.shape_cast %53 : vector<256x4xf32> to vector<16x16x4xf32>
    %55 = vector.extract_strided_slice %54 {offsets = [1, 0, 0], sizes = [1, 16, 4], strides = [1, 1, 1]} : vector<16x16x4xf32> to vector<1x16x4xf32>
    %56 = vector.extract_strided_slice %54 {offsets = [14, 0, 0], sizes = [1, 16, 4], strides = [1, 1, 1]} : vector<16x16x4xf32> to vector<1x16x4xf32>
    %57 = tpu.concatenate %55, %54, %56 in 0 : vector<1x16x4xf32>, vector<16x16x4xf32>, vector<1x16x4xf32> -> vector<18x16x4xf32>
    %58 = vector.extract_strided_slice %57 {offsets = [0, 1, 0], sizes = [18, 1, 4], strides = [1, 1, 1]} : vector<18x16x4xf32> to vector<18x1x4xf32>
    %59 = vector.extract_strided_slice %57 {offsets = [0, 14, 0], sizes = [18, 1, 4], strides = [1, 1, 1]} : vector<18x16x4xf32> to vector<18x1x4xf32>
    %60 = tpu.concatenate %58, %57, %59 in 1 : vector<18x1x4xf32>, vector<18x16x4xf32>, vector<18x1x4xf32> -> vector<18x18x4xf32>
    %61 = vector.extract_strided_slice %60 {offsets = [0, 0, 0], sizes = [16, 16, 4], strides = [1, 1, 1]} : vector<18x18x4xf32> to vector<16x16x4xf32>
    %62 = vector.extract_strided_slice %60 {offsets = [0, 1, 0], sizes = [16, 16, 4], strides = [1, 1, 1]} : vector<18x18x4xf32> to vector<16x16x4xf32>
    %63 = vector.extract_strided_slice %60 {offsets = [0, 2, 0], sizes = [16, 16, 4], strides = [1, 1, 1]} : vector<18x18x4xf32> to vector<16x16x4xf32>
    %64 = vector.extract_strided_slice %60 {offsets = [1, 0, 0], sizes = [16, 16, 4], strides = [1, 1, 1]} : vector<18x18x4xf32> to vector<16x16x4xf32>
    %65 = vector.extract_strided_slice %60 {offsets = [1, 1, 0], sizes = [16, 16, 4], strides = [1, 1, 1]} : vector<18x18x4xf32> to vector<16x16x4xf32>
    %66 = vector.extract_strided_slice %60 {offsets = [1, 2, 0], sizes = [16, 16, 4], strides = [1, 1, 1]} : vector<18x18x4xf32> to vector<16x16x4xf32>
    %67 = vector.extract_strided_slice %60 {offsets = [2, 0, 0], sizes = [16, 16, 4], strides = [1, 1, 1]} : vector<18x18x4xf32> to vector<16x16x4xf32>
    %68 = vector.extract_strided_slice %60 {offsets = [2, 1, 0], sizes = [16, 16, 4], strides = [1, 1, 1]} : vector<18x18x4xf32> to vector<16x16x4xf32>
    %69 = vector.extract_strided_slice %60 {offsets = [2, 2, 0], sizes = [16, 16, 4], strides = [1, 1, 1]} : vector<18x18x4xf32> to vector<16x16x4xf32>
    %70 = tpu.concatenate %61, %62, %63, %64, %65, %66, %67, %68, %69 in 2 : vector<16x16x4xf32>, vector<16x16x4xf32>, vector<16x16x4xf32>, vector<16x16x4xf32>, vector<16x16x4xf32>, vector<16x16x4xf32>, vector<16x16x4xf32>, vector<16x16x4xf32>, vector<16x16x4xf32> -> vector<16x16x36xf32>
    %71 = vector.shape_cast %70 : vector<16x16x36xf32> to vector<256x36xf32>
    %c0_17 = arith.constant 0 : index
    %c0_18 = arith.constant 0 : index
    %72 = vector.load %arg3[%c0_17, %c0_18] : memref<36x4xf32, #tpu.memory_space<vmem>>, vector<36x4xf32>
    %cst_19 = arith.constant dense<0.000000e+00> : vector<256x4xf32>
    %73 = tpu.matmul %71, %72, %cst_19 {dimension_numbers = #tpu.dot_dimension_numbers<[1], [0], [0], [1], [0, 0, 1, 1], [], []>} : vector<256x36xf32>, vector<36x4xf32>, vector<256x4xf32> -> vector<256x4xf32>
    %cst_20 = arith.constant dense<0.000000e+00> : vector<4xf32>
    %74 = vector.multi_reduction <add>, %73, %cst_20 [0] : vector<256x4xf32> to vector<4xf32>
    %cst_21 = arith.constant 3.906250e-03 : f32
    %75 = vector.broadcast %cst_21 : f32 to vector<4xf32>
    %76 = arith.mulf %74, %75 : vector<4xf32>
    %77 = arith.mulf %73, %73 : vector<256x4xf32>
    %cst_22 = arith.constant dense<0.000000e+00> : vector<4xf32>
    %78 = vector.multi_reduction <add>, %77, %cst_22 [0] : vector<256x4xf32> to vector<4xf32>
    %cst_23 = arith.constant 3.906250e-03 : f32
    %79 = vector.broadcast %cst_23 : f32 to vector<4xf32>
    %80 = arith.mulf %78, %79 : vector<4xf32>
    %81 = arith.mulf %76, %76 : vector<4xf32>
    %82 = arith.subf %80, %81 : vector<4xf32>
    %cst_24 = arith.constant 0.000000e+00 : f32
    %83 = vector.broadcast %cst_24 : f32 to vector<4xf32>
    %84 = arith.maximumf %82, %83 : vector<4xf32>
    %cst_25 = arith.constant 9.99999974E-6 : f32
    %85 = vector.broadcast %cst_25 : f32 to vector<4xf32>
    %86 = arith.addf %84, %85 : vector<4xf32>
    %87 = math.rsqrt %86 : vector<4xf32>
    %88 = arith.mulf %7, %87 : vector<4xf32>
    %89 = arith.mulf %76, %88 : vector<4xf32>
    %90 = arith.subf %9, %89 : vector<4xf32>
    %91 = vector.shape_cast %88 : vector<4xf32> to vector<1x4xf32>
    %92 = vector.broadcast %91 : vector<1x4xf32> to vector<256x4xf32>
    %93 = arith.mulf %73, %92 : vector<256x4xf32>
    %94 = vector.shape_cast %90 : vector<4xf32> to vector<1x4xf32>
    %95 = vector.broadcast %94 : vector<1x4xf32> to vector<256x4xf32>
    %96 = arith.addf %93, %95 : vector<256x4xf32>
    %97 = vector.shape_cast %96 : vector<256x4xf32> to vector<16x16x4xf32>
    %98 = arith.addf %97, %1 : vector<16x16x4xf32>
    %c0_26 = arith.constant 0 : index
    %c0_27 = arith.constant 0 : index
    %c0_28 = arith.constant 0 : index
    %c0_29 = arith.constant 0 : index
    %99 = vector.load %arg5[%c0_26, %c0_27, %c0_28, %c0_29] : memref<1x16x16x4xf32, #tpu.memory_space<vmem>>, vector<1x16x16x4xf32>
    %100 = vector.shape_cast %99 : vector<1x16x16x4xf32> to vector<16x16x4xf32>
    %101 = vector.shape_cast %98 : vector<16x16x4xf32> to vector<1x16x16x4xf32>
    tpu.vector_store %arg5[%c0_26, %c0_27, %c0_28, %c0_29], %101 {strides = array<i32>} : memref<1x16x16x4xf32, #tpu.memory_space<vmem>>, vector<1x16x16x4xf32>,
    return
  }
  func.func @transform_0(%arg0: i32) -> (i32, i32, i32, i32) {
    %c0_i32 = arith.constant 0 : i32
    %c0_i32_0 = arith.constant 0 : i32
    %c0_i32_1 = arith.constant 0 : i32
    %c0_i32_2 = arith.constant 0 : i32
    return %arg0, %c0_i32, %c0_i32_0, %c0_i32_1 : i32, i32, i32, i32
  }
  func.func @transform_1(%arg0: i32) -> (i32, i32) {
    %c0_i32 = arith.constant 0 : i32
    %c0_i32_0 = arith.constant 0 : i32
    %c0_i32_1 = arith.constant 0 : i32
    return %c0_i32, %c0_i32_0 : i32, i32
  }
  func.func @transform_2(%arg0: i32) -> (i32, i32) {
    %c0_i32 = arith.constant 0 : i32
    %c0_i32_0 = arith.constant 0 : i32
    %c0_i32_1 = arith.constant 0 : i32
    return %c0_i32, %c0_i32_0 : i32, i32
  }
  func.func @transform_3(%arg0: i32) -> (i32, i32) {
    %c0_i32 = arith.constant 0 : i32
    %c0_i32_0 = arith.constant 0 : i32
    %c0_i32_1 = arith.constant 0 : i32
    return %c0_i32, %c0_i32_0 : i32, i32
  }
  func.func @transform_4(%arg0: i32) -> (i32, i32, i32, i32) {
    %c0_i32 = arith.constant 0 : i32
    %c0_i32_0 = arith.constant 0 : i32
    %c0_i32_1 = arith.constant 0 : i32
    %c0_i32_2 = arith.constant 0 : i32
    return %arg0, %c0_i32, %c0_i32_0, %c0_i32_1 : i32, i32, i32, i32
  }
}

</mosaic_0001>

<bundles_post_ra>
// kernel: residual_block_pallas.1
= control target key start
LH: loop header
LB: loop body
LE: loop exit
PB: predicated region body
PF: predicated region fallthrough
CT: control target
= control target key end

     0   :  { %s4732_s15 = smov 0   ;;  %s8740_s0 = inlined_call_operand.vmem [shape: f32[2,16,16,4], index: 0, kind: input, shape index: {}]   ;;  %s8741_s1 = inlined_call_operand.vmem [shape: f32[36,4], index: 1, kind: input, shape index: {}]   ;;  %s8742_s2 = inlined_call_operand.vmem [shape: f32[36,4], index: 2, kind: input, shape index: {}]   ;;  %s8743_s3 = inlined_call_operand.vmem [shape: f32[4,4], index: 3, kind: input, shape index: {}]   ;;  %s8744_s4 = inlined_call_operand.vmem [shape: f32[2,16,16,4], index: 4, kind: output, shape index: {}]  }
   0x1 LB: > { %s4370_s16 = sadd.s32 4294967295, %s4697_s15   ;;  %p4374_p0 = scmp.ge.s32.totalorder %s4697_s15, 1  ;;  %s4697_s15 = sphi %s4732_s15, %s14_s15  }
   0x2   : > { %p162_p1 = scmp.lt.s32.totalorder %s4697_s15, 3 }
   0x4   : > { %p163_p2 = pnand %p4374_p0, %p162_p1 }
   0x6   : > { %166 = sbr.rel (%p163_p2) target bundleno = 1787 (0x6fb), region = 36 }
   0xb   : > { %p188_p3 = scmp.lt.s32.totalorder %s4370_s16, 1  ;;  %vm298_vm0 = vcmask 1040384   ;;  %vm488_vm1 = vcmask 1046528   ;;  %s4699_s21 = smov 4   ;;  %vm654_vm2 = vcmask 1045504   ;;  %vm1752_vm3 = vcmask 1043456  }
   0xc   : > { %s4700_s22 = smov 8   ;;  %s4701_s23 = smov 12   ;;  %vm1390_vm4 = vcmask 31744   ;;  %vm1421_vm5 = vcmask 64512   ;;  %vm1452_vm6 = vcmask 97280   ;;  %vm1485_vm7 = vcmask 130048  }
   0xd   : > { %s9505_s16 = smov (!%p188_p3, %s4370_s16), 1  ;;  %s4702_s24 = smov 16   ;;  %vm1518_vm8 = vcmask 162816   ;;  %vm1551_vm9 = vcmask 195584   ;;  %vm1584_vm10 = vcmask 228352   ;;  %vm1617_vm11 = vcmask 261120  }
   0xe   : > { %s4447_s17 = sshll.u32 %s9505_s16, 8  ;;  %s4703_s5 = smov 20   ;;  %vm1655_vm12 = vcmask 293888  }
   0xf   : > { %s4748_s20 = scalar_lea.vmem %s8740_s0, %s4447_s17  ;;  %s4704_s10 = smov 24  }
  0x10   : > { %v200_v0 = vld [vmem:[%s4748_s20 + $0x10] sm:$0xff]  ;;  %v201_v1 = vld [vmem:[%s4748_s20 + $0x18] sm:$0xff]  ;;  %v198_v2 = vld [vmem:[%s4748_s20] sm:$0xff]  ;;  %s4705_s11 = smov 28   ;;  %s4706_s12 = smov 32  }
  0x11   : > { %v250_v3 = vrot.slane %v200_v0, 1  ;;  %v299_v4 = vrot.slane %v200_v0, 7  ;;  %v300_v5 = vrot.slane %v201_v1, 7  ;;  %v199_v6 = vld [vmem:[%s4748_s20 + $0x8] sm:$0xff]  ;;  %v251_v7 = vrot.slane %v198_v2, 1  ;;  %v202_v8 = vld [vmem:[%s4748_s20 + $0x20] sm:$0xff] }
  0x12   : > { %v302_v9 = vrot.slane %v198_v2, 7  ;;  %v303_v10 = vrot.slane %v199_v6, 7  ;;  %v394_v11 = vrot.slane %v201_v1, 5  ;;  %v395_v12 = vrot.slane %v199_v6, 5  ;;  %v203_v15 = vld [vmem:[%s4748_s20 + $0x28] sm:$0xff]  ;;  %v204_v22 = vld [vmem:[%s4748_s20 + $0x30] sm:$0xff] }
  0x13   : > { %v4756_v13 = vsel %vm298_vm0, %v299_v4, %v300_v5  ;;  %v4759_v14 = vsel %vm298_vm0, %v250_v3, %v299_v4  ;;  %v252_v16 = vrot.slane %v202_v8, 1  ;;  %v305_v17 = vrot.slane %v202_v8, 7  ;;  %v205_v31 = vld [vmem:[%s4748_s20 + $0x38] sm:$0xff]  ;;  %v206_v36 = vld [vmem:[%s4748_s20 + $0x40] sm:$0xff]  ;;  %v207_v41 = vld [vmem:[%s4748_s20 + $0x48] sm:$0xff] }
  0x14   : > { %v489_v18 = vrot.slane %v4759_v14, 1  ;;  %v490_v19 = vrot.slane %v4756_v13, 1  ;;  %v4765_v20 = vsel %vm298_vm0, %v302_v9, %v303_v10  ;;  %v4768_v21 = vsel %vm298_vm0, %v251_v7, %v302_v9  ;;  %v208_v54 = vld [vmem:[%s4748_s20 + $0x50] sm:$0xff]  ;;  %v209_v59 = vld [vmem:[%s4748_s20 + $0x58] sm:$0xff]  ;;  %v210_v0 = vld [vmem:[%s4748_s20 + $0x60] sm:$0xff] }
  0x15   : > { %8988 = vst [vmem:[#allocation2_spill] sm:$0xff] %v4765_v20  ;;  %v494_v23 = vrot.slane %v4768_v21, 1  ;;  %v495_v24 = vrot.slane %v4765_v20, 1  ;;  %v4774_v25 = vsel %vm298_vm0, %v300_v5, %v394_v11  ;;  %v4777_v26 = vsel %vm298_vm0, %v303_v10, %v395_v12  ;;  %v211_v4 = vld [vmem:[%s4748_s20 + $0x68] sm:$0xff] }
  0x16   : > { %v4780_v27 = vsel %vm488_vm1, %v489_v18, %v490_v19  ;;  %v492_v28 = vrot.slane %v4774_v25, 1  ;;  %v497_v29 = vrot.slane %v4777_v26, 1  ;;  %v306_v30 = vrot.slane %v203_v15, 7 }
  0x17   : > { %564 = vrot.lane.b32.xlu0 %v4780_v27, %s4699_s21  ;;  %v4788_v32 = vsel %vm488_vm1, %v494_v23, %v495_v24  ;;  %v4791_v33 = vsel %vm298_vm0, %v252_v16, %v305_v17  ;;  %v396_v34 = vrot.slane %v203_v15, 5  ;;  %v253_v35 = vrot.slane %v204_v22, 1  ;;  %v213_v23 = vld [vmem:[%s4748_s20 + $0x78] sm:$0xff] }
  0x18   : > { %568 = vrot.lane.b32.xlu1 %v4788_v32, %s4699_s21  ;;  %v4797_v37 = vsel %vm488_vm1, %v490_v19, %v492_v28  ;;  %v4800_v38 = vsel %vm488_vm1, %v495_v24, %v497_v29  ;;  %v4803_v39 = vsel %vm298_vm0, %v305_v17, %v306_v30  ;;  %v499_v40 = vrot.slane %v4791_v33, 1 }
  0x19   : > { %v500_v42 = vrot.slane %v4803_v39, 1  ;;  %v4809_v43 = vsel %vm298_vm0, %v306_v30, %v396_v34  ;;  %v308_v44 = vrot.slane %v204_v22, 7  ;;  %v309_v45 = vrot.slane %v205_v31, 7  ;;  %v212_v22 = vld [vmem:[%s4748_s20 + $0x70] sm:$0xff]  ;;  %v214_v30 = vld [vmem:[%s4748_s20 + $0x80] sm:$0xff] }
  0x1a   : > { %v502_v46 = vrot.slane %v4809_v43, 1  ;;  %v397_v47 = vrot.slane %v205_v31, 5  ;;  %v254_v48 = vrot.slane %v206_v36, 1  ;;  %v311_v49 = vrot.slane %v206_v36, 7 }
  0x1b   : > { %566 = vrot.lane.b32.xlu0 %v4797_v37, %s4699_s21  ;;  %v4815_v50 = vsel %vm488_vm1, %v499_v40, %v500_v42  ;;  %v4818_v51 = vsel %vm298_vm0, %v308_v44, %v309_v45  ;;  %v4821_v52 = vsel %vm298_vm0, %v253_v35, %v308_v44  ;;  %v312_v53 = vrot.slane %v207_v41, 7  ;;  %v215_v40 = vld [vmem:[%s4748_s20 + $0x88] sm:$0xff] }
  0x1c   : > { %570 = vrot.lane.b32.xlu1 %v4800_v38, %s4699_s21  ;;  %v4827_v55 = vsel %vm488_vm1, %v500_v42, %v502_v46  ;;  %v504_v56 = vrot.slane %v4821_v52, 1  ;;  %v505_v57 = vrot.slane %v4818_v51, 1  ;;  %v4832_v58 = vsel %vm298_vm0, %v309_v45, %v397_v47 }
  0x1d   : > { %8989 = vst [vmem:[#allocation3_spill] sm:$0xff] %v4827_v55  ;;  %v507_v60 = vrot.slane %v4832_v58, 1  ;;  %v4837_v61 = vsel %vm298_vm0, %v311_v49, %v312_v53  ;;  %v4840_v62 = vsel %vm298_vm0, %v254_v48, %v311_v49  ;;  %v398_v63 = vrot.slane %v207_v41, 5 }
  0x1e   : > { %v4844_v1 = vsel %vm488_vm1, %v504_v56, %v505_v57  ;;  %v509_v2 = vrot.slane %v4840_v62, 1  ;;  %v255_v3 = vrot.slane %v208_v54, 1  ;;  %v510_v5 = vrot.slane %v4837_v61, 1 }
  0x1f   : > { %8990 = vst [vmem:[#allocation4_spill] sm:$0xff] %v4844_v1  ;;  %572 = vrot.lane.b32.xlu0 %v4815_v50, %s4699_s21  ;;  %v4852_v6 = vsel %vm298_vm0, %v312_v53, %v398_v63  ;;  %v314_v7 = vrot.slane %v208_v54, 7  ;;  %v315_v8 = vrot.slane %v209_v59, 7  ;;  %v4857_v9 = vsel %vm488_vm1, %v505_v57, %v507_v60  ;;  %v217_v60 = vld [vmem:[%s4748_s20 + $0x98] sm:$0xff] }
  0x20   : > { %574 = vrot.lane.b32.xlu1 %v4827_v55, %s4699_s21  ;;  %8991 = vst [vmem:[#allocation5_spill] sm:$0xff] %v4857_v9  ;;  %v512_v10 = vrot.slane %v4852_v6, 1  ;;  %v399_v11 = vrot.slane %v209_v59, 5  ;;  %v256_v12 = vrot.slane %v210_v0, 1  ;;  %v317_v17 = vrot.slane %v210_v0, 7  ;;  %v216_v59 = vld [vmem:[%s4748_s20 + $0x90] sm:$0xff] }
  0x21   : > { %v4861_v15 = vsel %vm298_vm0, %v314_v7, %v315_v8  ;;  %v4864_v16 = vsel %vm298_vm0, %v255_v3, %v314_v7  ;;  %v318_v18 = vrot.slane %v211_v4, 7  ;;  %v4874_v24 = vsel %vm488_vm1, %v509_v2, %v510_v5 }
  0x22   : > { %v4867_v19 = vsel %vm298_vm0, %v315_v8, %v399_v11  ;;  %8992 = vst [vmem:[#allocation6_spill] sm:$0xff] %v4874_v24  ;;  %v4877_v28 = vsel %vm488_vm1, %v510_v5, %v512_v10  ;;  %v400_v29 = vrot.slane %v211_v4, 5  ;;  %v514_v31 = vrot.slane %v4864_v16, 1 }
  0x23   : > { %576 = vrot.lane.b32.xlu0 %v4844_v1, %s4699_s21  ;;  %8993 = vst [vmem:[#allocation7_spill] sm:$0xff] %v4877_v28  ;;  %v515_v34 = vrot.slane %v4861_v15, 1  ;;  %v517_v35 = vrot.slane %v4867_v19, 1  ;;  %v4886_v36 = vsel %vm298_vm0, %v317_v17, %v318_v18  ;;  %v4890_v41 = vsel %vm298_vm0, %v256_v12, %v317_v17  ;;  %v218_v17 = vld [vmem:[%s4748_s20 + $0xa0] sm:$0xff] }
  0x24   : > { %578 = vrot.lane.b32.xlu1 %v4857_v9, %s4699_s21  ;;  %8994 = vst [vmem:[#allocation8_spill] sm:$0xff] %v4886_v36  ;;  %8995 = vst [vmem:[#allocation9_spill] sm:$0xff] %v4890_v41  ;;  %v257_v42 = vrot.slane %v212_v22, 1  ;;  %v320_v44 = vrot.slane %v212_v22, 7  ;;  %v321_v45 = vrot.slane %v213_v23, 7  ;;  %v4893_v46 = vsel %vm298_vm0, %v318_v18, %v400_v29  ;;  %v219_v29 = vld [vmem:[%s4748_s20 + $0xa8] sm:$0xff] }
  0x25   : > { %v401_v47 = vrot.slane %v213_v23, 5  ;;  %v258_v48 = vrot.slane %v214_v30, 1  ;;  %v323_v49 = vrot.slane %v214_v30, 7  ;;  %v324_v53 = vrot.slane %v215_v40, 7  ;;  %v226_v9 = vld [vmem:[%s4748_s20 + $0xe0] sm:$0xff] }
  0x26   : > { %v4900_v54 = vsel %vm488_vm1, %v514_v31, %v515_v34  ;;  %v519_v56 = vrot.slane %v4890_v41, 1  ;;  %v520_v57 = vrot.slane %v4886_v36, 1  ;;  %v4907_v63 = vsel %vm488_vm1, %v515_v34, %v517_v35 }
  0x27   : > { %580 = vrot.lane.b32.xlu0 %v4874_v24, %s4699_s21  ;;  %8996 = vst [vmem:[#allocation10_spill] sm:$0xff] %v4900_v54  ;;  %8997 = vst [vmem:[#allocation11_spill] sm:$0xff] %v4907_v63  ;;  %v522_v0 = vrot.slane %v4893_v46, 1  ;;  %v4911_v2 = vsel %vm298_vm0, %v320_v44, %v321_v45  ;;  %v4914_v3 = vsel %vm298_vm0, %v257_v42, %v320_v44  ;;  %v402_v7 = vrot.slane %v215_v40, 5  ;;  %v225_v24 = vld [vmem:[%s4748_s20 + $0xd8] sm:$0xff] }
  0x28   : > { %582 = vrot.lane.b32.xlu1 %v4877_v28, %s4699_s21  ;;  %v4917_v4 = vsel %vm298_vm0, %v321_v45, %v401_v47  ;;  %v4920_v5 = vsel %vm298_vm0, %v258_v48, %v323_v49  ;;  %v4925_v8 = vsel %vm298_vm0, %v323_v49, %v324_v53  ;;  %v259_v10 = vrot.slane %v216_v59, 1  ;;  %v224_v28 = vld [vmem:[%s4748_s20 + $0xd0] sm:$0xff] }
  0x29   : > { %v326_v11 = vrot.slane %v216_v59, 7  ;;  %v327_v12 = vrot.slane %v217_v60, 7  ;;  %v4931_v18 = vsel %vm488_vm1, %v519_v56, %v520_v57  ;;  %v524_v22 = vrot.slane %v4914_v3, 1 }
  0x2a   : > { %8998 = vst [vmem:[#allocation12_spill] sm:$0xff] %v4931_v18  ;;  %v525_v23 = vrot.slane %v4911_v2, 1  ;;  %v4937_v30 = vsel %vm488_vm1, %v520_v57, %v522_v0  ;;  %v527_v31 = vrot.slane %v4917_v4, 1  ;;  %v529_v34 = vrot.slane %v4920_v5, 1  ;;  %v221_v0 = vld [vmem:[%s4748_s20 + $0xb8] sm:$0xff] }
  0x2b   : > { %584 = vrot.lane.b32.xlu0 %v4900_v54, %s4699_s21  ;;  %8999 = vst [vmem:[#allocation13_spill] sm:$0xff] %v4937_v30  ;;  %v530_v35 = vrot.slane %v4925_v8, 1  ;;  %v4943_v40 = vsel %vm298_vm0, %v324_v53, %v402_v7  ;;  %v403_v42 = vrot.slane %v217_v60, 5  ;;  %v260_v44 = vrot.slane %v218_v17, 1  ;;  %v220_v60 = vld [vmem:[%s4748_s20 + $0xb0] sm:$0xff] }
  0x2c   : > { %586 = vrot.lane.b32.xlu1 %v4907_v63, %s4699_s21  ;;  %v4948_v45 = vsel %vm298_vm0, %v326_v11, %v327_v12  ;;  %v4951_v47 = vsel %vm298_vm0, %v259_v10, %v326_v11  ;;  %v329_v48 = vrot.slane %v218_v17, 7  ;;  %v330_v49 = vrot.slane %v219_v29, 7  ;;  %v223_v63 = vld [vmem:[%s4748_s20 + $0xc8] sm:$0xff] }
  0x2d   : > { %v4956_v56 = vsel %vm488_vm1, %v524_v22, %v525_v23  ;;  %v404_v53 = vrot.slane %v219_v29, 5  ;;  %v4959_v57 = vsel %vm488_vm1, %v525_v23, %v527_v31  ;;  %v532_v59 = vrot.slane %v4943_v40, 1 }
  0x2e   : > { %9000 = vst [vmem:[#allocation14_spill] sm:$0xff] %v4956_v56  ;;  %9001 = vst [vmem:[#allocation15_spill] sm:$0xff] %v4959_v57  ;;  %v534_v7 = vrot.slane %v4951_v47, 1  ;;  %v535_v10 = vrot.slane %v4948_v45, 1  ;;  %v4967_v11 = vsel %vm298_vm0, %v327_v12, %v403_v42  ;;  %v4972_v17 = vsel %vm488_vm1, %v529_v34, %v530_v35 }
  0x2f   : > { %588 = vrot.lane.b32.xlu0 %v4931_v18, %s4699_s21  ;;  %9002 = vst [vmem:[#allocation16_spill] sm:$0xff] %v4972_v17  ;;  %v4975_v22 = vsel %vm298_vm0, %v329_v48, %v330_v49  ;;  %v4978_v23 = vsel %vm298_vm0, %v260_v44, %v329_v48  ;;  %v4983_v29 = vsel %vm298_vm0, %v330_v49, %v404_v53  ;;  %v261_v12 = vrot.slane %v220_v60, 1 }
  0x30   : > { %590 = vrot.lane.b32.xlu1 %v4937_v30, %s4699_s21  ;;  %9003 = vst [vmem:[#allocation17_spill] sm:$0xff] %v4975_v22  ;;  %9004 = vst [vmem:[#allocation18_spill] sm:$0xff] %v4978_v23  ;;  %v332_v31 = vrot.slane %v220_v60, 7  ;;  %v333_v42 = vrot.slane %v221_v0, 7  ;;  %v222_v30 = vld [vmem:[%s4748_s20 + $0xc0] sm:$0xff]  ;;  %v537_v34 = vrot.slane %v4967_v11, 1  ;;  %v4992_v44 = vsel %vm488_vm1, %v534_v7, %v535_v10 }
  0x31   : > { %v405_v18 = vrot.slane %v221_v0, 5  ;;  %9006 = vst [vmem:[#allocation20_spill] sm:$0xff] %v4992_v44  ;;  %v539_v48 = vrot.slane %v4978_v23, 1  ;;  %v540_v49 = vrot.slane %v4975_v22, 1  ;;  %v542_v53 = vrot.slane %v4983_v29, 1 }
  0x32   : > { %v5005_v60 = vsel %vm298_vm0, %v261_v12, %v332_v31  ;;  %v335_v0 = vrot.slane %v222_v30, 7  ;;  %v336_v7 = vrot.slane %v223_v63, 7  ;;  %v406_v54 = vrot.slane %v223_v63, 5 }
  0x33   : > { %592 = vrot.lane.b32.xlu0 %v4956_v56, %s4699_s21  ;;  %v4987_v56 = vsel %vm488_vm1, %v530_v35, %v532_v59  ;;  %v262_v35 = vrot.slane %v222_v30, 1  ;;  %v5002_v59 = vsel %vm298_vm0, %v332_v31, %v333_v42  ;;  %9008 = vst [vmem:[#allocation22_spill] sm:$0xff] %v5005_v60  ;;  %v544_v30 = vrot.slane %v5005_v60, 1 }
  0x34   : > { %594 = vrot.lane.b32.xlu1 %v4959_v57, %s4699_s21  ;;  %9005 = vst [vmem:[#allocation19_spill] sm:$0xff] %v4987_v56  ;;  %9007 = vst [vmem:[#allocation21_spill] sm:$0xff] %v5002_v59  ;;  %v5011_v57 = vsel %vm298_vm0, %v333_v42, %v405_v18  ;;  %v545_v12 = vrot.slane %v5002_v59, 1  ;;  %v5025_v18 = vsel %vm488_vm1, %v540_v49, %v542_v53  ;;  %v407_v1 = vrot.slane %v225_v24, 5 }
  0x35   : > { %9011 = vst [vmem:[#allocation25_spill] sm:$0xff] %v5025_v18  ;;  %v547_v63 = vrot.slane %v5011_v57, 1  ;;  %v5032_v31 = vsel %vm298_vm0, %v262_v35, %v335_v0  ;;  %v5035_v42 = vsel %vm298_vm0, %v336_v7, %v406_v54 }
  0x36   : > { %9013 = vst [vmem:[#allocation27_spill] sm:$0xff] %v5032_v31  ;;  %v549_v53 = vrot.slane %v5032_v31, 1  ;;  %v552_v35 = vrot.slane %v5035_v42, 1 }
  0x37   : > { %596 = vrot.lane.b32.xlu0 %v4972_v17, %s4699_s21  ;;  %v5008_v17 = vsel %vm488_vm1, %v535_v10, %v537_v34  ;;  %v5029_v10 = vsel %vm298_vm0, %v335_v0, %v336_v7  ;;  %v263_v34 = vrot.slane %v224_v28, 1  ;;  %v5048_v54 = vsel %vm488_vm1, %v545_v12, %v547_v63 }
  0x38   : > { %598 = vrot.lane.b32.xlu1 %v4987_v56, %s4699_s21  ;;  %9009 = vst [vmem:[#allocation23_spill] sm:$0xff] %v5008_v17  ;;  %v5018_v56 = vsel %vm488_vm1, %v539_v48, %v540_v49  ;;  %9012 = vst [vmem:[#allocation26_spill] sm:$0xff] %v5029_v10  ;;  %v338_v48 = vrot.slane %v224_v28, 7  ;;  %v5042_v49 = vsel %vm488_vm1, %v544_v30, %v545_v12  ;;  %v550_v28 = vrot.slane %v5029_v10, 1 }
  0x39   : > { %9010 = vst [vmem:[#allocation24_spill] sm:$0xff] %v5018_v56  ;;  %9014 = vst [vmem:[#allocation28_spill] sm:$0xff] %v5048_v54  ;;  %v341_v30 = vrot.slane %v226_v9, 7 }
  0x3a   : > { %v5056_v7 = vsel %vm298_vm0, %v263_v34, %v338_v48  ;;  %v5066_v12 = vsel %vm488_vm1, %v549_v53, %v550_v28 }
  0x3b   : > { %600 = vrot.lane.b32.xlu0 %v4992_v44, %s4699_s21  ;;  %v339_v44 = vrot.slane %v225_v24, 7  ;;  %v264_v24 = vrot.slane %v226_v9, 1  ;;  %9016 = vst [vmem:[#allocation30_spill] sm:$0xff] %v5056_v7  ;;  %9017 = vst [vmem:[#allocation31_spill] sm:$0xff] %v5066_v12  ;;  %v554_v63 = vrot.slane %v5056_v7, 1  ;;  %v5071_v9 = vsel %vm488_vm1, %v550_v28, %v552_v35 }
  0x3c   : > { %602 = vrot.lane.b32.xlu1 %v5008_v17, %s4699_s21  ;;  %v227_v17 = vld [vmem:[%s4748_s20 + $0xe8] sm:$0xff]  ;;  %9018 = vst [vmem:[#allocation32_spill] sm:$0xff] %v5071_v9 }
  0x3d   : > { %v5053_v0 = vsel %vm298_vm0, %v338_v48, %v339_v44  ;;  %v5059_v55 = vsel %vm298_vm0, %v339_v44, %v407_v1  ;;  %v5078_v44 = vsel %vm298_vm0, %v264_v24, %v341_v30 }
  0x3e   : > { %9015 = vst [vmem:[#allocation29_spill] sm:$0xff] %v5053_v0  ;;  %v555_v34 = vrot.slane %v5053_v0, 1  ;;  %v557_v1 = vrot.slane %v5059_v55, 1  ;;  %9020 = vst [vmem:[#allocation34_spill] sm:$0xff] %v5078_v44  ;;  %v559_v28 = vrot.slane %v5078_v44, 1 }
  0x3f   : > { %604 = vrot.lane.b32.xlu0 %v5018_v56, %s4699_s21  ;;  %v342_v56 = vrot.slane %v227_v17, 7 }
  0x40   : > { %606 = vrot.lane.b32.xlu1 %v5025_v18, %s4699_s21  ;;  %v408_v18 = vrot.slane %v227_v17, 5  ;;  %v5088_v53 = vsel %vm488_vm1, %v554_v63, %v555_v34 }
  0x41   : > { %v5075_v17 = vsel %vm298_vm0, %v341_v30, %v342_v56  ;;  %9021 = vst [vmem:[#allocation35_spill] sm:$0xff] %v5088_v53  ;;  %v656_v30 = vrot.slane %v4756_v13, 2 }
  0x42   : > { %9019 = vst [vmem:[#allocation33_spill] sm:$0xff] %v5075_v17  ;;  %v5081_v48 = vsel %vm298_vm0, %v342_v56, %v408_v18  ;;  %v560_v35 = vrot.slane %v5075_v17, 1  ;;  %v655_v18 = vrot.slane %v4759_v14, 2 }
  0x43   : > { %608 = vrot.lane.b32.xlu0 %v5042_v49, %s4699_s21  ;;  %v562_v24 = vrot.slane %v5081_v48, 1 }
  0x44   : > { %610 = vrot.lane.b32.xlu1 %v5048_v54, %s4699_s21  ;;  %v5093_v54 = vsel %vm488_vm1, %v555_v34, %v557_v1  ;;  %v5101_v56 = vsel %vm488_vm1, %v559_v28, %v560_v35  ;;  %v658_v34 = vrot.slane %v4774_v25, 2  ;;  %v5114_v1 = vsel %vm654_vm2, %v655_v18, %v656_v30 }
  0x45   : > { %9022 = vst [vmem:[#allocation36_spill] sm:$0xff] %v5093_v54  ;;  %9023 = vst [vmem:[#allocation37_spill] sm:$0xff] %v5101_v56  ;;  %v5106_v63 = vsel %vm488_vm1, %v560_v35, %v562_v24  ;;  %v660_v28 = vrot.slane %v4768_v21, 2  ;;  %v663_v35 = vrot.slane %v4777_v26, 2  ;;  %v665_v24 = vrot.slane %v4791_v33, 2 }
  0x46   : > { %9024 = vst [vmem:[#allocation38_spill] sm:$0xff] %v5106_v63  ;;  %v666_v18 = vrot.slane %v4803_v39, 2 }
  0x47   : > { %612 = vrot.lane.b32.xlu0 %v5066_v12, %s4699_s21 }
  0x48   : > { %614 = vrot.lane.b32.xlu1 %v5071_v9, %s4699_s21  ;;  %v5140_v26 = vsel %vm654_vm2, %v665_v24, %v666_v18  ;;  %v676_v24 = vrot.slane %v4837_v61, 2 }
  0x4b   : > { %616 = vrot.lane.b32.xlu0 %v5088_v53, %s4699_s21  ;;  %v5119_v53 = vsel %vm654_vm2, %v656_v30, %v658_v34  ;;  %v668_v30 = vrot.slane %v4809_v43, 2  ;;  %v670_v34 = vrot.slane %v4821_v52, 2 }
  0x4c   : > { %618 = vrot.lane.b32.xlu1 %v5093_v54, %s4699_s21  ;;  %v661_v54 = vrot.slane %v4765_v20, 2 }
  0x4e   : > { %v5127_v25 = vsel %vm654_vm2, %v660_v28, %v661_v54  ;;  %v671_v28 = vrot.slane %v4818_v51, 2 }
  0x4f   : > { %620 = vrot.lane.b32.xlu0 %v5101_v56, %s4699_s21  ;;  %v5145_v56 = vsel %vm654_vm2, %v666_v18, %v668_v30  ;;  %v678_v18 = vrot.slane %v4852_v6, 2  ;;  %v680_v30 = vrot.slane %v4864_v16, 2 }
  0x50   : > { %622 = vrot.lane.b32.xlu1 %v5106_v63, %s4699_s21  ;;  %v5132_v63 = vsel %vm654_vm2, %v661_v54, %v663_v35  ;;  %v673_v54 = vrot.slane %v4832_v58, 2  ;;  %v5153_v43 = vsel %vm654_vm2, %v670_v34, %v671_v28  ;;  %v675_v35 = vrot.slane %v4840_v62, 2 }
  0x51   : > { %v681_v34 = vrot.slane %v4861_v15, 2  ;;  %v5171_v12 = vsel %vm654_vm2, %v676_v24, %v678_v18  ;;  %v690_v18 = vrot.slane %v4914_v3, 2 }
  0x52   : > { %v5158_v9 = vsel %vm654_vm2, %v671_v28, %v673_v54  ;;  %v5166_v58 = vsel %vm654_vm2, %v675_v35, %v676_v24  ;;  %9026 = vst [vmem:[#allocation40_spill] sm:$0xff] %v5171_v12  ;;  %v683_v28 = vrot.slane %v4867_v19, 2  ;;  %v685_v54 = vrot.slane %v4890_v41, 2 }
  0x53   : > { %730 = vrot.lane.b32.xlu0 %v5114_v1, %s4700_s22  ;;  %9025 = vst [vmem:[#allocation39_spill] sm:$0xff] %v5158_v9  ;;  %v5179_v6 = vsel %vm654_vm2, %v680_v30, %v681_v34  ;;  %v686_v35 = vrot.slane %v4886_v36, 2  ;;  %v688_v24 = vrot.slane %v4893_v46, 2  ;;  %v691_v30 = vrot.slane %v4911_v2, 2 }
  0x54   : > { %732 = vrot.lane.b32.xlu1 %v5119_v53, %s4700_s22 }
  0x55   : > { %v5192_v19 = vsel %vm654_vm2, %v685_v54, %v686_v35  ;;  %v5205_v46 = vsel %vm654_vm2, %v690_v18, %v691_v30  ;;  %v696_v54 = vrot.slane %v4925_v8, 2  ;;  %v701_v18 = vrot.slane %v4948_v45, 2 }
  0x57   : > { %734 = vrot.lane.b32.xlu0 %v5127_v25, %s4700_s22 }
  0x58   : > { %736 = vrot.lane.b32.xlu1 %v5132_v63, %s4700_s22 }
  0x5b   : > { %738 = vrot.lane.b32.xlu0 %v5140_v26, %s4700_s22 }
  0x5c   : > { %740 = vrot.lane.b32.xlu1 %v5145_v56, %s4700_s22 }
  0x5f   : > { %742 = vrot.lane.b32.xlu0 %v5153_v43, %s4700_s22 }
  0x60   : > { %744 = vrot.lane.b32.xlu1 %v5158_v9, %s4700_s22  ;;  %v5184_v9 = vsel %vm654_vm2, %v681_v34, %v683_v28  ;;  %v693_v34 = vrot.slane %v4917_v4, 2  ;;  %v695_v28 = vrot.slane %v4920_v5, 2 }
  0x61   : > { %9027 = vst [vmem:[#allocation41_spill] sm:$0xff] %v5184_v9 }
  0x62   : > { %v5218_v4 = vsel %vm654_vm2, %v695_v28, %v696_v54  ;;  %v706_v28 = vrot.slane %v4975_v22, 2 }
  0x63   : > { %746 = vrot.lane.b32.xlu0 %v5166_v58, %s4700_s22 }
  0x64   : > { %748 = vrot.lane.b32.xlu1 %v5171_v12, %s4700_s22  ;;  %v5197_v12 = vsel %vm654_vm2, %v686_v35, %v688_v24  ;;  %v698_v35 = vrot.slane %v4943_v40, 2  ;;  %v700_v24 = vrot.slane %v4951_v47, 2 }
  0x65   : > { %9028 = vst [vmem:[#allocation42_spill] sm:$0xff] %v5197_v12 }
  0x66   : > { %v5231_v40 = vsel %vm654_vm2, %v700_v24, %v701_v18  ;;  %v711_v24 = vrot.slane %v5002_v59, 2 }
  0x67   : > { %750 = vrot.lane.b32.xlu0 %v5179_v6, %s4700_s22  ;;  %9031 = vst [vmem:[#allocation45_spill] sm:$0xff] %v5231_v40 }
  0x68   : > { %752 = vrot.lane.b32.xlu1 %v5184_v9, %s4700_s22  ;;  %v5210_v9 = vsel %vm654_vm2, %v691_v30, %v693_v34  ;;  %v703_v30 = vrot.slane %v4967_v11, 2  ;;  %v705_v34 = vrot.slane %v4978_v23, 2 }
  0x69   : > { %9029 = vst [vmem:[#allocation43_spill] sm:$0xff] %v5210_v9 }
  0x6a   : > { %v5244_v11 = vsel %vm654_vm2, %v705_v34, %v706_v28  ;;  %v716_v34 = vrot.slane %v5029_v10, 2 }
  0x6b   : > { %754 = vrot.lane.b32.xlu0 %v5192_v19, %s4700_s22  ;;  %9033 = vst [vmem:[#allocation47_spill] sm:$0xff] %v5244_v11 }
  0x6c   : > { %756 = vrot.lane.b32.xlu1 %v5197_v12, %s4700_s22  ;;  %v5223_v12 = vsel %vm654_vm2, %v696_v54, %v698_v35  ;;  %v708_v54 = vrot.slane %v4983_v29, 2  ;;  %v710_v35 = vrot.slane %v5005_v60, 2 }
  0x6d   : > { %9030 = vst [vmem:[#allocation44_spill] sm:$0xff] %v5223_v12 }
  0x6e   : > { %v5257_v29 = vsel %vm654_vm2, %v710_v35, %v711_v24  ;;  %v721_v35 = vrot.slane %v5053_v0, 2 }
  0x6f   : > { %758 = vrot.lane.b32.xlu0 %v5205_v46, %s4700_s22  ;;  %9035 = vst [vmem:[#allocation49_spill] sm:$0xff] %v5257_v29 }
  0x70   : > { %760 = vrot.lane.b32.xlu1 %v5210_v9, %s4700_s22  ;;  %v5236_v9 = vsel %vm654_vm2, %v701_v18, %v703_v30  ;;  %v713_v18 = vrot.slane %v5011_v57, 2  ;;  %v715_v30 = vrot.slane %v5032_v31, 2 }
  0x71   : > { %9032 = vst [vmem:[#allocation46_spill] sm:$0xff] %v5236_v9 }
  0x72   : > { %v5270_v57 = vsel %vm654_vm2, %v715_v30, %v716_v34  ;;  %v726_v30 = vrot.slane %v5075_v17, 2 }
  0x73   : > { %762 = vrot.lane.b32.xlu0 %v5218_v4, %s4700_s22  ;;  %9037 = vst [vmem:[#allocation51_spill] sm:$0xff] %v5270_v57 }
  0x74   : > { %764 = vrot.lane.b32.xlu1 %v5223_v12, %s4700_s22  ;;  %v5249_v12 = vsel %vm654_vm2, %v706_v28, %v708_v54  ;;  %v718_v28 = vrot.slane %v5035_v42, 2  ;;  %v720_v54 = vrot.slane %v5056_v7, 2 }
  0x75   : > { %9034 = vst [vmem:[#allocation48_spill] sm:$0xff] %v5249_v12 }
  0x76   : > { %v5283_v42 = vsel %vm654_vm2, %v720_v54, %v721_v35 }
  0x77   : > { %766 = vrot.lane.b32.xlu0 %v5231_v40, %s4700_s22  ;;  %9039 = vst [vmem:[#allocation53_spill] sm:$0xff] %v5283_v42  ;;  %v9111_v40 = vld [vmem:[#allocation25_spill] sm:$0xff] }
  0x78   : > { %768 = vrot.lane.b32.xlu1 %v5236_v9, %s4700_s22  ;;  %v5262_v9 = vsel %vm654_vm2, %v711_v24, %v713_v18  ;;  %v723_v24 = vrot.slane %v5059_v55, 2  ;;  %v725_v18 = vrot.slane %v5078_v44, 2 }
  0x79   : > { %9036 = vst [vmem:[#allocation50_spill] sm:$0xff] %v5262_v9 }
  0x7a   : > { %v5296_v55 = vsel %vm654_vm2, %v725_v18, %v726_v30 }
  0x7b   : > { %770 = vrot.lane.b32.xlu0 %v5244_v11, %s4700_s22  ;;  %9041 = vst [vmem:[#allocation55_spill] sm:$0xff] %v5296_v55  ;;  %v9103_v11 = vld [vmem:[#allocation19_spill] sm:$0xff] }
  0x7c   : > { %772 = vrot.lane.b32.xlu1 %v5249_v12, %s4700_s22  ;;  %v5275_v12 = vsel %vm654_vm2, %v716_v34, %v718_v28  ;;  %v728_v34 = vrot.slane %v5081_v48, 2 }
  0x7d   : > { %9038 = vst [vmem:[#allocation52_spill] sm:$0xff] %v5275_v12 }
  0x7e   : > { %v5301_v54 = vsel %vm654_vm2, %v726_v30, %v728_v34 }
  0x7f   : > { %774 = vrot.lane.b32.xlu0 %v5257_v29, %s4700_s22  ;;  %9042 = vst [vmem:[#allocation56_spill] sm:$0xff] %v5301_v54  ;;  %v9091_v29 = vld [vmem:[#allocation11_spill] sm:$0xff] }
  0x80   : > { %776 = vrot.lane.b32.xlu1 %v5262_v9, %s4700_s22  ;;  %v5288_v9 = vsel %vm654_vm2, %v721_v35, %v723_v24 }
  0x81   : > { %9040 = vst [vmem:[#allocation54_spill] sm:$0xff] %v5288_v9 }
  0x83   : > { %778 = vrot.lane.b32.xlu0 %v5270_v57, %s4700_s22 }
  0x84   : > { %780 = vrot.lane.b32.xlu1 %v5275_v12, %s4700_s22 }
  0x87   : > { %782 = vrot.lane.b32.xlu0 %v5283_v42, %s4700_s22 }
  0x88   : > { %784 = vrot.lane.b32.xlu1 %v5288_v9, %s4700_s22 }
  0x89   : > { %v5298_v28 = vpop.permute.xlu0 %564 }
  0x8a   : > { %v5303_v12 = vpop.permute.xlu1 %568 }
  0x8b   : > { %786 = vrot.lane.b32.xlu0 %v5296_v55, %s4700_s22 }
  0x8c   : > { %788 = vrot.lane.b32.xlu1 %v5301_v54, %s4700_s22 }
  0x8d   : > { %v5309_v48 = vpop.permute.xlu0 %566 }
  0x8e   : > { %v5311_v35 = vpop.permute.xlu1 %570 }
  0x8f   : > { %821 = vrot.lane.b32.xlu0 %v4768_v21, %s4701_s23 }
  0x90   : > { %823 = vrot.lane.b32.xlu1 %v4765_v20, %s4701_s23 }
  0x91   : > { %v5317_v24 = vpop.permute.xlu0 %572 }
  0x92   : > { %9043 = vst [vmem:[#allocation57_spill] sm:$0xff] %v5317_v24  ;;  %v5319_v18 = vpop.permute.xlu1 %574 }
  0x93   : > { %9044 = vst [vmem:[#allocation58_spill] sm:$0xff] %v5319_v18  ;;  %825 = vrot.lane.b32.xlu0 %v4759_v14, %s4701_s23 }
  0x94   : > { %827 = vrot.lane.b32.xlu1 %v4756_v13, %s4701_s23 }
  0x95   : > { %v5325_v30 = vpop.permute.xlu0 %576 }
  0x96   : > { %9045 = vst [vmem:[#allocation59_spill] sm:$0xff] %v5325_v30  ;;  %v5327_v34 = vpop.permute.xlu1 %578 }
  0x97   : > { %9046 = vst [vmem:[#allocation60_spill] sm:$0xff] %v5327_v34  ;;  %829 = vrot.lane.b32.xlu0 %v4791_v33, %s4701_s23  ;;  %v5419_v34 = vld [vmem:[%s4748_s20 + $0xf8] sm:$0xff] }
  0x98   : > { %831 = vrot.lane.b32.xlu1 %v4803_v39, %s4701_s23  ;;  %9069 = vst [vmem:[#allocation83_spill] sm:$0xff] %v5419_v34 }
  0x99   : > { %v5333_v54 = vpop.permute.xlu0 %580 }
  0x9a   : > { %9047 = vst [vmem:[#allocation61_spill] sm:$0xff] %v5333_v54  ;;  %v5335_v55 = vpop.permute.xlu1 %582 }
  0x9b   : > { %9048 = vst [vmem:[#allocation62_spill] sm:$0xff] %v5335_v55  ;;  %833 = vrot.lane.b32.xlu0 %v4821_v52, %s4701_s23 }
  0x9c   : > { %835 = vrot.lane.b32.xlu1 %v4818_v51, %s4701_s23 }
  0x9d   : > { %v5341_v9 = vpop.permute.xlu0 %584 }
  0x9e   : > { %9049 = vst [vmem:[#allocation63_spill] sm:$0xff] %v5341_v9  ;;  %v5343_v42 = vpop.permute.xlu1 %586 }
  0x9f   : > { %9050 = vst [vmem:[#allocation64_spill] sm:$0xff] %v5343_v42  ;;  %837 = vrot.lane.b32.xlu0 %v4840_v62, %s4701_s23 }
  0xa0   : > { %839 = vrot.lane.b32.xlu1 %v4837_v61, %s4701_s23 }
  0xa1   : > { %v5349_v57 = vpop.permute.xlu0 %588 }
  0xa2   : > { %9051 = vst [vmem:[#allocation65_spill] sm:$0xff] %v5349_v57  ;;  %v5351_v54 = vpop.permute.xlu1 %590 }
  0xa3   : > { %9052 = vst [vmem:[#allocation66_spill] sm:$0xff] %v5351_v54  ;;  %841 = vrot.lane.b32.xlu0 %v4864_v16, %s4701_s23 }
  0xa4   : > { %843 = vrot.lane.b32.xlu1 %v4861_v15, %s4701_s23 }
  0xa5   : > { %v5357_v55 = vpop.permute.xlu0 %592 }
  0xa6   : > { %9053 = vst [vmem:[#allocation67_spill] sm:$0xff] %v5357_v55  ;;  %v5359_v9 = vpop.permute.xlu1 %594 }
  0xa7   : > { %9054 = vst [vmem:[#allocation68_spill] sm:$0xff] %v5359_v9  ;;  %845 = vrot.lane.b32.xlu0 %v4890_v41, %s4701_s23 }
  0xa8   : > { %847 = vrot.lane.b32.xlu1 %v4886_v36, %s4701_s23 }
  0xa9   : > { %v5365_v42 = vpop.permute.xlu0 %596 }
  0xaa   : > { %9055 = vst [vmem:[#allocation69_spill] sm:$0xff] %v5365_v42  ;;  %v5367_v57 = vpop.permute.xlu1 %598 }
  0xab   : > { %9056 = vst [vmem:[#allocation70_spill] sm:$0xff] %v5367_v57  ;;  %849 = vrot.lane.b32.xlu0 %v4914_v3, %s4701_s23 }
  0xac   : > { %851 = vrot.lane.b32.xlu1 %v4911_v2, %s4701_s23 }
  0xad   : > { %v5373_v54 = vpop.permute.xlu0 %600 }
  0xae   : > { %9057 = vst [vmem:[#allocation71_spill] sm:$0xff] %v5373_v54  ;;  %v5375_v55 = vpop.permute.xlu1 %602 }
  0xaf   : > { %9058 = vst [vmem:[#allocation72_spill] sm:$0xff] %v5375_v55  ;;  %853 = vrot.lane.b32.xlu0 %v4920_v5, %s4701_s23 }
  0xb0   : > { %855 = vrot.lane.b32.xlu1 %v4925_v8, %s4701_s23 }
  0xb1   : > { %v5381_v9 = vpop.permute.xlu0 %604 }
  0xb2   : > { %9059 = vst [vmem:[#allocation73_spill] sm:$0xff] %v5381_v9  ;;  %v5383_v42 = vpop.permute.xlu1 %606 }
  0xb3   : > { %9060 = vst [vmem:[#allocation74_spill] sm:$0xff] %v5383_v42  ;;  %857 = vrot.lane.b32.xlu0 %v4951_v47, %s4701_s23 }
  0xb4   : > { %859 = vrot.lane.b32.xlu1 %v4948_v45, %s4701_s23 }
  0xb5   : > { %v5389_v54 = vpop.permute.xlu0 %608 }
  0xb6   : > { %9061 = vst [vmem:[#allocation75_spill] sm:$0xff] %v5389_v54  ;;  %v5391_v55 = vpop.permute.xlu1 %610 }
  0xb7   : > { %9062 = vst [vmem:[#allocation76_spill] sm:$0xff] %v5391_v55  ;;  %861 = vrot.lane.b32.xlu0 %v4978_v23, %s4701_s23  ;;  %v9107_v23 = vld [vmem:[#allocation23_spill] sm:$0xff] }
  0xb8   : > { %863 = vrot.lane.b32.xlu1 %v4975_v22, %s4701_s23 }
  0xb9   : > { %v5397_v9 = vpop.permute.xlu0 %612 }
  0xba   : > { %9063 = vst [vmem:[#allocation77_spill] sm:$0xff] %v5397_v9  ;;  %v5399_v42 = vpop.permute.xlu1 %614  ;;  %v228_v9 = vld [vmem:[%s4748_s20 + $0xf0] sm:$0xff] }
  0xbb   : > { %9064 = vst [vmem:[#allocation78_spill] sm:$0xff] %v5399_v42  ;;  %865 = vrot.lane.b32.xlu0 %v5005_v60, %s4701_s23 }
  0xbc   : > { %867 = vrot.lane.b32.xlu1 %v5002_v59, %s4701_s23  ;;  %v9099_v59 = vld [vmem:[#allocation15_spill] sm:$0xff] }
  0xbd   : > { %v5405_v57 = vpop.permute.xlu0 %616 }
  0xbe   : > { %9065 = vst [vmem:[#allocation79_spill] sm:$0xff] %v5405_v57  ;;  %v5407_v54 = vpop.permute.xlu1 %618  ;;  %v344_v57 = vrot.slane %v228_v9, 7 }
  0xbf   : > { %9066 = vst [vmem:[#allocation80_spill] sm:$0xff] %v5407_v54  ;;  %869 = vrot.lane.b32.xlu0 %v5032_v31, %s4701_s23  ;;  %v265_v54 = vrot.slane %v228_v9, 1  ;;  %v8833_v31 = vrot.slane %v5419_v34, 7  ;;  %v9082_v34 = vld [vmem:[#allocation4_spill] sm:$0xff] }
  0xc0   : > { %871 = vrot.lane.b32.xlu1 %v5029_v10, %s4701_s23 }
  0xc1   : > { %v5413_v55 = vpop.permute.xlu0 %620  ;;  %v5442_v9 = vsel %vm298_vm0, %v344_v57, %v8833_v31 }
  0xc2   : > { %9067 = vst [vmem:[#allocation81_spill] sm:$0xff] %v5413_v55  ;;  %v5416_v42 = vpop.permute.xlu1 %622  ;;  %9071 = vst [vmem:[#allocation85_spill] sm:$0xff] %v5442_v9 }
  0xc3   : > { %9068 = vst [vmem:[#allocation82_spill] sm:$0xff] %v5416_v42  ;;  %873 = vrot.lane.b32.xlu0 %v5056_v7, %s4701_s23  ;;  %v5435_v42 = vsel %vm298_vm0, %v265_v54, %v344_v57  ;;  %v9083_v7 = vld [vmem:[#allocation5_spill] sm:$0xff] }
  0xc4   : > { %875 = vrot.lane.b32.xlu1 %v5053_v0, %s4701_s23  ;;  %9070 = vst [vmem:[#allocation84_spill] sm:$0xff] %v5435_v42 }
  0xc5   : > { %v5425_v30 = vpop.permute.xlu0 %730 }
  0xc6   : > { %v5428_v10 = vpop.permute.xlu1 %732 }
  0xc7   : > { %877 = vrot.lane.b32.xlu0 %v5078_v44, %s4701_s23 }
  0xc8   : > { %879 = vrot.lane.b32.xlu1 %v5075_v17, %s4701_s23 }
  0xc9   : > { %v5437_v55 = vpop.permute.xlu0 %734 }
  0xca   : > { %v5444_v0 = vpop.permute.xlu1 %736 }
  0xcb   : > { %9072 = vst [vmem:[#allocation86_spill] sm:$0xff] %v5444_v0  ;;  %881 = vrot.lane.b32.xlu0 %v5435_v42, %s4701_s23 }
  0xcc   : > { %883 = vrot.lane.b32.xlu1 %v5442_v9, %s4701_s23 }
  0xcd   : > { %v5450_v44 = vpop.permute.xlu0 %738 }
  0xce   : > { %9073 = vst [vmem:[#allocation87_spill] sm:$0xff] %v5450_v44  ;;  %v5452_v17 = vpop.permute.xlu1 %740  ;;  %v9095_v44 = vld [vmem:[#allocation13_spill] sm:$0xff] }
  0xcf   : > { %9074 = vst [vmem:[#allocation88_spill] sm:$0xff] %v5452_v17  ;;  %923 = vrot.lane.b32.xlu0 %v4788_v32, %s4702_s24  ;;  %v9079_v32 = vld [vmem:[#allocation3_spill] sm:$0xff] }
  0xd0   : > { %925 = vrot.lane.b32.xlu1 %v4800_v38, %s4702_s24 }
  0xd1   : > { %v5458_v57 = vpop.permute.xlu0 %742 }
  0xd2   : > { %9075 = vst [vmem:[#allocation89_spill] sm:$0xff] %v5458_v57  ;;  %v5460_v54 = vpop.permute.xlu1 %744  ;;  %v9087_v57 = vld [vmem:[#allocation7_spill] sm:$0xff] }
  0xd3   : > { %9076 = vst [vmem:[#allocation90_spill] sm:$0xff] %v5460_v54  ;;  %927 = vrot.lane.b32.xlu0 %v4780_v27, %s4702_s24 }
  0xd4   : > { %929 = vrot.lane.b32.xlu1 %v4797_v37, %s4702_s24 }
  0xd5   : > { %v5466_v31 = vpop.permute.xlu0 %746 }
  0xd6   : > { %9077 = vst [vmem:[#allocation91_spill] sm:$0xff] %v5466_v31  ;;  %v5468_v9 = vpop.permute.xlu1 %748 }
  0xd7   : > { %9078 = vst [vmem:[#allocation92_spill] sm:$0xff] %v5468_v9  ;;  %931 = vrot.lane.b32.xlu0 %v4815_v50, %s4702_s24  ;;  %v9086_v9 = vld [vmem:[#allocation6_spill] sm:$0xff] }
  0xd8   : > { %933 = vrot.lane.b32.xlu1 %v9079_v32, %s4702_s24 }
  0xd9   : > { %v5474_v38 = vpop.permute.xlu0 %750 }
  0xda   : > { %9080 = vst [vmem:[#allocation3_spill] sm:$0xff] %v5474_v38  ;;  %v5476_v42 = vpop.permute.xlu1 %752 }
  0xdb   : > { %9081 = vst [vmem:[#allocation93_spill] sm:$0xff] %v5476_v42  ;;  %935 = vrot.lane.b32.xlu0 %v9082_v34, %s4702_s24  ;;  %v9090_v42 = vld [vmem:[#allocation10_spill] sm:$0xff] }
  0xdc   : > { %937 = vrot.lane.b32.xlu1 %v9083_v7, %s4702_s24 }
  0xdd   : > { %v5482_v54 = vpop.permute.xlu0 %754 }
  0xde   : > { %9084 = vst [vmem:[#allocation4_spill] sm:$0xff] %v5482_v54  ;;  %v5484_v31 = vpop.permute.xlu1 %756 }
  0xdf   : > { %9085 = vst [vmem:[#allocation5_spill] sm:$0xff] %v5484_v31  ;;  %939 = vrot.lane.b32.xlu0 %v9086_v9, %s4702_s24  ;;  %v9094_v31 = vld [vmem:[#allocation12_spill] sm:$0xff] }
  0xe0   : > { %941 = vrot.lane.b32.xlu1 %v9087_v57, %s4702_s24 }
  0xe1   : > { %v5490_v17 = vpop.permute.xlu0 %758 }
  0xe2   : > { %9088 = vst [vmem:[#allocation6_spill] sm:$0xff] %v5490_v17  ;;  %v5492_v38 = vpop.permute.xlu1 %760 }
  0xe3   : > { %9089 = vst [vmem:[#allocation7_spill] sm:$0xff] %v5492_v38  ;;  %943 = vrot.lane.b32.xlu0 %v9090_v42, %s4702_s24  ;;  %v9098_v38 = vld [vmem:[#allocation14_spill] sm:$0xff] }
  0xe4   : > { %945 = vrot.lane.b32.xlu1 %v9091_v29, %s4702_s24 }
  0xe5   : > { %v5498_v18 = vpop.permute.xlu0 %762 }
  0xe6   : > { %9092 = vst [vmem:[#allocation10_spill] sm:$0xff] %v5498_v18  ;;  %v5500_v54 = vpop.permute.xlu1 %764 }
  0xe7   : > { %9093 = vst [vmem:[#allocation11_spill] sm:$0xff] %v5500_v54  ;;  %947 = vrot.lane.b32.xlu0 %v9094_v31, %s4702_s24  ;;  %v9102_v54 = vld [vmem:[#allocation16_spill] sm:$0xff] }
  0xe8   : > { %949 = vrot.lane.b32.xlu1 %v9095_v44, %s4702_s24 }
  0xe9   : > { %v5506_v24 = vpop.permute.xlu0 %766 }
  0xea   : > { %9096 = vst [vmem:[#allocation12_spill] sm:$0xff] %v5506_v24  ;;  %v5508_v17 = vpop.permute.xlu1 %768 }
  0xeb   : > { %9097 = vst [vmem:[#allocation13_spill] sm:$0xff] %v5508_v17  ;;  %951 = vrot.lane.b32.xlu0 %v9098_v38, %s4702_s24  ;;  %v9106_v17 = vld [vmem:[#allocation20_spill] sm:$0xff] }
  0xec   : > { %953 = vrot.lane.b32.xlu1 %v9099_v59, %s4702_s24 }
  0xed   : > { %v5514_v60 = vpop.permute.xlu0 %770 }
  0xee   : > { %9100 = vst [vmem:[#allocation14_spill] sm:$0xff] %v5514_v60  ;;  %v5516_v18 = vpop.permute.xlu1 %772 }
  0xef   : > { %9101 = vst [vmem:[#allocation15_spill] sm:$0xff] %v5516_v18  ;;  %955 = vrot.lane.b32.xlu0 %v9102_v54, %s4702_s24  ;;  %v9110_v18 = vld [vmem:[#allocation24_spill] sm:$0xff] }
  0xf0   : > { %957 = vrot.lane.b32.xlu1 %v9103_v11, %s4702_s24 }
  0xf1   : > { %v5522_v22 = vpop.permute.xlu0 %774 }
  0xf2   : > { %9104 = vst [vmem:[#allocation16_spill] sm:$0xff] %v5522_v22  ;;  %v5524_v24 = vpop.permute.xlu1 %776 }
  0xf3   : > { %9105 = vst [vmem:[#allocation19_spill] sm:$0xff] %v5524_v24  ;;  %959 = vrot.lane.b32.xlu0 %v9106_v17, %s4702_s24  ;;  %v1654_v24 = vld [vmem:[%s8741_s1 + $0x20] sm:$0xf] }
  0xf4   : > { %961 = vrot.lane.b32.xlu1 %v9107_v23, %s4702_s24  ;;  %4523 = vmatprep.subr.msk.mxu0 %vm1752_vm3, %v1654_v24 }
  0xf5   : > { %v5530_v0 = vpop.permute.xlu0 %778  ;;  %4524 = vmatpush3.msk.msra.mxu0 %vm1752_vm3, %v1654_v24  ;;  %v1651_v24 = vld [vmem:[%s8741_s1 + $0x8] sm:$0xff] }
  0xf6   : > { %9108 = vst [vmem:[#allocation20_spill] sm:$0xff] %v5530_v0  ;;  %v5532_v60 = vpop.permute.xlu1 %780  ;;  %v9114_v0 = vld [vmem:[#allocation28_spill] sm:$0xff] }
  0xf7   : > { %9109 = vst [vmem:[#allocation23_spill] sm:$0xff] %v5532_v60  ;;  %963 = vrot.lane.b32.xlu0 %v9110_v18, %s4702_s24  ;;  %v1653_v60 = vld [vmem:[%s8741_s1 + $0x18] sm:$0xff] }
  0xf8   : > { %965 = vrot.lane.b32.xlu1 %v9111_v40, %s4702_s24  ;;  %4525 = vmatprep.subr.mxu0 %v1653_v60 }
  0xf9   : > { %v5541_v22 = vpop.permute.xlu0 %782  ;;  %4526 = vmatpush3.msra.mxu0 %v1653_v60  ;;  %v1650_v60 = vld [vmem:[%s8741_s1] sm:$0xff] }
  0xfa   : > { %9112 = vst [vmem:[#allocation24_spill] sm:$0xff] %v5541_v22  ;;  %v5544_v20 = vpop.permute.xlu1 %784  ;;  %v1652_v22 = vld [vmem:[%s8741_s1 + $0x10] sm:$0xff] }
  0xfb   : > { %9113 = vst [vmem:[#allocation94_spill] sm:$0xff] %v5544_v20  ;;  %967 = vrot.lane.b32.xlu0 %v5042_v49, %s4702_s24  ;;  %4527 = vmatprep.subr.mxu0 %v1652_v22 }
  0xfc   : > { %969 = vrot.lane.b32.xlu1 %v9114_v0, %s4702_s24  ;;  %4528 = vmatpush3.msra.mxu0 %v1652_v22 }
  0xfd   : > { %v5557_v40 = vpop.permute.xlu0 %786  ;;  %4529 = vmatprep.subr.mxu0 %v1651_v24 }
  0xfe   : > { %9115 = vst [vmem:[#allocation95_spill] sm:$0xff] %v5557_v40  ;;  %v5559_v20 = vpop.permute.xlu1 %788  ;;  %4530 = vmatpush3.msra.mxu0 %v1651_v24 }
  0xff   : > { %9116 = vst [vmem:[#allocation96_spill] sm:$0xff] %v5559_v20  ;;  %1024 = vrot.lane.b32.xlu0 %v5127_v25, %s4703_s5  ;;  %4531 = vmatprep.subr.mxu0 %v1650_v60 }
 0x100   : > { %1026 = vrot.lane.b32.xlu1 %v5132_v63, %s4703_s5  ;;  %4532 = vmatpush3.msra.mxu0 %v1650_v60 }
 0x101   : > { %v5571_v40 = vpop.permute.xlu0 %821 }
 0x102   : > { %v5573_v20 = vpop.permute.xlu1 %823 }
 0x103   : > { %1120 = vrot.lane.b32.xlu0 %v4759_v14, %s4704_s10 }
 0x104   : > { %1122 = vrot.lane.b32.xlu1 %v4756_v13, %s4704_s10 }
 0x105   : > { %v5579_v22 = vpop.permute.xlu0 %825 }
 0x106   : > { %v5581_v63 = vpop.permute.xlu1 %827 }
 0x107   : > { %1210 = vrot.lane.b32.xlu0 %v4780_v27, %s4705_s11 }
 0x108   : > { %1212 = vrot.lane.b32.xlu1 %v4797_v37, %s4705_s11 }
 0x109   : > { %v5587_v25 = vpop.permute.xlu0 %829 }
 0x10a   : > { %v5589_v24 = vpop.permute.xlu1 %831 }
 0x10b   : > { %1300 = vrot.lane.b32.xlu0 %v5114_v1, %s4706_s12 }
 0x10c   : > { %1028 = vrot.lane.b32.xlu1 %v5114_v1, %s4703_s5 }
 0x10d   : > { %v5595_v60 = vpop.permute.xlu0 %833 }
 0x10e   : > { %9117 = vst [vmem:[#allocation97_spill] sm:$0xff] %v5595_v60  ;;  %v5597_v0 = vpop.permute.xlu1 %835 }
 0x10f   : > { %1302 = vrot.lane.b32.xlu0 %v5119_v53, %s4706_s12 }
 0x110   : > { %1030 = vrot.lane.b32.xlu1 %v5119_v53, %s4703_s5 }
 0x111   : > { %v5603_v27 = vpop.permute.xlu0 %837 }
 0x112   : > { %9118 = vst [vmem:[#allocation98_spill] sm:$0xff] %v5603_v27  ;;  %v5605_v37 = vpop.permute.xlu1 %839 }
 0x113   : > { %9119 = vst [vmem:[#allocation99_spill] sm:$0xff] %v5605_v37  ;;  %1124 = vrot.lane.b32.xlu0 %v4791_v33, %s4704_s10 }
 0x114   : > { %1126 = vrot.lane.b32.xlu1 %v4803_v39, %s4704_s10 }
 0x115   : > { %v5611_v1 = vpop.permute.xlu0 %841 }
 0x116   : > { %9120 = vst [vmem:[#allocation100_spill] sm:$0xff] %v5611_v1  ;;  %v5613_v60 = vpop.permute.xlu1 %843 }
 0x117   : > { %1214 = vrot.lane.b32.xlu0 %v4815_v50, %s4705_s11 }
 0x118   : > { %1216 = vrot.lane.b32.xlu1 %v9079_v32, %s4705_s11 }
 0x119   : > { %v5619_v53 = vpop.permute.xlu0 %845 }
 0x11a   : > { %v5621_v27 = vpop.permute.xlu1 %847 }
 0x11b   : > { %1304 = vrot.lane.b32.xlu0 %v5140_v26, %s4706_s12 }
 0x11c   : > { %1032 = vrot.lane.b32.xlu1 %v5140_v26, %s4703_s5 }
 0x11d   : > { %v5627_v37 = vpop.permute.xlu0 %849 }
 0x11e   : > { %9121 = vst [vmem:[#allocation101_spill] sm:$0xff] %v5627_v37  ;;  %v5629_v1 = vpop.permute.xlu1 %851 }
 0x11f   : > { %9122 = vst [vmem:[#allocation102_spill] sm:$0xff] %v5629_v1  ;;  %1306 = vrot.lane.b32.xlu0 %v5145_v56, %s4706_s12 }
 0x120   : > { %1034 = vrot.lane.b32.xlu1 %v5145_v56, %s4703_s5 }
 0x121   : > { %v5635_v50 = vpop.permute.xlu0 %853 }
 0x122   : > { %9123 = vst [vmem:[#allocation103_spill] sm:$0xff] %v5635_v50  ;;  %v5637_v32 = vpop.permute.xlu1 %855 }
 0x123   : > { %9124 = vst [vmem:[#allocation104_spill] sm:$0xff] %v5637_v32  ;;  %1128 = vrot.lane.b32.xlu0 %v4821_v52, %s4704_s10 }
 0x124   : > { %1130 = vrot.lane.b32.xlu1 %v4818_v51, %s4704_s10 }
 0x125   : > { %v5643_v26 = vpop.permute.xlu0 %857 }
 0x126   : > { %9125 = vst [vmem:[#allocation105_spill] sm:$0xff] %v5643_v26  ;;  %v5645_v37 = vpop.permute.xlu1 %859 }
 0x127   : > { %9126 = vst [vmem:[#allocation106_spill] sm:$0xff] %v5645_v37  ;;  %1218 = vrot.lane.b32.xlu0 %v9082_v34, %s4705_s11  ;;  %v9131_v37 = vld [vmem:[#allocation39_spill] sm:$0xff] }
 0x128   : > { %1220 = vrot.lane.b32.xlu1 %v9083_v7, %s4705_s11 }
 0x129   : > { %v5651_v56 = vpop.permute.xlu0 %861 }
 0x12a   : > { %9127 = vst [vmem:[#allocation107_spill] sm:$0xff] %v5651_v56  ;;  %v5653_v50 = vpop.permute.xlu1 %863 }
 0x12b   : > { %9128 = vst [vmem:[#allocation108_spill] sm:$0xff] %v5653_v50  ;;  %1308 = vrot.lane.b32.xlu0 %v5153_v43, %s4706_s12 }
 0x12c   : > { %1036 = vrot.lane.b32.xlu1 %v5153_v43, %s4703_s5 }
 0x12d   : > { %v5659_v32 = vpop.permute.xlu0 %865 }
 0x12e   : > { %9129 = vst [vmem:[#allocation109_spill] sm:$0xff] %v5659_v32  ;;  %v5661_v26 = vpop.permute.xlu1 %867 }
 0x12f   : > { %9130 = vst [vmem:[#allocation110_spill] sm:$0xff] %v5661_v26  ;;  %1310 = vrot.lane.b32.xlu0 %v9131_v37, %s4706_s12  ;;  %v9141_v26 = vld [vmem:[#allocation41_spill] sm:$0xff] }
 0x130   : > { %1038 = vrot.lane.b32.xlu1 %v9131_v37, %s4703_s5 }
 0x131   : > { %v5667_v7 = vpop.permute.xlu0 %869 }
 0x132   : > { %9132 = vst [vmem:[#allocation39_spill] sm:$0xff] %v5667_v7  ;;  %v5669_v34 = vpop.permute.xlu1 %871 }
 0x133   : > { %9133 = vst [vmem:[#allocation111_spill] sm:$0xff] %v5669_v34  ;;  %1132 = vrot.lane.b32.xlu0 %v4840_v62, %s4704_s10 }
 0x134   : > { %1134 = vrot.lane.b32.xlu1 %v4837_v61, %s4704_s10 }
 0x135   : > { %v5675_v43 = vpop.permute.xlu0 %873 }
 0x136   : > { %9134 = vst [vmem:[#allocation112_spill] sm:$0xff] %v5675_v43  ;;  %v5677_v32 = vpop.permute.xlu1 %875 }
 0x137   : > { %9135 = vst [vmem:[#allocation113_spill] sm:$0xff] %v5677_v32  ;;  %1222 = vrot.lane.b32.xlu0 %v9086_v9, %s4705_s11  ;;  %v9140_v32 = vld [vmem:[#allocation40_spill] sm:$0xff] }
 0x138   : > { %1224 = vrot.lane.b32.xlu1 %v9087_v57, %s4705_s11 }
 0x139   : > { %v5683_v37 = vpop.permute.xlu0 %877 }
 0x13a   : > { %9136 = vst [vmem:[#allocation114_spill] sm:$0xff] %v5683_v37  ;;  %v5685_v7 = vpop.permute.xlu1 %879 }
 0x13b   : > { %9137 = vst [vmem:[#allocation115_spill] sm:$0xff] %v5685_v7  ;;  %1312 = vrot.lane.b32.xlu0 %v5166_v58, %s4706_s12 }
 0x13c   : > { %1040 = vrot.lane.b32.xlu1 %v5166_v58, %s4703_s5 }
 0x13d   : > { %v5691_v34 = vpop.permute.xlu0 %881 }
 0x13e   : > { %9138 = vst [vmem:[#allocation116_spill] sm:$0xff] %v5691_v34  ;;  %v5693_v43 = vpop.permute.xlu1 %883 }
 0x13f   : > { %9139 = vst [vmem:[#allocation117_spill] sm:$0xff] %v5693_v43  ;;  %1314 = vrot.lane.b32.xlu0 %v9140_v32, %s4706_s12 }
 0x140   : > { %1042 = vrot.lane.b32.xlu1 %v9140_v32, %s4703_s5 }
 0x141   : > { %v5699_v9 = vpop.permute.xlu0 %923 }
 0x142   : > { %v5701_v57 = vpop.permute.xlu1 %925 }
 0x143   : > { %1136 = vrot.lane.b32.xlu0 %v4864_v16, %s4704_s10 }
 0x144   : > { %1138 = vrot.lane.b32.xlu1 %v4861_v15, %s4704_s10 }
 0x145   : > { %v5707_v58 = vpop.permute.xlu0 %927 }
 0x146   : > { %v5709_v34 = vpop.permute.xlu1 %929 }
 0x147   : > { %1226 = vrot.lane.b32.xlu0 %v9090_v42, %s4705_s11 }
 0x148   : > { %1228 = vrot.lane.b32.xlu1 %v9091_v29, %s4705_s11 }
 0x149   : > { %v5715_v32 = vpop.permute.xlu0 %931 }
 0x14a   : > { %v5717_v43 = vpop.permute.xlu1 %933 }
 0x14b   : > { %1316 = vrot.lane.b32.xlu0 %v5179_v6, %s4706_s12 }
 0x14c   : > { %1044 = vrot.lane.b32.xlu1 %v5179_v6, %s4703_s5 }
 0x14d   : > { %v5723_v7 = vpop.permute.xlu0 %935 }
 0x14e   : > { %v5725_v37 = vpop.permute.xlu1 %937 }
 0x14f   : > { %1318 = vrot.lane.b32.xlu0 %v9141_v26, %s4706_s12 }
 0x150   : > { %1046 = vrot.lane.b32.xlu1 %v9141_v26, %s4703_s5 }
 0x151   : > { %v5731_v29 = vpop.permute.xlu0 %939 }
 0x152   : > { %v5733_v42 = vpop.permute.xlu1 %941 }
 0x153   : > { %1140 = vrot.lane.b32.xlu0 %v4890_v41, %s4704_s10  ;;  %v9143_v41 = vld [vmem:[#allocation42_spill] sm:$0xff] }
 0x154   : > { %1142 = vrot.lane.b32.xlu1 %v4886_v36, %s4704_s10 }
 0x155   : > { %v5739_v6 = vpop.permute.xlu0 %943 }
 0x156   : > { %v5741_v50 = vpop.permute.xlu1 %945 }
 0x157   : > { %1230 = vrot.lane.b32.xlu0 %v9094_v31, %s4705_s11 }
 0x158   : > { %1232 = vrot.lane.b32.xlu1 %v9095_v44, %s4705_s11 }
 0x159   : > { %v5747_v26 = vpop.permute.xlu0 %947 }
 0x15a   : > { %v5749_v56 = vpop.permute.xlu1 %949 }
 0x15b   : > { %1320 = vrot.lane.b32.xlu0 %v5192_v19, %s4706_s12 }
 0x15c   : > { %1048 = vrot.lane.b32.xlu1 %v5192_v19, %s4703_s5 }
 0x15d   : > { %v5755_v1 = vpop.permute.xlu0 %951 }
 0x15e   : > { %9142 = vst [vmem:[#allocation40_spill] sm:$0xff] %v5755_v1  ;;  %v5757_v36 = vpop.permute.xlu1 %953 }
 0x15f   : > { %1322 = vrot.lane.b32.xlu0 %v9143_v41, %s4706_s12 }
 0x160   : > { %1050 = vrot.lane.b32.xlu1 %v9143_v41, %s4703_s5 }
 0x161   : > { %v5763_v31 = vpop.permute.xlu0 %955 }
 0x162   : > { %9144 = vst [vmem:[#allocation41_spill] sm:$0xff] %v5763_v31  ;;  %v5765_v44 = vpop.permute.xlu1 %957 }
 0x163   : > { %9145 = vst [vmem:[#allocation42_spill] sm:$0xff] %v5765_v44  ;;  %1144 = vrot.lane.b32.xlu0 %v4914_v3, %s4704_s10 }
 0x164   : > { %1146 = vrot.lane.b32.xlu1 %v4911_v2, %s4704_s10 }
 0x165   : > { %v5771_v19 = vpop.permute.xlu0 %959 }
 0x166   : > { %9146 = vst [vmem:[#allocation118_spill] sm:$0xff] %v5771_v19  ;;  %v5773_v1 = vpop.permute.xlu1 %961 }
 0x167   : > { %9147 = vst [vmem:[#allocation119_spill] sm:$0xff] %v5773_v1  ;;  %1234 = vrot.lane.b32.xlu0 %v9098_v38, %s4705_s11  ;;  %v9152_v1 = vld [vmem:[#allocation43_spill] sm:$0xff] }
 0x168   : > { %1236 = vrot.lane.b32.xlu1 %v9099_v59, %s4705_s11 }
 0x169   : > { %v5779_v41 = vpop.permute.xlu0 %963 }
 0x16a   : > { %9148 = vst [vmem:[#allocation120_spill] sm:$0xff] %v5779_v41  ;;  %v5781_v31 = vpop.permute.xlu1 %965 }
 0x16b   : > { %9149 = vst [vmem:[#allocation121_spill] sm:$0xff] %v5781_v31  ;;  %1324 = vrot.lane.b32.xlu0 %v5205_v46, %s4706_s12 }
 0x16c   : > { %1052 = vrot.lane.b32.xlu1 %v5205_v46, %s4703_s5 }
 0x16d   : > { %v5787_v44 = vpop.permute.xlu0 %967 }
 0x16e   : > { %9150 = vst [vmem:[#allocation122_spill] sm:$0xff] %v5787_v44  ;;  %v5789_v19 = vpop.permute.xlu1 %969 }
 0x16f   : > { %9151 = vst [vmem:[#allocation123_spill] sm:$0xff] %v5789_v19  ;;  %1326 = vrot.lane.b32.xlu0 %v9152_v1, %s4706_s12  ;;  %v1391_v19 = vsel %vm1390_vm4, %v4759_v14, %v5298_v28 }
 0x170   : > { %1054 = vrot.lane.b32.xlu1 %v9152_v1, %s4703_s5  ;;  %v5806_v1 = vsel %vm1421_vm5, %v1391_v19, %v5425_v30  ;;  %v1392_v30 = vsel %vm1390_vm4, %v4756_v13, %v5309_v48 }
 0x171   : > { %v1025_v59 = vpop.permute.xlu0 %1024  ;;  %v1453_v31 = vsel %vm1452_vm6, %v5806_v1, %v5571_v40  ;;  %v5823_v40 = vsel %vm1421_vm5, %v1392_v30, %v5428_v10 }
 0x172   : > { %v1027_v38 = vpop.permute.xlu1 %1026  ;;  %v1486_v14 = vsel %vm1485_vm7, %v1453_v31, %v5699_v9  ;;  %v1454_v13 = vsel %vm1452_vm6, %v5823_v40, %v5573_v20 }
 0x173   : > { %1148 = vrot.lane.b32.xlu0 %v4920_v5, %s4704_s10  ;;  %v1487_v31 = vsel %vm1485_vm7, %v1454_v13, %v5701_v57 }
 0x174   : > { %1150 = vrot.lane.b32.xlu1 %v4925_v8, %s4704_s10 }
 0x175   : > { %v1121_v46 = vpop.permute.xlu0 %1120 }
 0x176   : > { %v1123_v44 = vpop.permute.xlu1 %1122 }
 0x177   : > { %1238 = vrot.lane.b32.xlu0 %v9102_v54, %s4705_s11  ;;  %v1519_v54 = vsel %vm1518_vm8, %v1486_v14, %v1025_v59  ;;  %v1520_v59 = vsel %vm1518_vm8, %v1487_v31, %v1027_v38 }
 0x178   : > { %1240 = vrot.lane.b32.xlu1 %v9103_v11, %s4705_s11  ;;  %v1552_v11 = vsel %vm1551_vm9, %v1519_v54, %v1121_v46  ;;  %v9153_v46 = vld [vmem:[#allocation44_spill] sm:$0xff] }
 0x179   : > { %v1211_v41 = vpop.permute.xlu0 %1210 }
 0x17a   : > { %v1213_v28 = vpop.permute.xlu1 %1212  ;;  %v1585_v48 = vsel %vm1584_vm10, %v1552_v11, %v1211_v41 }
 0x17b   : > { %1328 = vrot.lane.b32.xlu0 %v5218_v4, %s4706_s12 }
 0x17c   : > { %1056 = vrot.lane.b32.xlu1 %v5218_v4, %s4703_s5  ;;  %v1553_v4 = vsel %vm1551_vm9, %v1520_v59, %v1123_v44  ;;  %v1393_v44 = vsel %vm1390_vm4, %v4768_v21, %v5303_v12 }
 0x17d   : > { %v1301_v9 = vpop.permute.xlu0 %1300  ;;  %v1586_v20 = vsel %vm1584_vm10, %v1553_v4, %v1213_v28  ;;  %v1424_v28 = vsel %vm1421_vm5, %v1393_v44, %v5437_v55  ;;  %v9156_v55 = vld [vmem:[#allocation86_spill] sm:$0xff] }
 0x17e   : > { %v1029_v19 = vpop.permute.xlu1 %1028  ;;  %v1618_v10 = vsel %vm1617_vm11, %v1585_v48, %v1301_v9  ;;  %v1455_v54 = vsel %vm1452_vm6, %v1424_v28, %v5579_v22  ;;  %v9154_v9 = vld [vmem:[#allocation2_spill] sm:$0xff] }
 0x17f   : > { %1330 = vrot.lane.b32.xlu0 %v9153_v46, %s4706_s12  ;;  %4533 = vmatprep.mubr.msk.f32.mxu0 %vm1655_vm12, %v1618_v10  ;;  %v1488_v13 = vsel %vm1485_vm7, %v1455_v54, %v5707_v58  ;;  %v1394_v21 = vsel %vm1390_vm4, %v9154_v9, %v5311_v35  ;;  %v9157_v4 = vld [vmem:[#allocation46_spill] sm:$0xff]  ;;  %v1457_v54 = vsel %vm1452_vm6, %v5806_v1, %v5587_v25 }
 0x180   : > { %1058 = vrot.lane.b32.xlu1 %v9153_v46, %s4703_s5  ;;  %v1521_v12 = vsel %vm1518_vm8, %v1488_v13, %v1029_v19  ;;  %v1490_v13 = vsel %vm1485_vm7, %v1457_v54, %v5715_v32  ;;  %v9169_v54 = vld [vmem:[#allocation58_spill] sm:$0xff] }
 0x181   : > { %v1303_v41 = vpop.permute.xlu0 %1302 }
 0x182   : > { %v1619_v57 = vsel %vm1617_vm11, %v1586_v20, %v1303_v41  ;;  %v1031_v14 = vpop.permute.xlu1 %1030 }
 0x183   : > { %1152 = vrot.lane.b32.xlu0 %v4951_v47, %s4704_s10  ;;  %4534 = vmatmul.mubr.msk.f32.vlgmr.msra.gmra.mxu0 %vm1655_vm12, %v1619_v57 }
 0x184   : > { %1154 = vrot.lane.b32.xlu1 %v4948_v45, %s4704_s10 }
 0x185   : > { %v1125_v38 = vpop.permute.xlu0 %1124 }
 0x186   : > { %v1127_v30 = vpop.permute.xlu1 %1126  ;;  %v1554_v31 = vsel %vm1551_vm9, %v1521_v12, %v1125_v38  ;;  %v9158_v38 = vld [vmem:[#allocation18_spill] sm:$0xff] }
 0x187   : > { %1242 = vrot.lane.b32.xlu0 %v9106_v17, %s4705_s11  ;;  %v9155_v17 = vld [vmem:[#allocation45_spill] sm:$0xff] }
 0x188   : > { %1244 = vrot.lane.b32.xlu1 %v9107_v23, %s4705_s11  ;;  %v1425_v23 = vsel %vm1421_vm5, %v1394_v21, %v9156_v55  ;;  %v9161_v21 = vld [vmem:[#allocation47_spill] sm:$0xff] }
 0x189   : > { %v1215_v11 = vpop.permute.xlu0 %1214  ;;  %v1456_v22 = vsel %vm1452_vm6, %v1425_v23, %v5581_v63 }
 0x18a   : > { %v1217_v48 = vpop.permute.xlu1 %1216  ;;  %v1587_v58 = vsel %vm1584_vm10, %v1554_v31, %v1215_v11  ;;  %v1489_v35 = vsel %vm1485_vm7, %v1456_v22, %v5709_v34  ;;  %v9162_v31 = vld [vmem:[#allocation48_spill] sm:$0xff] }
 0x18b   : > { %1332 = vrot.lane.b32.xlu0 %v9155_v17, %s4706_s12  ;;  %v1522_v46 = vsel %vm1518_vm8, %v1489_v35, %v1031_v14  ;;  %v9159_v14 = vld [vmem:[#allocation17_spill] sm:$0xff] }
 0x18c   : > { %1060 = vrot.lane.b32.xlu1 %v9155_v17, %s4703_s5  ;;  %v1555_v20 = vsel %vm1551_vm9, %v1522_v46, %v1127_v30  ;;  %v9160_v30 = vld [vmem:[#allocation25_spill] sm:$0xff] }
 0x18d   : > { %v1305_v10 = vpop.permute.xlu0 %1304  ;;  %v1588_v63 = vsel %vm1584_vm10, %v1555_v20, %v1217_v48  ;;  %v9164_v35 = vld [vmem:[#allocation21_spill] sm:$0xff]  ;;  %v9166_v20 = vld [vmem:[#allocation87_spill] sm:$0xff] }
 0x18e   : > { %v1620_v19 = vsel %vm1617_vm11, %v1587_v58, %v1305_v10  ;;  %v1033_v59 = vpop.permute.xlu1 %1032  ;;  %v9163_v10 = vld [vmem:[#allocation22_spill] sm:$0xff]  ;;  %v9165_v46 = vld [vmem:[#allocation57_spill] sm:$0xff] }
 0x18f   : > { %1334 = vrot.lane.b32.xlu0 %v9157_v4, %s4706_s12  ;;  %4536 = vmatprep.mubr.msk.f32.mxu0 %vm1655_vm12, %v1620_v19  ;;  %v1523_v9 = vsel %vm1518_vm8, %v1490_v13, %v1033_v59  ;;  %v9171_v13 = vld [vmem:[#allocation88_spill] sm:$0xff] }
 0x190   : > { %1062 = vrot.lane.b32.xlu1 %v9157_v4, %s4703_s5  ;;  %v1395_v4 = vsel %vm1390_vm4, %v4791_v33, %v9165_v46  ;;  %v1396_v33 = vsel %vm1390_vm4, %v4803_v39, %v9169_v54 }
 0x191   : > { %v1307_v41 = vpop.permute.xlu0 %1306 }
 0x192   : > { %v1621_v34 = vsel %vm1617_vm11, %v1588_v63, %v1307_v41  ;;  %v1035_v57 = vpop.permute.xlu1 %1034  ;;  %v1426_v63 = vsel %vm1421_vm5, %v1395_v4, %v9166_v20  ;;  %v9167_v41 = vld [vmem:[#allocation28_spill] sm:$0xff]  ;;  %v9178_v4 = vld [vmem:[#allocation98_spill] sm:$0xff] }
 0x193   : > { %1156 = vrot.lane.b32.xlu0 %v9158_v38, %s4704_s10  ;;  %4537 = vmatmul.mubr.msk.f32.gmra.mxu0 %vm1655_vm12, %v1621_v34  ;;  %v9168_v34 = vld [vmem:[#allocation97_spill] sm:$0xff] }
 0x194   : > { %1158 = vrot.lane.b32.xlu1 %v9159_v14, %s4704_s10 }
 0x195   : > { %v1129_v44 = vpop.permute.xlu0 %1128 }
 0x196   : > { %v1131_v28 = vpop.permute.xlu1 %1130  ;;  %v1556_v12 = vsel %vm1551_vm9, %v1523_v9, %v1129_v44 }
 0x197   : > { %1246 = vrot.lane.b32.xlu0 %v9110_v18, %s4705_s11  ;;  %v1458_v18 = vsel %vm1452_vm6, %v5823_v40, %v5589_v24 }
 0x198   : > { %1248 = vrot.lane.b32.xlu1 %v9160_v30, %s4705_s11  ;;  %v1491_v32 = vsel %vm1485_vm7, %v1458_v18, %v5717_v43 }
 0x199   : > { %v1219_v11 = vpop.permute.xlu0 %1218  ;;  %v1524_v23 = vsel %vm1518_vm8, %v1491_v32, %v1035_v57  ;;  %v1459_v57 = vsel %vm1452_vm6, %v1426_v63, %v9168_v34  ;;  %v9172_v32 = vld [vmem:[#allocation50_spill] sm:$0xff] }
 0x19a   : > { %v1221_v48 = vpop.permute.xlu1 %1220  ;;  %v1589_v25 = vsel %vm1584_vm10, %v1556_v12, %v1219_v11  ;;  %v1557_v22 = vsel %vm1551_vm9, %v1524_v23, %v1131_v28  ;;  %v1492_v28 = vsel %vm1485_vm7, %v1459_v57, %v5723_v7  ;;  %v9170_v11 = vld [vmem:[#allocation49_spill] sm:$0xff]  ;;  %v9179_v57 = vld [vmem:[#allocation60_spill] sm:$0xff] }
 0x19b   : > { %1336 = vrot.lane.b32.xlu0 %v9161_v21, %s4706_s12  ;;  %v1590_v24 = vsel %vm1584_vm10, %v1557_v22, %v1221_v48  ;;  %v1427_v48 = vsel %vm1421_vm5, %v1396_v33, %v9171_v13  ;;  %v9174_v22 = vld [vmem:[#allocation26_spill] sm:$0xff] }
 0x19c   : > { %1064 = vrot.lane.b32.xlu1 %v9161_v21, %s4703_s5  ;;  %v1460_v7 = vsel %vm1452_vm6, %v1427_v48, %v5597_v0 }
 0x19d   : > { %v1309_v1 = vpop.permute.xlu0 %1308  ;;  %v1493_v39 = vsel %vm1485_vm7, %v1460_v7, %v5725_v37 }
 0x19e   : > { %v1622_v17 = vsel %vm1617_vm11, %v1589_v25, %v1309_v1  ;;  %v1037_v55 = vpop.permute.xlu1 %1036 }
 0x19f   : > { %1338 = vrot.lane.b32.xlu0 %v9162_v31, %s4706_s12  ;;  %4539 = vmatprep.mubr.msk.f32.mxu0 %vm1655_vm12, %v1622_v17 }
 0x1a0   : > { %1066 = vrot.lane.b32.xlu1 %v9162_v31, %s4703_s5  ;;  %v9173_v31 = vld [vmem:[#allocation27_spill] sm:$0xff] }
 0x1a1   : > { %v1311_v40 = vpop.permute.xlu0 %1310 }
 0x1a2   : > { %v1623_v43 = vsel %vm1617_vm11, %v1590_v24, %v1311_v40  ;;  %v1039_v58 = vpop.permute.xlu1 %1038 }
 0x1a3   : > { %1160 = vrot.lane.b32.xlu0 %v9163_v10, %s4704_s10  ;;  %4540 = vmatmul.mubr.msk.f32.gmra.mxu0 %vm1655_vm12, %v1623_v43  ;;  %v1526_v1 = vsel %vm1518_vm8, %v1493_v39, %v1039_v58  ;;  %v9175_v43 = vld [vmem:[#allocation59_spill] sm:$0xff] }
 0x1a4   : > { %1162 = vrot.lane.b32.xlu1 %v9164_v35, %s4704_s10  ;;  %v1397_v58 = vsel %vm1390_vm4, %v4821_v52, %v9175_v43  ;;  %v1398_v52 = vsel %vm1390_vm4, %v4818_v51, %v9179_v57  ;;  %v9189_v43 = vld [vmem:[#allocation100_spill] sm:$0xff] }
 0x1a5   : > { %v1133_v19 = vpop.permute.xlu0 %1132 }
 0x1a6   : > { %v1135_v59 = vpop.permute.xlu1 %1134 }
 0x1a7   : > { %1250 = vrot.lane.b32.xlu0 %v5042_v49, %s4705_s11  ;;  %v1525_v49 = vsel %vm1518_vm8, %v1492_v28, %v1037_v55  ;;  %v1559_v17 = vsel %vm1551_vm9, %v1526_v1, %v1135_v59  ;;  %v9177_v59 = vld [vmem:[#allocation89_spill] sm:$0xff]  ;;  %v9180_v28 = vld [vmem:[#allocation32_spill] sm:$0xff] }
 0x1a8   : > { %1252 = vrot.lane.b32.xlu1 %v9167_v41, %s4705_s11  ;;  %v1558_v9 = vsel %vm1551_vm9, %v1525_v49, %v1133_v19  ;;  %v9176_v19 = vld [vmem:[#allocation31_spill] sm:$0xff]  ;;  %v1428_v46 = vsel %vm1421_vm5, %v1397_v58, %v9177_v59  ;;  %v9184_v1 = vld [vmem:[#allocation52_spill] sm:$0xff] }
 0x1a9   : > { %v1223_v44 = vpop.permute.xlu0 %1222  ;;  %v1461_v20 = vsel %vm1452_vm6, %v1428_v46, %v9178_v4  ;;  %v9182_v49 = vld [vmem:[#allocation51_spill] sm:$0xff]  ;;  %v9190_v4 = vld [vmem:[#allocation62_spill] sm:$0xff] }
 0x1aa   : > { %v1225_v30 = vpop.permute.xlu1 %1224  ;;  %v1591_v21 = vsel %vm1584_vm10, %v1558_v9, %v1223_v44  ;;  %v1494_v41 = vsel %vm1485_vm7, %v1461_v20, %v5731_v29 }
 0x1ab   : > { %1340 = vrot.lane.b32.xlu0 %v9170_v11, %s4706_s12  ;;  %v1592_v0 = vsel %vm1584_vm10, %v1559_v17, %v1225_v30  ;;  %v9181_v30 = vld [vmem:[#allocation90_spill] sm:$0xff] }
 0x1ac   : > { %1068 = vrot.lane.b32.xlu1 %v9170_v11, %s4703_s5  ;;  %v1429_v54 = vsel %vm1421_vm5, %v1398_v52, %v9181_v30  ;;  %v9183_v11 = vld [vmem:[#allocation99_spill] sm:$0xff] }
 0x1ad   : > { %v1313_v12 = vpop.permute.xlu0 %1312  ;;  %v1462_v29 = vsel %vm1452_vm6, %v1429_v54, %v9183_v11 }
 0x1ae   : > { %v1624_v18 = vsel %vm1617_vm11, %v1591_v21, %v1313_v12  ;;  %v1041_v25 = vpop.permute.xlu1 %1040  ;;  %v1495_v51 = vsel %vm1485_vm7, %v1462_v29, %v5733_v42 }
 0x1af   : > { %1342 = vrot.lane.b32.xlu0 %v9172_v32, %s4706_s12  ;;  %4542 = vmatprep.mubr.msk.f32.mxu0 %vm1655_vm12, %v1624_v18  ;;  %v1527_v44 = vsel %vm1518_vm8, %v1494_v41, %v1041_v25  ;;  %v9192_v41 = vld [vmem:[#allocation92_spill] sm:$0xff] }
 0x1b0   : > { %1070 = vrot.lane.b32.xlu1 %v9172_v32, %s4703_s5 }
 0x1b1   : > { %v1315_v55 = vpop.permute.xlu0 %1314 }
 0x1b2   : > { %v1625_v37 = vsel %vm1617_vm11, %v1592_v0, %v1315_v55  ;;  %v1043_v23 = vpop.permute.xlu1 %1042  ;;  %v9185_v0 = vld [vmem:[#allocation61_spill] sm:$0xff] }
 0x1b3   : > { %1164 = vrot.lane.b32.xlu0 %v9173_v31, %s4704_s10  ;;  %4543 = vmatmul.mubr.msk.f32.gmra.mxu0 %vm1655_vm12, %v1625_v37  ;;  %v1528_v21 = vsel %vm1518_vm8, %v1495_v51, %v1043_v23  ;;  %v1399_v55 = vsel %vm1390_vm4, %v4840_v62, %v9185_v0  ;;  %v9186_v37 = vld [vmem:[#allocation30_spill] sm:$0xff]  ;;  %v9187_v23 = vld [vmem:[#allocation91_spill] sm:$0xff]  ;;  %v1400_v62 = vsel %vm1390_vm4, %v4837_v61, %v9190_v4  ;;  %v9202_v4 = vld [vmem:[#allocation37_spill] sm:$0xff] }
 0x1b4   : > { %1166 = vrot.lane.b32.xlu1 %v9174_v22, %s4704_s10  ;;  %v9199_v0 = vld [vmem:[#allocation34_spill] sm:$0xff] }
 0x1b5   : > { %v1137_v24 = vpop.permute.xlu0 %1136 }
 0x1b6   : > { %v1139_v40 = vpop.permute.xlu1 %1138  ;;  %v1560_v33 = vsel %vm1551_vm9, %v1527_v44, %v1137_v24  ;;  %v1430_v24 = vsel %vm1421_vm5, %v1399_v55, %v9187_v23  ;;  %v9200_v55 = vld [vmem:[#allocation93_spill] sm:$0xff] }
 0x1b7   : > { %1254 = vrot.lane.b32.xlu0 %v9176_v19, %s4705_s11  ;;  %v1561_v12 = vsel %vm1551_vm9, %v1528_v21, %v1139_v40  ;;  %v9188_v40 = vld [vmem:[#allocation29_spill] sm:$0xff]  ;;  %v1463_v58 = vsel %vm1452_vm6, %v1430_v24, %v9189_v43  ;;  %v9196_v21 = vld [vmem:[#allocation54_spill] sm:$0xff] }
 0x1b8   : > { %971 = vrot.lane.b32.xlu1 %v9176_v19, %s4702_s24  ;;  %v1496_v59 = vsel %vm1485_vm7, %v1463_v58, %v5739_v6 }
 0x1b9   : > { %v1227_v63 = vpop.permute.xlu0 %1226 }
 0x1ba   : > { %v1229_v34 = vpop.permute.xlu1 %1228  ;;  %v1593_v13 = vsel %vm1584_vm10, %v1560_v33, %v1227_v63  ;;  %v9191_v63 = vld [vmem:[#allocation35_spill] sm:$0xff]  ;;  %v9193_v33 = vld [vmem:[#allocation36_spill] sm:$0xff] }
 0x1bb   : > { %1256 = vrot.lane.b32.xlu0 %v9180_v28, %s4705_s11  ;;  %v1594_v39 = vsel %vm1584_vm10, %v1561_v12, %v1229_v34  ;;  %v1431_v34 = vsel %vm1421_vm5, %v1400_v62, %v9192_v41  ;;  %v9197_v12 = vld [vmem:[#allocation3_spill] sm:$0xff]  ;;  %v9203_v41 = vld [vmem:[#allocation38_spill] sm:$0xff] }
 0x1bc   : > { %1344 = vrot.lane.b32.xlu1 %v9182_v49, %s4706_s12  ;;  %v1464_v6 = vsel %vm1452_vm6, %v1431_v34, %v5613_v60  ;;  %v9194_v60 = vld [vmem:[#allocation53_spill] sm:$0xff]  ;;  %v9204_v34 = vld [vmem:[#allocation55_spill] sm:$0xff] }
 0x1bd   : > { %v1317_v48 = vpop.permute.xlu0 %1316  ;;  %v1497_v61 = vsel %vm1485_vm7, %v1464_v6, %v5741_v50 }
 0x1be   : > { %v1626_v9 = vsel %vm1617_vm11, %v1593_v13, %v1317_v48  ;;  %v1045_v7 = vpop.permute.xlu1 %1044 }
 0x1bf   : > { %973 = vrot.lane.b32.xlu0 %v9180_v28, %s4702_s24  ;;  %4545 = vmatprep.mubr.msk.f32.mxu0 %vm1655_vm12, %v1626_v9  ;;  %v1529_v20 = vsel %vm1518_vm8, %v1496_v59, %v1045_v7  ;;  %v9195_v9 = vld [vmem:[#allocation63_spill] sm:$0xff] }
 0x1c0   : > { %1072 = vrot.lane.b32.xlu1 %v9182_v49, %s4703_s5  ;;  %v1401_v7 = vsel %vm1390_vm4, %v4864_v16, %v9195_v9 }
 0x1c1   : > { %v1319_v18 = vpop.permute.xlu0 %1318 }
 0x1c2   : > { %v1627_v42 = vsel %vm1617_vm11, %v1594_v39, %v1319_v18  ;;  %v1047_v25 = vpop.permute.xlu1 %1046  ;;  %v1432_v39 = vsel %vm1421_vm5, %v1401_v7, %v9197_v12  ;;  %v9214_v12 = vld [vmem:[#allocation84_spill] sm:$0xff] }
 0x1c3   : > { %1346 = vrot.lane.b32.xlu0 %v9184_v1, %s4706_s12  ;;  %4546 = vmatmul.mubr.msk.f32.gmra.mxu0 %vm1655_vm12, %v1627_v42  ;;  %v1530_v54 = vsel %vm1518_vm8, %v1497_v61, %v1047_v25  ;;  %v1465_v18 = vsel %vm1452_vm6, %v1432_v39, %v5619_v53  ;;  %v9201_v53 = vld [vmem:[#allocation33_spill] sm:$0xff]  ;;  %v918_v39 = vrot.slane %v9214_v12, 1 }
 0x1c4   : > { %1074 = vrot.lane.b32.xlu1 %v9184_v1, %s4703_s5  ;;  %v1498_v25 = vsel %vm1485_vm7, %v1465_v18, %v5747_v26  ;;  %v9215_v18 = vld [vmem:[#allocation85_spill] sm:$0xff] }
 0x1c5   : > { %v1141_v32 = vpop.permute.xlu0 %1140 }
 0x1c6   : > { %v1143_v17 = vpop.permute.xlu1 %1142  ;;  %v1562_v57 = vsel %vm1551_vm9, %v1529_v20, %v1141_v32  ;;  %v9198_v32 = vld [vmem:[#allocation64_spill] sm:$0xff] }
 0x1c7   : > { %1168 = vrot.lane.b32.xlu0 %v9186_v37, %s4704_s10  ;;  %v1563_v49 = vsel %vm1551_vm9, %v1530_v54, %v1143_v17  ;;  %v1402_v16 = vsel %vm1390_vm4, %v4861_v15, %v9198_v32  ;;  %v9208_v54 = vld [vmem:[#allocation83_spill] sm:$0xff] }
 0x1c8   : > { %1170 = vrot.lane.b32.xlu1 %v9188_v40, %s4704_s10  ;;  %v1433_v23 = vsel %vm1421_vm5, %v1402_v16, %v9200_v55  ;;  %v9217_v16 = vld [vmem:[#allocation102_spill] sm:$0xff] }
 0x1c9   : > { %v1231_v19 = vpop.permute.xlu0 %1230  ;;  %v1466_v26 = vsel %vm1452_vm6, %v1433_v23, %v5621_v27 }
 0x1ca   : > { %v1233_v46 = vpop.permute.xlu1 %1232  ;;  %v1595_v52 = vsel %vm1584_vm10, %v1562_v57, %v1231_v19  ;;  %v1499_v15 = vsel %vm1485_vm7, %v1466_v26, %v5749_v56 }
 0x1cb   : > { %1258 = vrot.lane.b32.xlu0 %v9191_v63, %s4705_s11  ;;  %v1596_v11 = vsel %vm1584_vm10, %v1563_v49, %v1233_v46  ;;  %v9209_v49 = vld [vmem:[#allocation101_spill] sm:$0xff] }
 0x1cc   : > { %975 = vrot.lane.b32.xlu1 %v9191_v63, %s4702_s24 }
 0x1cd   : > { %v1321_v44 = vpop.permute.xlu0 %1320 }
 0x1ce   : > { %v1628_v28 = vsel %vm1617_vm11, %v1595_v52, %v1321_v44  ;;  %v1049_v30 = vpop.permute.xlu1 %1048  ;;  %v9205_v52 = vld [vmem:[#allocation65_spill] sm:$0xff] }
 0x1cf   : > { %1260 = vrot.lane.b32.xlu0 %v9193_v33, %s4705_s11  ;;  %4548 = vmatprep.mubr.msk.f32.mxu0 %vm1655_vm12, %v1628_v28  ;;  %v1531_v17 = vsel %vm1518_vm8, %v1498_v25, %v1049_v30  ;;  %v9206_v44 = vld [vmem:[#allocation9_spill] sm:$0xff]  ;;  %v9207_v28 = vld [vmem:[#allocation4_spill] sm:$0xff] }
 0x1d0   : > { %1348 = vrot.lane.b32.xlu1 %v9194_v60, %s4706_s12  ;;  %v1403_v61 = vsel %vm1390_vm4, %v9206_v44, %v9205_v52  ;;  %v9216_v25 = vld [vmem:[#allocation5_spill] sm:$0xff]  ;;  %v9219_v52 = vld [vmem:[#allocation67_spill] sm:$0xff] }
 0x1d1   : > { %v1323_v29 = vpop.permute.xlu0 %1322  ;;  %v1434_v30 = vsel %vm1421_vm5, %v1403_v61, %v9207_v28  ;;  %v1405_v44 = vsel %vm1390_vm4, %v4914_v3, %v9219_v52  ;;  %v9220_v61 = vld [vmem:[#allocation6_spill] sm:$0xff] }
 0x1d2   : > { %v1629_v50 = vsel %vm1617_vm11, %v1596_v11, %v1323_v29  ;;  %v1051_v13 = vpop.permute.xlu1 %1050  ;;  %v9210_v29 = vld [vmem:[#allocation40_spill] sm:$0xff]  ;;  %v1436_v28 = vsel %vm1421_vm5, %v1405_v44, %v9220_v61 }
 0x1d3   : > { %977 = vrot.lane.b32.xlu0 %v9193_v33, %s4702_s24  ;;  %4549 = vmatmul.mubr.msk.f32.gmra.mxu0 %vm1655_vm12, %v1629_v50  ;;  %v1532_v46 = vsel %vm1518_vm8, %v1499_v15, %v1051_v13  ;;  %v409_v33 = vrot.slane %v9208_v54, 5 }
 0x1d4   : > { %1076 = vrot.lane.b32.xlu1 %v9194_v60, %s4703_s5  ;;  %v1467_v60 = vsel %vm1452_vm6, %v1434_v30, %v9209_v49 }
 0x1d5   : > { %v1145_v48 = vpop.permute.xlu0 %1144  ;;  %v1500_v50 = vsel %vm1485_vm7, %v1467_v60, %v9210_v29  ;;  %v9222_v60 = vld [vmem:[#allocation41_spill] sm:$0xff] }
 0x1d6   : > { %v1147_v51 = vpop.permute.xlu1 %1146  ;;  %v1564_v24 = vsel %vm1551_vm9, %v1531_v17, %v1145_v48  ;;  %v9211_v48 = vld [vmem:[#allocation66_spill] sm:$0xff] }
 0x1d7   : > { %1350 = vrot.lane.b32.xlu0 %v9196_v21, %s4706_s12  ;;  %v1565_v62 = vsel %vm1551_vm9, %v1532_v46, %v1147_v51  ;;  %v9212_v51 = vld [vmem:[#allocation8_spill] sm:$0xff] }
 0x1d8   : > { %1078 = vrot.lane.b32.xlu1 %v9196_v21, %s4703_s5  ;;  %v1404_v9 = vsel %vm1390_vm4, %v9212_v51, %v9211_v48  ;;  %v9213_v21 = vld [vmem:[#allocation56_spill] sm:$0xff]  ;;  %v9224_v48 = vld [vmem:[#allocation7_spill] sm:$0xff] }
 0x1d9   : > { %v1235_v42 = vpop.permute.xlu0 %1234 }
 0x1da   : > { %v1237_v1 = vpop.permute.xlu1 %1236  ;;  %v1597_v43 = vsel %vm1584_vm10, %v1564_v24, %v1235_v42  ;;  %v919_v42 = vrot.slane %v9215_v18, 1  ;;  %v9218_v24 = vrot.slane %v9208_v54, 7  ;;  %v9221_v54 = vld [vmem:[#allocation103_spill] sm:$0xff] }
 0x1db   : > { %1172 = vrot.lane.b32.xlu0 %v9199_v0, %s4704_s10  ;;  %v1598_v27 = vsel %vm1584_vm10, %v1565_v62, %v1237_v1  ;;  %v1435_v1 = vsel %vm1421_vm5, %v1404_v9, %v9216_v25  ;;  %v1020_v62 = vrot.slane %v9215_v18, 2 }
 0x1dc   : > { %1174 = vrot.lane.b32.xlu1 %v9201_v53, %s4704_s10  ;;  %v1468_v17 = vsel %vm1452_vm6, %v1435_v1, %v9217_v16  ;;  %v457_v26 = vsel %vm298_vm0, %v9218_v24, %v409_v33  ;;  %v920_v46 = vsel %vm488_vm1, %v918_v39, %v919_v42  ;;  %v1469_v33 = vsel %vm1452_vm6, %v1436_v28, %v9221_v54  ;;  %v9234_v28 = vld [vmem:[#allocation119_spill] sm:$0xff] }
 0x1dd   : > { %v1325_v58 = vpop.permute.xlu0 %1324  ;;  %v1022_v30 = vrot.slane %v457_v26, 2 }
 0x1de   : > { %v1630_v19 = vsel %vm1617_vm11, %v1597_v43, %v1325_v58  ;;  %v1053_v59 = vpop.permute.xlu1 %1052  ;;  %v1501_v43 = vsel %vm1485_vm7, %v1468_v17, %v5757_v36  ;;  %v1019_v36 = vrot.slane %v9214_v12, 2 }
 0x1df   : > { %1262 = vrot.lane.b32.xlu0 %v9202_v4, %s4705_s11  ;;  %4551 = vmatprep.mubr.msk.f32.mxu0 %vm1655_vm12, %v1630_v19  ;;  %v1533_v7 = vsel %vm1518_vm8, %v1500_v50, %v1053_v59  ;;  %v9223_v50 = vld [vmem:[#allocation68_spill] sm:$0xff] }
 0x1e0   : > { %979 = vrot.lane.b32.xlu1 %v9202_v4, %s4702_s24  ;;  %v921_v4 = vrot.slane %v457_v26, 1  ;;  %v1406_v3 = vsel %vm1390_vm4, %v4911_v2, %v9223_v50  ;;  %v9226_v2 = vld [vmem:[#allocation42_spill] sm:$0xff] }
 0x1e1   : > { %v1327_v20 = vpop.permute.xlu0 %1326  ;;  %v1437_v51 = vsel %vm1421_vm5, %v1406_v3, %v9224_v48  ;;  %v9235_v48 = vld [vmem:[#allocation71_spill] sm:$0xff] }
 0x1e2   : > { %v1631_v56 = vsel %vm1617_vm11, %v1598_v27, %v1327_v20  ;;  %v1055_v63 = vpop.permute.xlu1 %1054 }
 0x1e3   : > { %1264 = vrot.lane.b32.xlu0 %v9203_v41, %s4705_s11  ;;  %4552 = vmatmul.mubr.msk.f32.gmra.mxu0 %vm1655_vm12, %v1631_v56  ;;  %v1534_v19 = vsel %vm1518_vm8, %v1501_v43, %v1055_v63 }
 0x1e4   : > { %1352 = vrot.lane.b32.xlu1 %v9204_v34, %s4706_s12 }
 0x1e5   : > { %v1149_v57 = vpop.permute.xlu0 %1148 }
 0x1e6   : > { %v1151_v6 = vpop.permute.xlu1 %1150  ;;  %v1566_v32 = vsel %vm1551_vm9, %v1533_v7, %v1149_v57  ;;  %v1021_v57 = vsel %vm654_vm2, %v1019_v36, %v1020_v62  ;;  %v1023_v7 = vsel %vm654_vm2, %v1020_v62, %v1022_v30  ;;  %v9230_v62 = vld [vmem:[#allocation118_spill] sm:$0xff] }
 0x1e7   : > { %981 = vrot.lane.b32.xlu0 %v9203_v41, %s4702_s24  ;;  %v1567_v59 = vsel %vm1551_vm9, %v1534_v19, %v1151_v6  ;;  %v922_v41 = vsel %vm488_vm1, %v919_v42, %v921_v4  ;;  %v9228_v19 = vld [vmem:[#allocation10_spill] sm:$0xff] }
 0x1e8   : > { %1080 = vrot.lane.b32.xlu1 %v9204_v34, %s4703_s5 }
 0x1e9   : > { %v1239_v11 = vpop.permute.xlu0 %1238 }
 0x1ea   : > { %v1241_v13 = vpop.permute.xlu1 %1240  ;;  %v1599_v55 = vsel %vm1584_vm10, %v1566_v32, %v1239_v11  ;;  %v1502_v11 = vsel %vm1485_vm7, %v1469_v33, %v9222_v60 }
 0x1eb   : > { %1354 = vrot.lane.b32.xlu0 %v9213_v21, %s4706_s12  ;;  %v1600_v27 = vsel %vm1584_vm10, %v1567_v59, %v1241_v13 }
 0x1ec   : > { %1082 = vrot.lane.b32.xlu1 %v9213_v21, %s4703_s5  ;;  %v9225_v21 = vld [vmem:[#allocation104_spill] sm:$0xff] }
 0x1ed   : > { %v1329_v23 = vpop.permute.xlu0 %1328 }
 0x1ee   : > { %v1632_v58 = vsel %vm1617_vm11, %v1599_v55, %v1329_v23  ;;  %v1057_v15 = vpop.permute.xlu1 %1056 }
 0x1ef   : > { %1176 = vrot.lane.b32.xlu0 %v9214_v12, %s4704_s10  ;;  %4554 = vmatprep.mubr.msk.f32.mxu0 %vm1655_vm12, %v1632_v58  ;;  %v1535_v13 = vsel %vm1518_vm8, %v1502_v11, %v1057_v15  ;;  %v1470_v12 = vsel %vm1452_vm6, %v1437_v51, %v9225_v21  ;;  %v9227_v58 = vld [vmem:[#allocation69_spill] sm:$0xff]  ;;  %v1409_v51 = vsel %vm1390_vm4, %v4951_v47, %v9235_v48  ;;  %v9237_v21 = vld [vmem:[#allocation107_spill] sm:$0xff] }
 0x1f0   : > { %1178 = vrot.lane.b32.xlu1 %v9215_v18, %s4704_s10  ;;  %v1503_v42 = vsel %vm1485_vm7, %v1470_v12, %v9226_v2  ;;  %v1407_v15 = vsel %vm1390_vm4, %v4920_v5, %v9227_v58  ;;  %v9250_v48 = vld [vmem:[#allocation123_spill] sm:$0xff] }
 0x1f1   : > { %v1331_v20 = vpop.permute.xlu0 %1330  ;;  %v1438_v59 = vsel %vm1421_vm5, %v1407_v15, %v9228_v19 }
 0x1f2   : > { %v1633_v56 = vsel %vm1617_vm11, %v1600_v27, %v1331_v20  ;;  %v1059_v63 = vpop.permute.xlu1 %1058 }
 0x1f3   : > { %1266 = vrot.lane.b32.xlu0 %v920_v46, %s4705_s11  ;;  %4555 = vmatmul.mubr.msk.f32.gmra.mxu0 %vm1655_vm12, %v1633_v56  ;;  %v1536_v32 = vsel %vm1518_vm8, %v1503_v42, %v1059_v63  ;;  %v9231_v56 = vld [vmem:[#allocation70_spill] sm:$0xff] }
 0x1f4   : > { %983 = vrot.lane.b32.xlu1 %v920_v46, %s4702_s24  ;;  %v9229_v46 = vld [vmem:[#allocation105_spill] sm:$0xff]  ;;  %v1408_v63 = vsel %vm1390_vm4, %v4925_v8, %v9231_v56 }
 0x1f5   : > { %v1153_v34 = vpop.permute.xlu0 %1152  ;;  %v1471_v4 = vsel %vm1452_vm6, %v1438_v59, %v9229_v46  ;;  %v9243_v56 = vld [vmem:[#allocation73_spill] sm:$0xff] }
 0x1f6   : > { %v1155_v6 = vpop.permute.xlu1 %1154  ;;  %v1568_v9 = vsel %vm1551_vm9, %v1535_v13, %v1153_v34  ;;  %v1504_v27 = vsel %vm1485_vm7, %v1471_v4, %v9230_v62  ;;  %v9232_v34 = vld [vmem:[#allocation11_spill] sm:$0xff] }
 0x1f7   : > { %1268 = vrot.lane.b32.xlu0 %v922_v41, %s4705_s11  ;;  %v1569_v16 = vsel %vm1551_vm9, %v1536_v32, %v1155_v6  ;;  %v1439_v5 = vsel %vm1421_vm5, %v1408_v63, %v9232_v34  ;;  %v9233_v6 = vld [vmem:[#allocation106_spill] sm:$0xff]  ;;  %v1411_v63 = vsel %vm1390_vm4, %v9158_v38, %v9243_v56 }
 0x1f8   : > { %1356 = vrot.lane.b32.xlu1 %v1021_v57, %s4706_s12  ;;  %v1472_v52 = vsel %vm1452_vm6, %v1439_v5, %v9233_v6  ;;  %v9247_v38 = vld [vmem:[#allocation74_spill] sm:$0xff] }
 0x1f9   : > { %v1243_v49 = vpop.permute.xlu0 %1242  ;;  %v1505_v30 = vsel %vm1485_vm7, %v1472_v52, %v9234_v28 }
 0x1fa   : > { %v1245_v29 = vpop.permute.xlu1 %1244  ;;  %v1601_v39 = vsel %vm1584_vm10, %v1568_v9, %v1243_v49  ;;  %v9236_v9 = vld [vmem:[#allocation12_spill] sm:$0xff] }
 0x1fb   : > { %985 = vrot.lane.b32.xlu0 %v922_v41, %s4702_s24  ;;  %v1602_v17 = vsel %vm1584_vm10, %v1569_v16, %v1245_v29  ;;  %v9240_v16 = vld [vmem:[#allocation13_spill] sm:$0xff] }
 0x1fc   : > { %1084 = vrot.lane.b32.xlu1 %v1021_v57, %s4703_s5 }
 0x1fd   : > { %v1333_v18 = vpop.permute.xlu0 %1332 }
 0x1fe   : > { %v1634_v25 = vsel %vm1617_vm11, %v1601_v39, %v1333_v18  ;;  %v1061_v1 = vpop.permute.xlu1 %1060  ;;  %v9238_v18 = vld [vmem:[#allocation120_spill] sm:$0xff] }
 0x1ff   : > { %1358 = vrot.lane.b32.xlu0 %v1023_v7, %s4706_s12  ;;  %4557 = vmatprep.mubr.msk.f32.mxu0 %vm1655_vm12, %v1634_v25  ;;  %v1537_v41 = vsel %vm1518_vm8, %v1504_v27, %v1061_v1  ;;  %v9239_v25 = vld [vmem:[#allocation72_spill] sm:$0xff] }
 0x200   : > { %1086 = vrot.lane.b32.xlu1 %v1023_v7, %s4703_s5  ;;  %v1440_v7 = vsel %vm1421_vm5, %v1409_v51, %v9236_v9  ;;  %v1410_v1 = vsel %vm1390_vm4, %v4948_v45, %v9239_v25  ;;  %v9251_v25 = vld [vmem:[#allocation75_spill] sm:$0xff] }
 0x201   : > { %v1335_v55 = vpop.permute.xlu0 %1334  ;;  %v1473_v12 = vsel %vm1452_vm6, %v1440_v7, %v9237_v21  ;;  %v1441_v47 = vsel %vm1421_vm5, %v1410_v1, %v9240_v16  ;;  %v1413_v1 = vsel %vm1390_vm4, %v9163_v10, %v9251_v25 }
 0x202   : > { %v1635_v23 = vsel %vm1617_vm11, %v1602_v17, %v1335_v55  ;;  %v1063_v24 = vpop.permute.xlu1 %1062  ;;  %v1506_v2 = vsel %vm1485_vm7, %v1473_v12, %v9238_v18  ;;  %v9241_v55 = vld [vmem:[#allocation108_spill] sm:$0xff] }
 0x203   : > { %4558 = vmatmul.mubr.msk.f32.gmra.mxu0 %vm1655_vm12, %v1635_v23  ;;  %v1538_v8 = vsel %vm1518_vm8, %v1505_v30, %v1063_v24  ;;  %v1474_v23 = vsel %vm1452_vm6, %v1441_v47, %v9241_v55 }
 0x205   : > { %v1157_v26 = vpop.permute.xlu0 %1156 }
 0x206   : > { %v1159_v43 = vpop.permute.xlu1 %1158  ;;  %v1570_v57 = vsel %vm1551_vm9, %v1537_v41, %v1157_v26  ;;  %v9244_v41 = vld [vmem:[#allocation14_spill] sm:$0xff] }
 0x207   : > { %v1571_v49 = vsel %vm1551_vm9, %v1538_v8, %v1159_v43  ;;  %v9242_v43 = vld [vmem:[#allocation121_spill] sm:$0xff]  ;;  %v1442_v34 = vsel %vm1421_vm5, %v1411_v63, %v9244_v41 }
 0x208   : > { %v1507_v58 = vsel %vm1485_vm7, %v1474_v23, %v9242_v43 }
 0x209   : > { %v1247_v36 = vpop.permute.xlu0 %1246 }
 0x20a   : > { %v1249_v20 = vpop.permute.xlu1 %1248  ;;  %v1603_v44 = vsel %vm1584_vm10, %v1570_v57, %v1247_v36  ;;  %v9245_v57 = vld [vmem:[#allocation109_spill] sm:$0xff] }
 0x20b   : > { %v1604_v60 = vsel %vm1584_vm10, %v1571_v49, %v1249_v20  ;;  %v1475_v6 = vsel %vm1452_vm6, %v1442_v34, %v9245_v57  ;;  %v1412_v49 = vsel %vm1390_vm4, %v9159_v14, %v9247_v38 }
 0x20d   : > { %v1337_v61 = vpop.permute.xlu0 %1336 }
 0x20e   : > { %v1636_v54 = vsel %vm1617_vm11, %v1603_v44, %v1337_v61  ;;  %v1065_v33 = vpop.permute.xlu1 %1064  ;;  %v9246_v44 = vld [vmem:[#allocation122_spill] sm:$0xff] }
 0x20f   : > { %4560 = vmatprep.mubr.msk.f32.mxu0 %vm1655_vm12, %v1636_v54  ;;  %v1539_v32 = vsel %vm1518_vm8, %v1506_v2, %v1065_v33  ;;  %v1508_v61 = vsel %vm1485_vm7, %v1475_v6, %v9246_v44  ;;  %v9257_v44 = vld [vmem:[#allocation77_spill] sm:$0xff] }
 0x211   : > { %v1339_v11 = vpop.permute.xlu0 %1338 }
 0x212   : > { %v1637_v29 = vsel %vm1617_vm11, %v1604_v60, %v1339_v11  ;;  %v1067_v50 = vpop.permute.xlu1 %1066  ;;  %v9248_v11 = vld [vmem:[#allocation15_spill] sm:$0xff] }
 0x213   : > { %4561 = vmatmul.mubr.msk.f32.gmra.mxu0 %vm1655_vm12, %v1637_v29  ;;  %v1540_v45 = vsel %vm1518_vm8, %v1507_v58, %v1067_v50  ;;  %v1443_v29 = vsel %vm1421_vm5, %v1412_v49, %v9248_v11  ;;  %v9249_v50 = vld [vmem:[#allocation110_spill] sm:$0xff] }
 0x215   : > { %v1161_v3 = vpop.permute.xlu0 %1160 }
 0x216   : > { %v1163_v13 = vpop.permute.xlu1 %1162  ;;  %v1572_v17 = vsel %vm1551_vm9, %v1539_v32, %v1161_v3  ;;  %v1476_v3 = vsel %vm1452_vm6, %v1443_v29, %v9249_v50  ;;  %v9252_v32 = vld [vmem:[#allocation16_spill] sm:$0xff] }
 0x217   : > { %v1573_v59 = vsel %vm1551_vm9, %v1540_v45, %v1163_v13  ;;  %v1509_v51 = vsel %vm1485_vm7, %v1476_v3, %v9250_v48  ;;  %v1444_v16 = vsel %vm1421_vm5, %v1413_v1, %v9252_v32  ;;  %v9254_v45 = vld [vmem:[#allocation76_spill] sm:$0xff] }
 0x218   : > { %v1414_v10 = vsel %vm1390_vm4, %v9164_v35, %v9254_v45 }
 0x219   : > { %v1251_v39 = vpop.permute.xlu0 %1250 }
 0x21a   : > { %v1253_v42 = vpop.permute.xlu1 %1252  ;;  %v1605_v24 = vsel %vm1584_vm10, %v1572_v17, %v1251_v39  ;;  %v9253_v17 = vld [vmem:[#allocation39_spill] sm:$0xff] }
 0x21b   : > { %v1606_v46 = vsel %vm1584_vm10, %v1573_v59, %v1253_v42  ;;  %v1477_v55 = vsel %vm1452_vm6, %v1444_v16, %v9253_v17 }
 0x21d   : > { %v1341_v26 = vpop.permute.xlu0 %1340 }
 0x21e   : > { %v1638_v15 = vsel %vm1617_vm11, %v1605_v24, %v1341_v26  ;;  %v1069_v19 = vpop.permute.xlu1 %1068 }
 0x21f   : > { %4563 = vmatprep.mubr.msk.f32.mxu0 %vm1655_vm12, %v1638_v15  ;;  %v1541_v28 = vsel %vm1518_vm8, %v1508_v61, %v1069_v19  ;;  %v1415_v61 = vsel %vm1390_vm4, %v9173_v31, %v9257_v44 }
 0x221   : > { %v1343_v4 = vpop.permute.xlu0 %1342 }
 0x222   : > { %v1639_v36 = vsel %vm1617_vm11, %v1606_v46, %v1343_v4  ;;  %v1071_v62 = vpop.permute.xlu1 %1070  ;;  %v9255_v46 = vld [vmem:[#allocation19_spill] sm:$0xff] }
 0x223   : > { %4564 = vmatmul.mubr.msk.f32.gmra.mxu0 %vm1655_vm12, %v1639_v36  ;;  %v1542_v7 = vsel %vm1518_vm8, %v1509_v51, %v1071_v62  ;;  %v1445_v4 = vsel %vm1421_vm5, %v1414_v10, %v9255_v46  ;;  %v9256_v36 = vld [vmem:[#allocation111_spill] sm:$0xff] }
 0x224   : > { %v1478_v62 = vsel %vm1452_vm6, %v1445_v4, %v9256_v36  ;;  %v9261_v51 = vld [vmem:[#allocation23_spill] sm:$0xff]  ;;  %v9266_v4 = vld [vmem:[#allocation80_spill] sm:$0xff]  ;;  %v9267_v36 = vld [vmem:[#allocation81_spill] sm:$0xff] }
 0x225   : > { %v1165_v27 = vpop.permute.xlu0 %1164 }
 0x226   : > { %v1167_v20 = vpop.permute.xlu1 %1166  ;;  %v1574_v30 = vsel %vm1551_vm9, %v1541_v28, %v1165_v27  ;;  %v9258_v28 = vld [vmem:[#allocation20_spill] sm:$0xff] }
 0x227   : > { %v1575_v21 = vsel %vm1551_vm9, %v1542_v7, %v1167_v20  ;;  %v9262_v7 = vld [vmem:[#allocation113_spill] sm:$0xff] }
 0x229   : > { %v1255_v5 = vpop.permute.xlu0 %1254 }
 0x22a   : > { %v972_v52 = vpop.permute.xlu1 %971  ;;  %v1607_v33 = vsel %vm1584_vm10, %v1574_v30, %v1255_v5  ;;  %v1446_v30 = vsel %vm1421_vm5, %v1415_v61, %v9258_v28  ;;  %v9272_v28 = vld [vmem:[#allocation82_spill] sm:$0xff] }
 0x22b   : > { %v1510_v24 = vsel %vm1485_vm7, %v1477_v55, %v972_v52  ;;  %v9264_v55 = vld [vmem:[#allocation24_spill] sm:$0xff] }
 0x22d   : > { %v1257_v54 = vpop.permute.xlu0 %1256 }
 0x22e   : > { %v1345_v8 = vpop.permute.xlu1 %1344  ;;  %v1608_v14 = vsel %vm1584_vm10, %v1575_v21, %v1257_v54 }
 0x22f   : > { %v1640_v60 = vsel %vm1617_vm11, %v1607_v33, %v1345_v8  ;;  %v9259_v33 = vld [vmem:[#allocation112_spill] sm:$0xff] }
 0x230   : > { %4566 = vmatprep.mubr.msk.f32.mxu0 %vm1655_vm12, %v1640_v60  ;;  %v1479_v8 = vsel %vm1452_vm6, %v1446_v30, %v9259_v33  ;;  %v1420_v30 = vsel %vm1390_vm4, %v9201_v53, %v9272_v28 }
 0x231   : > { %v974_v13 = vpop.permute.xlu0 %973 }
 0x232   : > { %v1073_v9 = vpop.permute.xlu1 %1072  ;;  %v1511_v20 = vsel %vm1485_vm7, %v1478_v62, %v974_v13  ;;  %v9260_v13 = vld [vmem:[#allocation78_spill] sm:$0xff]  ;;  %v1419_v62 = vsel %vm1390_vm4, %v9199_v0, %v9267_v36 }
 0x233   : > { %v1543_v26 = vsel %vm1518_vm8, %v1510_v24, %v1073_v9  ;;  %v1416_v31 = vsel %vm1390_vm4, %v9174_v22, %v9260_v13 }
 0x234   : > { %v1447_v9 = vsel %vm1421_vm5, %v1416_v31, %v9261_v51 }
 0x235   : > { %v1347_v12 = vpop.permute.xlu0 %1346  ;;  %v1480_v21 = vsel %vm1452_vm6, %v1447_v9, %v9262_v7 }
 0x236   : > { %v1641_v39 = vsel %vm1617_vm11, %v1608_v14, %v1347_v12  ;;  %v1075_v18 = vpop.permute.xlu1 %1074 }
 0x237   : > { %4567 = vmatmul.mubr.msk.f32.gmra.mxu0 %vm1655_vm12, %v1641_v39  ;;  %v1544_v63 = vsel %vm1518_vm8, %v1511_v20, %v1075_v18  ;;  %v9268_v20 = vld [vmem:[#allocation94_spill] sm:$0xff] }
 0x239   : > { %v1169_v2 = vpop.permute.xlu0 %1168 }
 0x23a   : > { %v1171_v42 = vpop.permute.xlu1 %1170  ;;  %v1576_v43 = vsel %vm1551_vm9, %v1543_v26, %v1169_v2  ;;  %v9265_v26 = vld [vmem:[#allocation114_spill] sm:$0xff] }
 0x23b   : > { %v1577_v41 = vsel %vm1551_vm9, %v1544_v63, %v1171_v42  ;;  %v9269_v63 = vld [vmem:[#allocation95_spill] sm:$0xff] }
 0x23d   : > { %v1259_v47 = vpop.permute.xlu0 %1258 }
 0x23e   : > { %v976_v23 = vpop.permute.xlu1 %975  ;;  %v1609_v15 = vsel %vm1584_vm10, %v1576_v43, %v1259_v47  ;;  %v9263_v47 = vld [vmem:[#allocation79_spill] sm:$0xff] }
 0x23f   : > { %v1512_v49 = vsel %vm1485_vm7, %v1479_v8, %v976_v23  ;;  %v1417_v17 = vsel %vm1390_vm4, %v9186_v37, %v9263_v47  ;;  %v1418_v37 = vsel %vm1390_vm4, %v9188_v40, %v9266_v4 }
 0x240   : > { %v1448_v23 = vsel %vm1421_vm5, %v1417_v17, %v9264_v55 }
 0x241   : > { %v1261_v58 = vpop.permute.xlu0 %1260  ;;  %v1481_v43 = vsel %vm1452_vm6, %v1448_v23, %v9265_v26 }
 0x242   : > { %v1349_v19 = vpop.permute.xlu1 %1348  ;;  %v1610_v35 = vsel %vm1584_vm10, %v1577_v41, %v1261_v58  ;;  %v1450_v41 = vsel %vm1421_vm5, %v1419_v62, %v9269_v63 }
 0x243   : > { %v1642_v59 = vsel %vm1617_vm11, %v1609_v15, %v1349_v19 }
 0x244   : > { %4569 = vmatprep.mubr.msk.f32.mxu0 %vm1655_vm12, %v1642_v59 }
 0x245   : > { %v978_v27 = vpop.permute.xlu0 %977 }
 0x246   : > { %v1077_v56 = vpop.permute.xlu1 %1076  ;;  %v1513_v12 = vsel %vm1485_vm7, %v1480_v21, %v978_v27 }
 0x247   : > { %v1545_v60 = vsel %vm1518_vm8, %v1512_v49, %v1077_v56  ;;  %v1449_v56 = vsel %vm1421_vm5, %v1418_v37, %v9268_v20 }
 0x249   : > { %v1351_v34 = vpop.permute.xlu0 %1350 }
 0x24a   : > { %v1643_v5 = vsel %vm1617_vm11, %v1610_v35, %v1351_v34  ;;  %v1079_v57 = vpop.permute.xlu1 %1078  ;;  %v9270_v35 = vld [vmem:[#allocation115_spill] sm:$0xff] }
 0x24b   : > { %4570 = vmatmul.mubr.msk.f32.gmra.mxu0 %vm1655_vm12, %v1643_v5  ;;  %v1546_v18 = vsel %vm1518_vm8, %v1513_v12, %v1079_v57  ;;  %v1482_v34 = vsel %vm1452_vm6, %v1449_v56, %v9270_v35  ;;  %v9271_v5 = vld [vmem:[#allocation116_spill] sm:$0xff] }
 0x24c   : > { %v1483_v40 = vsel %vm1452_vm6, %v1450_v41, %v9271_v5 }
 0x24d   : > { %v1173_v6 = vpop.permute.xlu0 %1172 }
 0x24e   : > { %v6303_v52 = vpop.permute.xlu1 %1174  ;;  %v1578_v11 = vsel %vm1551_vm9, %v1545_v60, %v1173_v6 }
 0x24f   : > { %v1579_v2 = vsel %vm1551_vm9, %v1546_v18, %v6303_v52 }
 0x251   : > { %v1263_v54 = vpop.permute.xlu0 %1262 }
 0x252   : > { %v980_v38 = vpop.permute.xlu1 %979  ;;  %v1611_v50 = vsel %vm1584_vm10, %v1578_v11, %v1263_v54 }
 0x253   : > { %v1514_v15 = vsel %vm1485_vm7, %v1481_v43, %v980_v38  ;;  %v9273_v38 = vld [vmem:[#allocation96_spill] sm:$0xff] }
 0x254   : > { %v1451_v49 = vsel %vm1421_vm5, %v1420_v30, %v9273_v38 }
 0x255   : > { %v1265_v29 = vpop.permute.xlu0 %1264 }
 0x256   : > { %v1353_v3 = vpop.permute.xlu1 %1352  ;;  %v1612_v22 = vsel %vm1584_vm10, %v1579_v2, %v1265_v29 }
 0x257   : > { %v1644_v48 = vsel %vm1617_vm11, %v1611_v50, %v1353_v3  ;;  %v9274_v50 = vld [vmem:[#allocation117_spill] sm:$0xff] }
 0x258   : > { %4572 = vmatprep.mubr.msk.f32.mxu0 %vm1655_vm12, %v1644_v48  ;;  %v1484_v13 = vsel %vm1452_vm6, %v1451_v49, %v9274_v50 }
 0x259   : > { %v982_v14 = vpop.permute.xlu0 %981 }
 0x25a   : > { %v1081_v39 = vpop.permute.xlu1 %1080  ;;  %v1515_v44 = vsel %vm1485_vm7, %v1482_v34, %v982_v14 }
 0x25b   : > { %v1547_v19 = vsel %vm1518_vm8, %v1514_v15, %v1081_v39  ;;  %v6385_v39 = vpop.f32.mrf.mxu0 }
 0x25d   : > { %v1355_v42 = vpop.permute.xlu0 %1354  ;;  %v6387_v18 = vpop.f32.mrf.mxu0 }
 0x25e   : > { %v1083_v25 = vpop.permute.xlu1 %1082  ;;  %v1645_v1 = vsel %vm1617_vm11, %v1612_v22, %v1355_v42 }
 0x25f   : > { %4573 = vmatmul.mubr.msk.f32.gmra.mxu0 %vm1655_vm12, %v1645_v1  ;;  %v1548_v33 = vsel %vm1518_vm8, %v1515_v44, %v1083_v25  ;;  %v6389_v2 = vpop.f32.mrf.mxu0  ;;  %v1982_v1 = vsel %vm1390_vm4, %v6385_v39, 0.0 }
 0x261   : > { %v1177_v32 = vpop.permute.xlu0 %1176  ;;  %v6391_v22 = vpop.f32.mrf.mxu0 }
 0x262   : > { %v1179_v16 = vpop.permute.xlu1 %1178  ;;  %v1580_v45 = vsel %vm1551_vm9, %v1547_v19, %v1177_v32  ;;  %v2053_v25 = vmul.f32 %v6391_v22, %v6391_v22 }
 0x263   : > { %v1581_v60 = vsel %vm1551_vm9, %v1548_v33, %v1179_v16  ;;  %v1984_v16 = vsel %vm1390_vm4, %v6391_v22, 0.0 }
 0x264   : > { %v2086_v23 = vsel %vm1390_vm4, %v2053_v25, 0.0 }
 0x265   : > { %v1267_v24 = vpop.permute.xlu0 %1266 }
 0x266   : > { %v984_v58 = vpop.permute.xlu1 %983  ;;  %v1613_v59 = vsel %vm1584_vm10, %v1580_v45, %v1267_v24  ;;  %v1986_v45 = vsel %vm1390_vm4, %v6389_v2, 0.0 }
 0x267   : > { %v1516_v0 = vsel %vm1485_vm7, %v1483_v40, %v984_v58  ;;  %v2054_v58 = vmul.f32 %v6389_v2, %v6389_v2 }
 0x269   : > { %v1269_v10 = vpop.permute.xlu0 %1268  ;;  %v2088_v4 = vsel %vm1390_vm4, %v2054_v58, 0.0 }
 0x26a   : > { %v1357_v46 = vpop.permute.xlu1 %1356  ;;  %v1614_v31 = vsel %vm1584_vm10, %v1581_v60, %v1269_v10 }
 0x26b   : > { %v1646_v27 = vsel %vm1617_vm11, %v1613_v59, %v1357_v46 }
 0x26c   : > { %4575 = vmatprep.mubr.msk.f32.mxu0 %vm1655_vm12, %v1646_v27 }
 0x26d   : > { %v986_v57 = vpop.permute.xlu0 %985 }
 0x26e   : > { %v1085_v61 = vpop.permute.xlu1 %1084  ;;  %v1517_v53 = vsel %vm1485_vm7, %v1484_v13, %v986_v57 }
 0x26f   : > { %v1549_v8 = vsel %vm1518_vm8, %v1516_v0, %v1085_v61 }
 0x270   : > { %v1582_v11 = vsel %vm1551_vm9, %v1549_v8, %v1173_v6 }
 0x271   : > { %v1359_v48 = vpop.permute.xlu0 %1358  ;;  %v1615_v51 = vsel %vm1584_vm10, %v1582_v11, %v1263_v54 }
 0x272   : > { %v1647_v9 = vsel %vm1617_vm11, %v1614_v31, %v1359_v48  ;;  %v1087_v7 = vpop.permute.xlu1 %1086  ;;  %v1648_v14 = vsel %vm1617_vm11, %v1615_v51, %v1353_v3  ;;  %v2051_v3 = vmul.f32 %v6387_v18, %v6387_v18 }
 0x273   : > { %v1550_v21 = vsel %vm1518_vm8, %v1517_v53, %v1087_v7  ;;  %4576 = vmatmul.mubr.msk.f32.gmra.mxu0 %vm1655_vm12, %v1647_v9 }
 0x274   : > { %v1583_v6 = vsel %vm1551_vm9, %v1550_v21, %v6303_v52  ;;  %4578 = vmatprep.mubr.msk.f32.mxu0 %vm1655_vm12, %v1648_v14  ;;  %v6395_v52 = vpop.f32.mrf.mxu0  ;;  %v2083_v32 = vsel %vm1390_vm4, %v2051_v3, 0.0 }
 0x275   : > { %v1616_v12 = vsel %vm1584_vm10, %v1583_v6, %v1265_v29  ;;  %v2052_v29 = vmul.f32 %v6385_v39, %v6385_v39  ;;  %v2056_v20 = vmul.f32 %v6395_v52, %v6395_v52  ;;  %v1990_v41 = vsel %vm1390_vm4, %v6395_v52, 0.0 }
 0x276   : > { %v1649_v54 = vsel %vm1617_vm11, %v1616_v12, %v1355_v42  ;;  %v1981_v42 = vsel %vm1390_vm4, %v6387_v18, 0.0  ;;  %v6408_v17 = vpop.f32.mrf.mxu0 }
 0x277   : > { %4579 = vmatmul.mubr.msk.f32.gmra.mxu0 %vm1655_vm12, %v1649_v54  ;;  %v1983_v47 = vadd.f32 %v1982_v1, %v1981_v42  ;;  %v2084_v55 = vsel %vm1390_vm4, %v2052_v29, 0.0  ;;  %v2055_v15 = vmul.f32 %v6408_v17, %v6408_v17  ;;  %v1988_v10 = vsel %vm1390_vm4, %v6408_v17, 0.0 }
 0x278   : > { %v2085_v24 = vadd.f32 %v2084_v55, %v2083_v32  ;;  %v6412_v43 = vpop.f32.mrf.mxu0  ;;  %v2092_v40 = vsel %vm1390_vm4, %v2056_v20, 0.0 }
 0x279   : > { %v1985_v26 = vadd.f32 %v1984_v16, %v1983_v47  ;;  %v2090_v37 = vsel %vm1390_vm4, %v2055_v15, 0.0  ;;  %v2058_v28 = vmul.f32 %v6412_v43, %v6412_v43  ;;  %v1994_v8 = vsel %vm1390_vm4, %v6412_v43, 0.0 }
 0x27a   : > { %v2087_v19 = vadd.f32 %v2086_v23, %v2085_v24  ;;  %v6422_v46 = vpop.f32.mrf.mxu0 }
 0x27b   : > { %v1987_v59 = vadd.f32 %v1986_v45, %v1985_v26  ;;  %v2057_v56 = vmul.f32 %v6422_v46, %v6422_v46  ;;  %v1992_v35 = vsel %vm1390_vm4, %v6422_v46, 0.0  ;;  %v2096_v11 = vsel %vm1390_vm4, %v2058_v28, 0.0 }
 0x27c   : > { %v2089_v62 = vadd.f32 %v2088_v4, %v2087_v19 }
 0x27d   : > { %v1989_v36 = vadd.f32 %v1988_v10, %v1987_v59  ;;  %v2094_v57 = vsel %vm1390_vm4, %v2057_v56, 0.0 }
 0x27e   : > { %v2091_v63 = vadd.f32 %v2090_v37, %v2089_v62 }
 0x27f   : > { %v1991_v34 = vadd.f32 %v1990_v41, %v1989_v36 }
 0x280   : > { %v2093_v0 = vadd.f32 %v2092_v40, %v2091_v63 }
 0x281   : > { %v1993_v44 = vadd.f32 %v1992_v35, %v1991_v34 }
 0x282   : > { %v2095_v33 = vadd.f32 %v2094_v57, %v2093_v0 }
 0x283   : > { %v6426_v27 = vpop.f32.mrf.mxu0  ;;  %v1995_v49 = vadd.f32 %v1994_v8, %v1993_v44 }
 0x284   : > { %v2097_v31 = vadd.f32 %v2096_v11, %v2095_v33  ;;  %v2060_v51 = vmul.f32 %v6426_v27, %v6426_v27  ;;  %v1998_v7 = vsel %vm1390_vm4, %v6426_v27, 0.0 }
 0x285   : > { %v6436_v5 = vpop.f32.mrf.mxu0 }
 0x286   : > { %v2059_v30 = vmul.f32 %v6436_v5, %v6436_v5  ;;  %v1996_v38 = vsel %vm1390_vm4, %v6436_v5, 0.0  ;;  %v2100_v12 = vsel %vm1390_vm4, %v2060_v51, 0.0 }
 0x287   : > { %v1997_v13 = vadd.f32 %v1996_v38, %v1995_v49 }
 0x288   : > { %v2098_v50 = vsel %vm1390_vm4, %v2059_v30, 0.0 }
 0x289   : > { %v2099_v9 = vadd.f32 %v2098_v50, %v2097_v31  ;;  %v1999_v14 = vadd.f32 %v1998_v7, %v1997_v13 }
 0x28b   : > { %v2101_v29 = vadd.f32 %v2100_v12, %v2099_v9 }
 0x293   : > { %v6440_v61 = vpop.f32.mrf.mxu0 }
 0x294   : > { %v2062_v25 = vmul.f32 %v6440_v61, %v6440_v61  ;;  %v2002_v16 = vsel %vm1390_vm4, %v6440_v61, 0.0 }
 0x295   : > { %v6450_v60 = vpop.f32.mrf.mxu0 }
 0x296   : > { %v2061_v53 = vmul.f32 %v6450_v60, %v6450_v60  ;;  %v2000_v21 = vsel %vm1390_vm4, %v6450_v60, 0.0  ;;  %v2104_v24 = vsel %vm1390_vm4, %v2062_v25, 0.0 }
 0x297   : > { %v2001_v3 = vadd.f32 %v2000_v21, %v1999_v14 }
 0x298   : > { %v2102_v54 = vsel %vm1390_vm4, %v2061_v53, 0.0 }
 0x299   : > { %v2103_v32 = vadd.f32 %v2102_v54, %v2101_v29  ;;  %v2003_v55 = vadd.f32 %v2002_v16, %v2001_v3 }
 0x29b   : > { %v2105_v15 = vadd.f32 %v2104_v24, %v2103_v32 }
 0x2a3   : > { %v6454_v48 = vpop.f32.mrf.mxu0 }
 0x2a4   : > { %v2064_v45 = vmul.f32 %v6454_v48, %v6454_v48  ;;  %v2006_v4 = vsel %vm1390_vm4, %v6454_v48, 0.0 }
 0x2a5   : > { %v6464_v6 = vpop.f32.mrf.mxu0 }
 0x2a6   : > { %v2063_v1 = vmul.f32 %v6464_v6, %v6464_v6  ;;  %v2004_v47 = vsel %vm1390_vm4, %v6464_v6, 0.0  ;;  %v2108_v20 = vsel %vm1390_vm4, %v2064_v45, 0.0 }
 0x2a7   : > { %v2005_v58 = vadd.f32 %v2004_v47, %v2003_v55 }
 0x2a8   : > { %v2106_v26 = vsel %vm1390_vm4, %v2063_v1, 0.0 }
 0x2a9   : > { %v2107_v59 = vadd.f32 %v2106_v26, %v2105_v15  ;;  %v2007_v36 = vadd.f32 %v2006_v4, %v2005_v58 }
 0x2ab   : > { %v2109_v41 = vadd.f32 %v2108_v20, %v2107_v59 }
 0x2b3   : > { %v6468_v42 = vpop.f32.mrf.mxu0 }
 0x2b4   : > { %v2066_v34 = vmul.f32 %v6468_v42, %v6468_v42  ;;  %v2010_v44 = vsel %vm1390_vm4, %v6468_v42, 0.0 }
 0x2b5   : > { %v6478_v23 = vpop.f32.mrf.mxu0 }
 0x2b6   : > { %v2065_v10 = vmul.f32 %v6478_v23, %v6478_v23  ;;  %v2008_v37 = vsel %vm1390_vm4, %v6478_v23, 0.0  ;;  %v2112_v33 = vsel %vm1390_vm4, %v2066_v34, 0.0 }
 0x2b7   : > { %v2009_v63 = vadd.f32 %v2008_v37, %v2007_v36 }
 0x2b8   : > { %v2110_v56 = vsel %vm1390_vm4, %v2065_v10, 0.0 }
 0x2b9   : > { %v2111_v57 = vadd.f32 %v2110_v56, %v2109_v41  ;;  %v2011_v28 = vadd.f32 %v2010_v44, %v2009_v63 }
 0x2bb   : > { %v2113_v49 = vadd.f32 %v2112_v33, %v2111_v57 }
 0x2c3   : > { %v6482_v19 = vpop.f32.mrf.mxu0 }
 0x2c4   : > { %v2068_v50 = vmul.f32 %v6482_v19, %v6482_v19  ;;  %v2014_v51 = vsel %vm1390_vm4, %v6482_v19, 0.0 }
 0x2c5   : > { %v6492_v62 = vpop.f32.mrf.mxu0 }
 0x2c6   : > { %v2067_v40 = vmul.f32 %v6492_v62, %v6492_v62  ;;  %v2012_v0 = vsel %vm1390_vm4, %v6492_v62, 0.0  ;;  %v2116_v21 = vsel %vm1390_vm4, %v2068_v50, 0.0 }
 0x2c7   : > { %v2013_v38 = vadd.f32 %v2012_v0, %v2011_v28 }
 0x2c8   : > { %v2114_v8 = vsel %vm1390_vm4, %v2067_v40, 0.0 }
 0x2c9   : > { %v2115_v31 = vadd.f32 %v2114_v8, %v2113_v49  ;;  %v2015_v9 = vadd.f32 %v2014_v51, %v2013_v38 }
 0x2cb   : > { %v2117_v54 = vadd.f32 %v2116_v21, %v2115_v31 }
 0x2d3   : > { %v6496_v35 = vpop.f32.mrf.mxu0 }
 0x2d4   : > { %v2070_v29 = vmul.f32 %v6496_v35, %v6496_v35  ;;  %v2018_v32 = vsel %vm1390_vm4, %v6496_v35, 0.0 }
 0x2d5   : > { %v6506_v30 = vpop.f32.mrf.mxu0 }
 0x2d6   : > { %v2069_v13 = vmul.f32 %v6506_v30, %v6506_v30  ;;  %v2016_v53 = vsel %vm1390_vm4, %v6506_v30, 0.0  ;;  %v2120_v24 = vsel %vm1390_vm4, %v2070_v29, 0.0 }
 0x2d7   : > { %v2017_v12 = vadd.f32 %v2016_v53, %v2015_v9 }
 0x2d8   : > { %v2118_v14 = vsel %vm1390_vm4, %v2069_v13, 0.0 }
 0x2d9   : > { %v2119_v1 = vadd.f32 %v2118_v14, %v2117_v54  ;;  %v2019_v47 = vadd.f32 %v2018_v32, %v2017_v12 }
 0x2db   : > { %v2121_v15 = vadd.f32 %v2120_v24, %v2119_v1 }
 0x2e3   : > { %v6510_v11 = vpop.f32.mrf.mxu0 }
 0x2e4   : > { %v2072_v10 = vmul.f32 %v6510_v11, %v6510_v11  ;;  %v2022_v37 = vsel %vm1390_vm4, %v6510_v11, 0.0 }
 0x2e5   : > { %v6520_v7 = vpop.f32.mrf.mxu0 }
 0x2e6   : > { %v2071_v25 = vmul.f32 %v6520_v7, %v6520_v7  ;;  %v2020_v16 = vsel %vm1390_vm4, %v6520_v7, 0.0  ;;  %v2124_v63 = vsel %vm1390_vm4, %v2072_v10, 0.0 }
 0x2e7   : > { %v2021_v58 = vadd.f32 %v2020_v16, %v2019_v47 }
 0x2e8   : > { %v2122_v26 = vsel %vm1390_vm4, %v2071_v25, 0.0 }
 0x2e9   : > { %v2123_v4 = vadd.f32 %v2122_v26, %v2121_v15  ;;  %v2023_v20 = vadd.f32 %v2022_v37, %v2021_v58 }
 0x2eb   : > { %v2125_v40 = vadd.f32 %v2124_v63, %v2123_v4 }
 0x2f7   : > { %v6524_v3 = vpop.f32.mrf.mxu0 }
 0x2f8   : > { %v2074_v44 = vmul.f32 %v6524_v3, %v6524_v3  ;;  %v2026_v33 = vsel %vm1390_vm4, %v6524_v3, 0.0 }
 0x2f9   : > { %v6534_v55 = vpop.f32.mrf.mxu0 }
 0x2fa   : > { %v2073_v59 = vmul.f32 %v6534_v55, %v6534_v55  ;;  %v2024_v36 = vsel %vm1390_vm4, %v6534_v55, 0.0  ;;  %v2128_v50 = vsel %vm1390_vm4, %v2074_v44, 0.0 }
 0x2fb   : > { %v2025_v34 = vadd.f32 %v2024_v36, %v2023_v20 }
 0x2fc   : > { %v2126_v41 = vsel %vm1390_vm4, %v2073_v59, 0.0 }
 0x2fd   : > { %v2127_v28 = vadd.f32 %v2126_v41, %v2125_v40  ;;  %v2027_v38 = vadd.f32 %v2026_v33, %v2025_v34 }
 0x2ff   : > { %v2129_v51 = vadd.f32 %v2128_v50, %v2127_v28 }
 0x30b   : > { %v6538_v45 = vpop.f32.mrf.mxu0 }
 0x30c   : > { %v2076_v53 = vmul.f32 %v6538_v45, %v6538_v45  ;;  %v2030_v14 = vsel %vm1390_vm4, %v6538_v45, 0.0 }
 0x30d   : > { %v6548_v56 = vpop.f32.mrf.mxu0 }
 0x30e   : > { %v2075_v0 = vmul.f32 %v6548_v56, %v6548_v56  ;;  %v2028_v8 = vsel %vm1390_vm4, %v6548_v56, 0.0  ;;  %v2132_v29 = vsel %vm1390_vm4, %v2076_v53, 0.0 }
 0x30f   : > { %v2029_v31 = vadd.f32 %v2028_v8, %v2027_v38 }
 0x310   : > { %v2130_v13 = vsel %vm1390_vm4, %v2075_v0, 0.0 }
 0x311   : > { %v2131_v21 = vadd.f32 %v2130_v13, %v2129_v51  ;;  %v2031_v54 = vadd.f32 %v2030_v14, %v2029_v31 }
 0x313   : > { %v2133_v32 = vadd.f32 %v2132_v29, %v2131_v21 }
 0x31f   : > { %v6552_v57 = vpop.f32.mrf.mxu0 }
 0x320   : > { %v2078_v16 = vmul.f32 %v6552_v57, %v6552_v57  ;;  %v2034_v26 = vsel %vm1390_vm4, %v6552_v57, 0.0 }
 0x321   : > { %v6562_v49 = vpop.f32.mrf.mxu0 }
 0x322   : > { %v2077_v9 = vmul.f32 %v6562_v49, %v6562_v49  ;;  %v2032_v12 = vsel %vm1390_vm4, %v6562_v49, 0.0  ;;  %v2136_v10 = vsel %vm1390_vm4, %v2078_v16, 0.0 }
 0x323   : > { %v2033_v1 = vadd.f32 %v2032_v12, %v2031_v54 }
 0x324   : > { %v2134_v25 = vsel %vm1390_vm4, %v2077_v9, 0.0 }
 0x325   : > { %v2135_v47 = vadd.f32 %v2134_v25, %v2133_v32  ;;  %v2035_v15 = vadd.f32 %v2034_v26, %v2033_v1 }
 0x327   : > { %v2137_v20 = vadd.f32 %v2136_v10, %v2135_v47 }
 0x333   : > { %v6578_v24 = vpop.f32.mrf.mxu0 }
 0x334   : > { %v2080_v59 = vmul.f32 %v6578_v24, %v6578_v24  ;;  %v2038_v41 = vsel %vm1390_vm4, %v6578_v24, 0.0 }
 0x335   : > { %v6582_v58 = vpop.f32.mrf.mxu0 }
 0x336   : > { %v2036_v4 = vsel %vm1390_vm4, %v6582_v58, 0.0  ;;  %v2079_v37 = vmul.f32 %v6582_v58, %v6582_v58  ;;  %v2140_v28 = vsel %vm1390_vm4, %v2080_v59, 0.0 }
 0x337   : > { %v2037_v36 = vadd.f32 %v2036_v4, %v2035_v15  ;;  %v4580_v63 = vpop.f32.mrf.mxu0 }
 0x338   : > { %v2138_v34 = vsel %vm1390_vm4, %v2079_v37, 0.0  ;;  %v2082_v33 = vmul.f32 %v4580_v63, %v4580_v63  ;;  %v2042_v31 = vsel %vm1390_vm4, %v4580_v63, 0.0 }
 0x339   : > { %v2139_v40 = vadd.f32 %v2138_v34, %v2137_v20  ;;  %v1972_v44 = vpop.f32.mrf.mxu0  ;;  %v2039_v0 = vadd.f32 %v2038_v41, %v2037_v36 }
 0x33a   : > { %v2040_v8 = vsel %vm1390_vm4, %v1972_v44, 0.0  ;;  %v2081_v38 = vmul.f32 %v1972_v44, %v1972_v44  ;;  %v2144_v21 = vsel %vm1390_vm4, %v2082_v33, 0.0 }
 0x33b   : > { %v2041_v50 = vadd.f32 %v2040_v8, %v2039_v0  ;;  %v2141_v13 = vadd.f32 %v2140_v28, %v2139_v40  ;;  %v2161_v40 = vlaneseq  ;;  %v230_v28 = vld [vmem:[%s8743_s3] sm:$0x1] }
 0x33c   : > { %v2142_v51 = vsel %vm1390_vm4, %v2081_v38, 0.0 }
 0x33d   : > { %v2043_v53 = vadd.f32 %v2042_v31, %v2041_v50  ;;  %v2143_v9 = vadd.f32 %v2142_v51, %v2141_v13  ;;  %v2162_v0 = vshrl.u32 %v2161_v40, 7  ;;  %v231_v50 = vld [vmem:[%s8743_s3 + $0x1] sm:$0x1] }
 0x33f   : > { %v2044_v14 = vrot.slane %v2043_v53, 4  ;;  %v2145_v12 = vadd.f32 %v2144_v21, %v2143_v9  ;;  %v6602_v33 = vsub.s32 0, %v2162_v0 }
 0x341   : > { %v2045_v54 = vadd.f32 %v2044_v14, %v2043_v53  ;;  %v2146_v29 = vrot.slane %v2145_v12, 4  ;;  %9275 = vst [vmem:[#allocation43_spill] sm:$0xff] %v6602_v33 }
 0x343   : > { %v2046_v25 = vrot.slane %v2045_v54, 2  ;;  %v2147_v1 = vadd.f32 %v2146_v29, %v2145_v12 }
 0x345   : > { %v2047_v32 = vadd.f32 %v2046_v25, %v2045_v54  ;;  %v2148_v16 = vrot.slane %v2147_v1, 2 }
 0x347   : > { %v2048_v47 = vrot.slane %v2047_v32, 1  ;;  %v2149_v26 = vadd.f32 %v2148_v16, %v2147_v1 }
 0x349   : > { %v2049_v15 = vadd.f32 %v2048_v47, %v2047_v32  ;;  %v2150_v10 = vrot.slane %v2149_v26, 1 }
 0x34b   : > { %v2050_v59 = vmul.f32 0.00390625, %v2049_v15  ;;  %v2151_v4 = vadd.f32 %v2150_v10, %v2149_v26 }
 0x34d   : > { %v2152_v37 = vmul.f32 0.00390625, %v2151_v4  ;;  %v2153_v36 = vmul.f32 %v2050_v59, %v2050_v59 }
 0x34f   : > { %v2154_v20 = vsub.f32 %v2152_v37, %v2153_v36 }
 0x351   : > { %v2155_v41 = vmax.f32 %v2154_v20, 0.0 }
 0x353   : > { %v2156_v34 = vadd.f32 1e-05, %v2155_v41 }
 0x355   : > { %4655 = vrsqrt.f32 %v2156_v34 }
 0x362   : > { %v4656_v8 = vpop.eup %4655 }
 0x363   : > { %v2158_v38 = vmul.f32 %v4656_v8, %v230_v28 }
 0x365   : > { %v2159_v13 = vmul.f32 %v2158_v38, %v2050_v59  ;;  %v6608_v31 = vrot.slane %v2158_v38, %v6602_v33 }
 0x367   : > { %v2160_v51 = vsub.f32 %v231_v50, %v2159_v13  ;;  %v2195_v53 = vmul.f32 %v6608_v31, %v1972_v44  ;;  %v2196_v9 = vmul.f32 %v4580_v63, %v6608_v31  ;;  %v2167_v44 = vmul.f32 %v6608_v31, %v6391_v22 }
 0x368   : > { %v2168_v1 = vmul.f32 %v6389_v2, %v6608_v31  ;;  %v2193_v32 = vmul.f32 %v6608_v31, %v6582_v58  ;;  %v2194_v47 = vmul.f32 %v6578_v24, %v6608_v31  ;;  %v2165_v22 = vmul.f32 %v6608_v31, %v6387_v18 }
 0x369   : > { %v6613_v21 = vrot.slane %v2160_v51, %v6602_v33  ;;  %v2166_v2 = vmul.f32 %v6385_v39, %v6608_v31  ;;  %v2185_v59 = vmul.f32 %v6608_v31, %v6520_v7  ;;  %v2186_v4 = vmul.f32 %v6510_v11, %v6608_v31 }
 0x36a   : > { %v2187_v24 = vmul.f32 %v6608_v31, %v6534_v55  ;;  %v2188_v36 = vmul.f32 %v6524_v3, %v6608_v31  ;;  %v2189_v18 = vmul.f32 %v6608_v31, %v6548_v56  ;;  %v2190_v39 = vmul.f32 %v6538_v45, %v6608_v31 }
 0x36b   : > { %v6616_v14 = vadd.f32 %v6613_v21, %v2195_v53  ;;  %v6619_v12 = vadd.f32 %v6613_v21, %v2196_v9  ;;  %v2203_v26 = vadd.f32 %v6613_v21, %v2167_v44  ;;  %v2204_v15 = vadd.f32 %v6613_v21, %v2168_v1 }
 0x36c   : > { %v2191_v7 = vmul.f32 %v6608_v31, %v6562_v49  ;;  %v2192_v11 = vmul.f32 %v6552_v57, %v6608_v31  ;;  %v6667_v55 = vadd.f32 %v6613_v21, %v2165_v22  ;;  %v6676_v56 = vadd.f32 %v6613_v21, %v2185_v59 }
 0x36d   : > { %v8860_v54 = vmax.f32 %v6616_v14, 0.0  ;;  %v8859_v29 = vmax.f32 %v6619_v12, 0.0  ;;  %v2235_v10 = vmax.f32 %v2203_v26, 0.0  ;;  %v2236_v58 = vmax.f32 %v2204_v15, 0.0 }
 0x36e   : > { %v6679_v45 = vadd.f32 %v6613_v21, %v2186_v4  ;;  %v6684_v57 = vadd.f32 %v6613_v21, %v2187_v24  ;;  %v6687_v0 = vadd.f32 %v6613_v21, %v2188_v36  ;;  %v6690_v28 = vadd.f32 %v6613_v21, %v2189_v18 }
 0x36f   : > { %v6625_v25 = vrot.slane %v8860_v54, 7  ;;  %v6629_v63 = vrot.slane %v8859_v29, 7  ;;  %v2329_v37 = vrot.slane %v2235_v10, 7  ;;  %v2330_v20 = vrot.slane %v2236_v58, 7 }
 0x370   : > { %v2424_v41 = vrot.slane %v2236_v58, 5  ;;  %v6693_v8 = vadd.f32 %v6613_v21, %v2190_v39  ;;  %v6696_v38 = vadd.f32 %v6613_v21, %v2191_v7  ;;  %v6699_v50 = vadd.f32 %v6613_v21, %v2192_v11 }
 0x371   : > { %v6640_v16 = vsel %vm298_vm0, %v6625_v25, %v6629_v63  ;;  %v6670_v34 = vsel %vm298_vm0, %v2329_v37, %v2330_v20  ;;  %v6705_v51 = vadd.f32 %v6613_v21, %v2193_v32  ;;  %v6708_v53 = vadd.f32 %v6613_v21, %v2194_v47 }
 0x372   : > { %9276 = vst [vmem:[#allocation44_spill] sm:$0xff] %v6640_v16  ;;  %9277 = vst [vmem:[#allocation2_spill] sm:$0xff] %v6670_v34  ;;  %v6673_v3 = vsel %vm298_vm0, %v2330_v20, %v2424_v41  ;;  %v2519_v49 = vrot.slane %v6670_v34, 1  ;;  %v2281_v9 = vrot.slane %v2235_v10, 1  ;;  %v2202_v44 = vadd.f32 %v6613_v21, %v2166_v2 }
 0x373   : > { %9278 = vst [vmem:[#allocation45_spill] sm:$0xff] %v6673_v3  ;;  %v2521_v40 = vrot.slane %v6673_v3, 1  ;;  %v2233_v15 = vmax.f32 %v6667_v55, 0.0  ;;  %v2169_v47 = vmul.f32 %v6608_v31, %v6408_v17  ;;  %v2170_v2 = vmul.f32 %v6395_v52, %v6608_v31 }
 0x374   : > { %v6714_v1 = vsel %vm298_vm0, %v2281_v9, %v2329_v37  ;;  %v2234_v32 = vmax.f32 %v2202_v44, 0.0  ;;  %v2171_v58 = vmul.f32 %v6608_v31, %v6422_v46  ;;  %v2172_v24 = vmul.f32 %v6412_v43, %v6608_v31 }
 0x375   : > { %v6702_v13 = vsel %vm488_vm1, %v2519_v49, %v2521_v40  ;;  %9280 = vst [vmem:[#allocation46_spill] sm:$0xff] %v6714_v1  ;;  %v2518_v26 = vrot.slane %v6714_v1, 1  ;;  %v6725_v10 = vrot.slane %v2233_v15, 7  ;;  %v2173_v37 = vmul.f32 %v6608_v31, %v6436_v5 }
 0x376   : > { %9279 = vst [vmem:[#allocation86_spill] sm:$0xff] %v6702_v13  ;;  %2595 = vrot.lane.b32.xlu1 %v6702_v13, %s4699_s21  ;;  %v2333_v59 = vrot.slane %v2234_v32, 7  ;;  %v2425_v4 = vrot.slane %v2234_v32, 5  ;;  %v2174_v36 = vmul.f32 %v6426_v27, %v6608_v31  ;;  %v2175_v17 = vmul.f32 %v6608_v31, %v6450_v60 }
 0x377   : > { %v6719_v22 = vsel %vm488_vm1, %v2518_v26, %v2519_v49  ;;  %v2176_v52 = vmul.f32 %v6440_v61, %v6608_v31  ;;  %v2177_v46 = vmul.f32 %v6608_v31, %v6464_v6  ;;  %v2178_v5 = vmul.f32 %v6454_v48, %v6608_v31 }
 0x378   : > { %9281 = vst [vmem:[#allocation18_spill] sm:$0xff] %v6719_v22  ;;  %2593 = vrot.lane.b32.xlu0 %v6719_v22, %s4699_s21  ;;  %v6745_v18 = vsel %vm298_vm0, %v6725_v10, %v2333_v59  ;;  %v6748_v43 = vsel %vm298_vm0, %v2333_v59, %v2425_v4  ;;  %v2179_v27 = vmul.f32 %v6608_v31, %v6478_v23  ;;  %v8868_v44 = vmax.f32 %v6676_v56, 0.0 }
 0x379   : > { %9282 = vst [vmem:[#allocation17_spill] sm:$0xff] %v6745_v18  ;;  %9283 = vst [vmem:[#allocation25_spill] sm:$0xff] %v6748_v43  ;;  %v2524_v60 = vrot.slane %v6745_v18, 1  ;;  %v2526_v61 = vrot.slane %v6748_v43, 1  ;;  %v2180_v6 = vmul.f32 %v6468_v42, %v6608_v31  ;;  %v6760_v20 = vmul.f32 %v6608_v31, %v6492_v62 }
 0x37a   : > { %v6764_v41 = vmul.f32 %v6482_v19, %v6608_v31  ;;  %v6768_v48 = vmul.f32 %v6608_v31, %v6506_v30  ;;  %v6772_v23 = vmul.f32 %v6496_v35, %v6608_v31  ;;  %v2205_v39 = vadd.f32 %v6613_v21, %v2169_v47 }
 0x37b   : > { %v2206_v42 = vadd.f32 %v6613_v21, %v2170_v2  ;;  %v6777_v7 = vsel %vm488_vm1, %v2524_v60, %v2526_v61  ;;  %v2207_v62 = vadd.f32 %v6613_v21, %v2171_v58  ;;  %v2208_v19 = vadd.f32 %v6613_v21, %v2172_v24 }
 0x37c   : > { %9284 = vst [vmem:[#allocation47_spill] sm:$0xff] %v6777_v7  ;;  %v2209_v11 = vadd.f32 %v6613_v21, %v2173_v37  ;;  %v6783_v30 = vadd.f32 %v6613_v21, %v2174_v36  ;;  %2599 = vrot.lane.b32.xlu1 %v6777_v7, %s4699_s21  ;;  %v6788_v35 = vadd.f32 %v6613_v21, %v2175_v17  ;;  %v8866_v26 = vmax.f32 %v6679_v45, 0.0 }
 0x37d   : > { %v6791_v31 = vadd.f32 %v6613_v21, %v2176_v52  ;;  %v6794_v55 = vadd.f32 %v6613_v21, %v2177_v46  ;;  %v6797_v49 = vadd.f32 %v6613_v21, %v2178_v5  ;;  %v6800_v40 = vadd.f32 %v6613_v21, %v2179_v27 }
 0x37e   : > { %v6803_v9 = vadd.f32 %v6613_v21, %v2180_v6  ;;  %v8864_v32 = vmax.f32 %v6684_v57, 0.0  ;;  %v8862_v47 = vmax.f32 %v6687_v0, 0.0  ;;  %v8861_v2 = vmax.f32 %v6690_v28, 0.0 }
 0x37f   : > { %v8863_v58 = vmax.f32 %v6693_v8, 0.0  ;;  %v8865_v59 = vmax.f32 %v6696_v38, 0.0  ;;  %v8867_v4 = vmax.f32 %v6699_v50, 0.0  ;;  %v8871_v24 = vmax.f32 %v6705_v51, 0.0 }
 0x380   : > { %v8872_v37 = vmax.f32 %v6708_v53, 0.0  ;;  %v2237_v36 = vmax.f32 %v2205_v39, 0.0  ;;  %v2238_v17 = vmax.f32 %v2206_v42, 0.0  ;;  %v2239_v52 = vmax.f32 %v2207_v62, 0.0 }
 0x381   : > { %v2282_v46 = vrot.slane %v2233_v15, 1  ;;  %v2240_v5 = vmax.f32 %v2208_v19, 0.0  ;;  %v2241_v27 = vmax.f32 %v2209_v11, 0.0  ;;  %v6817_v61 = vrot.slane %v8868_v44, 7 }
 0x382   : > { %v6821_v6 = vrot.slane %v8866_v26, 7  ;;  %v6825_v29 = vrot.slane %v8864_v32, 7  ;;  %v6829_v39 = vrot.slane %v8862_v47, 7  ;;  %v6833_v15 = vrot.slane %v8861_v2, 7 }
 0x383   : > { %v6837_v42 = vrot.slane %v8863_v58, 7  ;;  %v6841_v62 = vrot.slane %v8865_v59, 7  ;;  %v6845_v19 = vrot.slane %v8867_v4, 7  ;;  %v6849_v11 = vrot.slane %v8871_v24, 7 }
 0x384   : > { %v6853_v54 = vrot.slane %v8872_v37, 7  ;;  %v2283_v2 = vrot.slane %v2237_v36, 1  ;;  %v2335_v47 = vrot.slane %v2237_v36, 7  ;;  %v2336_v58 = vrot.slane %v2238_v17, 7 }
 0x385   : > { %v6857_v32 = vsel %vm298_vm0, %v2282_v46, %v6725_v10  ;;  %v2242_v59 = vmax.f32 %v6783_v30, 0.0  ;;  %v2284_v26 = vrot.slane %v2239_v52, 1  ;;  %v2338_v4 = vrot.slane %v2239_v52, 7 }
 0x386   : > { %9285 = vst [vmem:[#allocation48_spill] sm:$0xff] %v6857_v32  ;;  %v2523_v44 = vrot.slane %v6857_v32, 1  ;;  %v2339_v33 = vrot.slane %v2240_v5, 7  ;;  %v2426_v24 = vrot.slane %v2238_v17, 5  ;;  %v6864_v37 = vsel %vm298_vm0, %v6817_v61, %v6821_v6 }
 0x387   : > { %9286 = vst [vmem:[#allocation22_spill] sm:$0xff] %v6864_v37  ;;  %v6869_v36 = vsel %vm298_vm0, %v6825_v29, %v6829_v39  ;;  %v6877_v30 = vsel %vm298_vm0, %v6833_v15, %v6837_v42  ;;  %v6882_v17 = vsel %vm298_vm0, %v6841_v62, %v6845_v19  ;;  %v6887_v52 = vsel %vm298_vm0, %v6849_v11, %v6853_v54 }
 0x388   : > { %9287 = vst [vmem:[#allocation21_spill] sm:$0xff] %v6869_v36  ;;  %v6872_v10 = vsel %vm488_vm1, %v2523_v44, %v2524_v60  ;;  %9289 = vst [vmem:[#allocation87_spill] sm:$0xff] %v6877_v30  ;;  %v2243_v46 = vmax.f32 %v6788_v35, 0.0  ;;  %v2427_v13 = vrot.slane %v2240_v5, 5  ;;  %v6893_v60 = vsel %vm298_vm0, %v2335_v47, %v2336_v58 }
 0x389   : > { %9288 = vst [vmem:[#allocation57_spill] sm:$0xff] %v6872_v10  ;;  %9290 = vst [vmem:[#allocation28_spill] sm:$0xff] %v6882_v17  ;;  %2597 = vrot.lane.b32.xlu0 %v6872_v10, %s4699_s21  ;;  %v6896_v44 = vsel %vm298_vm0, %v2283_v2, %v2335_v47  ;;  %v2244_v22 = vmax.f32 %v6791_v31, 0.0  ;;  %v2245_v7 = vmax.f32 %v6794_v55, 0.0  ;;  %v2246_v43 = vmax.f32 %v6797_v49, 0.0 }
 0x38a   : > { %9291 = vst [vmem:[#allocation97_spill] sm:$0xff] %v6887_v52  ;;  %v2285_v32 = vrot.slane %v2241_v27, 1  ;;  %v2341_v18 = vrot.slane %v2241_v27, 7  ;;  %v2342_v3 = vrot.slane %v2242_v59, 7  ;;  %v6902_v35 = vsel %vm298_vm0, %v2338_v4, %v2339_v33 }
 0x38b   : > { %v6905_v5 = vsel %vm298_vm0, %v2284_v26, %v2338_v4  ;;  %v2428_v10 = vrot.slane %v2242_v59, 5  ;;  %v6908_v1 = vsel %vm298_vm0, %v2336_v58, %v2426_v24  ;;  %v2529_v47 = vrot.slane %v6893_v60, 1 }
 0x38c   : > { %9292 = vst [vmem:[#allocation58_spill] sm:$0xff] %v6905_v5  ;;  %v2528_v31 = vrot.slane %v6896_v44, 1  ;;  %v2286_v55 = vrot.slane %v2243_v46, 1  ;;  %v2344_v2 = vrot.slane %v2243_v46, 7  ;;  %v2531_v49 = vrot.slane %v6908_v1, 1 }
 0x38d   : > { %v6914_v27 = vsel %vm298_vm0, %v2339_v33, %v2427_v13  ;;  %v2345_v34 = vrot.slane %v2244_v22, 7  ;;  %v2534_v26 = vrot.slane %v6902_v35, 1  ;;  %v2533_v58 = vrot.slane %v6905_v5, 1 }
 0x38e   : > { %9293 = vst [vmem:[#allocation49_spill] sm:$0xff] %v6914_v27  ;;  %v6917_v52 = vsel %vm488_vm1, %v2528_v31, %v2529_v47  ;;  %v6922_v59 = vsel %vm298_vm0, %v2341_v18, %v2342_v3  ;;  %v6925_v4 = vsel %vm298_vm0, %v2285_v32, %v2341_v18  ;;  %v6928_v24 = vsel %vm488_vm1, %v2529_v47, %v2531_v49 }
 0x38f   : > { %9294 = vst [vmem:[#allocation88_spill] sm:$0xff] %v6917_v52  ;;  %9295 = vst [vmem:[#allocation50_spill] sm:$0xff] %v6922_v59  ;;  %2601 = vrot.lane.b32.xlu0 %v6917_v52, %s4699_s21  ;;  %v2536_v33 = vrot.slane %v6914_v27, 1  ;;  %v2217_v13 = vadd.f32 %v6613_v21, %v6760_v20  ;;  %v2218_v46 = vadd.f32 %v6613_v21, %v6764_v41  ;;  %v2429_v31 = vrot.slane %v2244_v22, 5 }
 0x390   : > { %9296 = vst [vmem:[#allocation27_spill] sm:$0xff] %v6925_v4  ;;  %9297 = vst [vmem:[#allocation26_spill] sm:$0xff] %v6928_v24  ;;  %2603 = vrot.lane.b32.xlu1 %v6928_v24, %s4699_s21  ;;  %v6940_v18 = vsel %vm298_vm0, %v2342_v3, %v2428_v10  ;;  %v2247_v32 = vmax.f32 %v6800_v40, 0.0  ;;  %v2248_v47 = vmax.f32 %v6803_v9, 0.0  ;;  %v2287_v49 = vrot.slane %v2245_v7, 1 }
 0x391   : > { %9298 = vst [vmem:[#allocation59_spill] sm:$0xff] %v6940_v18  ;;  %v2347_v52 = vrot.slane %v2245_v7, 7  ;;  %v2348_v27 = vrot.slane %v2246_v43, 7  ;;  %v6945_v5 = vsel %vm488_vm1, %v2533_v58, %v2534_v26  ;;  %v2539_v20 = vrot.slane %v6922_v59, 1 }
 0x392   : > { %9299 = vst [vmem:[#allocation31_spill] sm:$0xff] %v6945_v5  ;;  %v2538_v22 = vrot.slane %v6925_v4, 1  ;;  %v6950_v41 = vsel %vm298_vm0, %v2344_v2, %v2345_v34  ;;  %v6953_v3 = vsel %vm298_vm0, %v2286_v55, %v2344_v2  ;;  %v6956_v40 = vsel %vm488_vm1, %v2534_v26, %v2536_v33 }
 0x393   : > { %9300 = vst [vmem:[#allocation89_spill] sm:$0xff] %v6950_v41  ;;  %9301 = vst [vmem:[#allocation98_spill] sm:$0xff] %v6953_v3  ;;  %2605 = vrot.lane.b32.xlu0 %v6945_v5, %s4699_s21  ;;  %v2541_v7 = vrot.slane %v6940_v18, 1  ;;  %v2219_v9 = vadd.f32 %v6613_v21, %v6768_v48  ;;  %v2220_v10 = vadd.f32 %v6613_v21, %v6772_v23  ;;  %v2430_v58 = vrot.slane %v2246_v43, 5 }
 0x394   : > { %9302 = vst [vmem:[#allocation60_spill] sm:$0xff] %v6956_v40  ;;  %2607 = vrot.lane.b32.xlu1 %v6956_v40, %s4699_s21  ;;  %v6968_v55 = vsel %vm298_vm0, %v2345_v34, %v2429_v31  ;;  %v2249_v2 = vmax.f32 %v2217_v13, 0.0  ;;  %v2250_v26 = vmax.f32 %v2218_v46, 0.0  ;;  %v2288_v33 = vrot.slane %v2247_v32, 1 }
 0x395   : > { %v2350_v24 = vrot.slane %v2247_v32, 7  ;;  %v2351_v5 = vrot.slane %v2248_v47, 7  ;;  %v6971_v18 = vsel %vm488_vm1, %v2538_v22, %v2539_v20  ;;  %v2544_v48 = vrot.slane %v6950_v41, 1 }
 0x396   : > { %9303 = vst [vmem:[#allocation32_spill] sm:$0xff] %v6971_v18  ;;  %v2543_v4 = vrot.slane %v6953_v3, 1  ;;  %v6976_v21 = vsel %vm298_vm0, %v2347_v52, %v2348_v27  ;;  %v6979_v43 = vsel %vm298_vm0, %v2287_v49, %v2347_v52  ;;  %v6982_v34 = vsel %vm488_vm1, %v2539_v20, %v2541_v7 }
 0x397   : > { %9304 = vst [vmem:[#allocation90_spill] sm:$0xff] %v6982_v34  ;;  %2609 = vrot.lane.b32.xlu0 %v6971_v18, %s4699_s21  ;;  %v2546_v23 = vrot.slane %v6968_v55, 1  ;;  %v2431_v13 = vrot.slane %v2248_v47, 5  ;;  %v6990_v46 = vsel %vm298_vm0, %v2348_v27, %v2430_v58  ;;  %v2251_v31 = vmax.f32 %v2219_v9, 0.0 }
 0x398   : > { %2611 = vrot.lane.b32.xlu1 %v6982_v34, %s4699_s21  ;;  %v2252_v32 = vmax.f32 %v2220_v10, 0.0  ;;  %v2289_v22 = vrot.slane %v2249_v2, 1  ;;  %v2353_v52 = vrot.slane %v2249_v2, 7  ;;  %v2354_v49 = vrot.slane %v2250_v26, 7 }
 0x399   : > { %v6993_v20 = vsel %vm488_vm1, %v2543_v4, %v2544_v48  ;;  %v2549_v7 = vrot.slane %v6976_v21, 1  ;;  %v2548_v18 = vrot.slane %v6979_v43, 1  ;;  %v6998_v47 = vsel %vm298_vm0, %v2350_v24, %v2351_v5 }
 0x39a   : > { %9305 = vst [vmem:[#allocation51_spill] sm:$0xff] %v6993_v20  ;;  %v7001_v34 = vsel %vm298_vm0, %v2288_v33, %v2350_v24  ;;  %v7004_v27 = vsel %vm488_vm1, %v2544_v48, %v2546_v23  ;;  %v2551_v9 = vrot.slane %v6990_v46, 1  ;;  %v2432_v4 = vrot.slane %v2250_v26, 5 }
 0x39b   : > { %9306 = vst [vmem:[#allocation99_spill] sm:$0xff] %v7004_v27  ;;  %2613 = vrot.lane.b32.xlu0 %v6993_v20, %s4699_s21  ;;  %v7012_v10 = vsel %vm298_vm0, %v2351_v5, %v2431_v13  ;;  %v2290_v58 = vrot.slane %v2251_v31, 1  ;;  %v2356_v2 = vrot.slane %v2251_v31, 7  ;;  %v2357_v40 = vrot.slane %v2252_v32, 7 }
 0x39c   : > { %2615 = vrot.lane.b32.xlu1 %v7004_v27, %s4699_s21  ;;  %v7015_v24 = vsel %vm488_vm1, %v2548_v18, %v2549_v7  ;;  %v2554_v33 = vrot.slane %v6998_v47, 1  ;;  %v2553_v48 = vrot.slane %v7001_v34, 1  ;;  %v7020_v23 = vsel %vm298_vm0, %v2353_v52, %v2354_v49 }
 0x39d   : > { %9307 = vst [vmem:[#allocation52_spill] sm:$0xff] %v7020_v23  ;;  %v7023_v26 = vsel %vm298_vm0, %v2289_v22, %v2353_v52  ;;  %v7026_v27 = vsel %vm488_vm1, %v2549_v7, %v2551_v9  ;;  %v2556_v5 = vrot.slane %v7012_v10, 1  ;;  %v2433_v18 = vrot.slane %v2252_v32, 5 }
 0x39e   : > { %9308 = vst [vmem:[#allocation61_spill] sm:$0xff] %v7026_v27  ;;  %v7034_v13 = vsel %vm298_vm0, %v2354_v49, %v2432_v4  ;;  %v9309_v31 = vmax.f32 %v6676_v56, 0.0  ;;  %v7039_v22 = vsel %vm488_vm1, %v2553_v48, %v2554_v33  ;;  %v2559_v52 = vrot.slane %v7020_v23, 1 }
 0x39f   : > { %2617 = vrot.lane.b32.xlu0 %v7015_v24, %s4699_s21  ;;  %v2558_v7 = vrot.slane %v7023_v26, 1  ;;  %v7044_v9 = vsel %vm298_vm0, %v2356_v2, %v2357_v40  ;;  %v7047_v32 = vsel %vm298_vm0, %v2290_v58, %v2356_v2  ;;  %v2561_v56 = vrot.slane %v7034_v13, 1 }
 0x3a0   : > { %2619 = vrot.lane.b32.xlu1 %v7026_v27, %s4699_s21  ;;  %v2291_v20 = vrot.slane %v9309_v31, 1  ;;  %9310 = vst [vmem:[#allocation30_spill] sm:$0xff] %v7044_v9  ;;  %v7050_v27 = vsel %vm488_vm1, %v2554_v33, %v2556_v5  ;;  %v9311_v49 = vmax.f32 %v6679_v45, 0.0  ;;  %v7060_v48 = vsel %vm298_vm0, %v2357_v40, %v2433_v18 }
 0x3a1   : > { %v9312_v58 = vmax.f32 %v6684_v57, 0.0  ;;  %v7065_v33 = vsel %vm488_vm1, %v2558_v7, %v2559_v52  ;;  %v2564_v5 = vrot.slane %v7044_v9, 1  ;;  %v2563_v31 = vrot.slane %v7047_v32, 1 }
 0x3a2   : > { %v2434_v4 = vrot.slane %v9311_v49, 5  ;;  %9313 = vst [vmem:[#allocation91_spill] sm:$0xff] %v7065_v33  ;;  %v7071_v45 = vsel %vm298_vm0, %v2291_v20, %v6817_v61  ;;  %v7074_v49 = vsel %vm488_vm1, %v2559_v52, %v2561_v56  ;;  %v2566_v57 = vrot.slane %v7060_v48, 1 }
 0x3a3   : > { %2621 = vrot.lane.b32.xlu0 %v7039_v22, %s4699_s21  ;;  %v2292_v2 = vrot.slane %v9312_v58, 1  ;;  %9314 = vst [vmem:[#allocation29_spill] sm:$0xff] %v7074_v49  ;;  %v9315_v40 = vmax.f32 %v6687_v0, 0.0  ;;  %v7092_v20 = vsel %vm488_vm1, %v2563_v31, %v2564_v5  ;;  %v2569_v52 = vrot.slane %v6864_v37, 1 }
 0x3a4   : > { %2623 = vrot.lane.b32.xlu1 %v7050_v27, %s4699_s21  ;;  %v7085_v7 = vsel %vm298_vm0, %v6821_v6, %v2434_v4  ;;  %9316 = vst [vmem:[#allocation100_spill] sm:$0xff] %v7092_v20  ;;  %v2568_v56 = vrot.slane %v7071_v45, 1  ;;  %v9317_v0 = vmax.f32 %v6690_v28, 0.0  ;;  %v9320_v28 = vmax.f32 %v6616_v14, 0.0 }
 0x3a5   : > { %v2435_v18 = vrot.slane %v9315_v40, 5  ;;  %v7089_v61 = vsel %vm298_vm0, %v2292_v2, %v6825_v29  ;;  %v7099_v40 = vsel %vm488_vm1, %v2564_v5, %v2566_v57  ;;  %v2571_v6 = vrot.slane %v7085_v7, 1 }
 0x3a6   : > { %v2293_v58 = vrot.slane %v9317_v0, 1  ;;  %9318 = vst [vmem:[#allocation62_spill] sm:$0xff] %v7099_v40  ;;  %v9319_v29 = vmax.f32 %v6693_v8, 0.0  ;;  %v2296_v31 = vrot.slane %v9320_v28, 1  ;;  %v9321_v5 = vmax.f32 %v6696_v38, 0.0 }
 0x3a7   : > { %2625 = vrot.lane.b32.xlu0 %v7065_v33, %s4699_s21  ;;  %v7110_v2 = vsel %vm298_vm0, %v6829_v39, %v2435_v18  ;;  %v2574_v0 = vrot.slane %v6869_v36, 1  ;;  %v7119_v8 = vsel %vm488_vm1, %v2568_v56, %v2569_v52  ;;  %v7128_v14 = vsel %vm488_vm1, %v2569_v52, %v2571_v6 }
 0x3a8   : > { %2627 = vrot.lane.b32.xlu1 %v7074_v49, %s4699_s21  ;;  %v2436_v4 = vrot.slane %v9319_v29, 5  ;;  %v2294_v57 = vrot.slane %v9321_v5, 1  ;;  %9322 = vst [vmem:[#allocation35_spill] sm:$0xff] %v7119_v8  ;;  %v9323_v29 = vmax.f32 %v6619_v12, 0.0  ;;  %v7125_v39 = vsel %vm298_vm0, %v2293_v58, %v6833_v15  ;;  %9325 = vst [vmem:[#allocation36_spill] sm:$0xff] %v7128_v14 }
 0x3a9   : > { %9324 = vst [vmem:[#allocation92_spill] sm:$0xff] %v7125_v39  ;;  %v2576_v38 = vrot.slane %v7110_v2, 1  ;;  %v9326_v18 = vmax.f32 %v6705_v51, 0.0  ;;  %v9327_v56 = vmax.f32 %v6699_v50, 0.0  ;;  %v9328_v12 = vmax.f32 %v6708_v53, 0.0 }
 0x3aa   : > { %v7143_v15 = vsel %vm298_vm0, %v6837_v42, %v2436_v4  ;;  %v7147_v52 = vsel %vm298_vm0, %v2294_v57, %v6841_v62  ;;  %v2579_v50 = vrot.slane %v6877_v30, 1  ;;  %v7155_v53 = vsel %vm298_vm0, %v2296_v31, %v6625_v25 }
 0x3ab   : > { %2629 = vrot.lane.b32.xlu0 %v7092_v20, %s4699_s21  ;;  %v2573_v20 = vrot.slane %v7089_v61, 1  ;;  %v2295_v28 = vrot.slane %v9326_v18, 1  ;;  %v2437_v5 = vrot.slane %v9327_v56, 5  ;;  %9329 = vst [vmem:[#allocation53_spill] sm:$0xff] %v7147_v52  ;;  %9331 = vst [vmem:[#allocation54_spill] sm:$0xff] %v7155_v53  ;;  %v2578_v58 = vrot.slane %v7125_v39, 1 }
 0x3ac   : > { %2631 = vrot.lane.b32.xlu1 %v7099_v40, %s4699_s21  ;;  %v2439_v40 = vrot.slane %v9323_v29, 5  ;;  %v2438_v29 = vrot.slane %v9328_v12, 5  ;;  %v2946_v6 = vrot.slane %v7155_v53, 1  ;;  %v3047_v42 = vrot.slane %v7155_v53, 2 }
 0x3ad   : > { %v7150_v51 = vsel %vm488_vm1, %v2573_v20, %v2574_v0  ;;  %v2947_v4 = vrot.slane %v6640_v16, 1  ;;  %v7162_v62 = vsel %vm488_vm1, %v2574_v0, %v2576_v38  ;;  %v2581_v20 = vrot.slane %v7143_v15, 1 }
 0x3ae   : > { %9330 = vst [vmem:[#allocation63_spill] sm:$0xff] %v7150_v51  ;;  %9332 = vst [vmem:[#allocation3_spill] sm:$0xff] %v7162_v62  ;;  %v3048_v57 = vrot.slane %v6640_v16, 2  ;;  %v2487_v25 = vsel %vm298_vm0, %v6629_v63, %v2439_v40  ;;  %v7174_v31 = vsel %vm298_vm0, %v6845_v19, %v2437_v5  ;;  %v2584_v56 = vrot.slane %v6882_v17, 1 }
 0x3af   : > { %2633 = vrot.lane.b32.xlu0 %v7119_v8, %s4699_s21  ;;  %v7177_v0 = vsel %vm488_vm1, %v2946_v6, %v2947_v4  ;;  %v2949_v38 = vrot.slane %v2487_v25, 1  ;;  %v3050_v18 = vrot.slane %v2487_v25, 2  ;;  %v7184_v16 = vsel %vm488_vm1, %v2578_v58, %v2579_v50 }
 0x3b0   : > { %2635 = vrot.lane.b32.xlu1 %v7128_v14, %s4699_s21  ;;  %9333 = vst [vmem:[#allocation64_spill] sm:$0xff] %v7177_v0  ;;  %v7181_v12 = vsel %vm654_vm2, %v3047_v42, %v3048_v57  ;;  %9335 = vst [vmem:[#allocation93_spill] sm:$0xff] %v7184_v16  ;;  %v2583_v63 = vrot.slane %v7147_v52, 1  ;;  %v7195_v5 = vsel %vm298_vm0, %v2295_v28, %v6849_v11  ;;  %v2586_v58 = vrot.slane %v7174_v31, 1  ;;  %v9341_v11 = vld [vmem:[#allocation97_spill] sm:$0xff] }
 0x3b1   : > { %9334 = vst [vmem:[#allocation34_spill] sm:$0xff] %v7181_v12  ;;  %v7188_v40 = vsel %vm488_vm1, %v2947_v4, %v2949_v38  ;;  %v7191_v19 = vsel %vm654_vm2, %v3048_v57, %v3050_v18  ;;  %9338 = vst [vmem:[#allocation38_spill] sm:$0xff] %v7195_v5  ;;  %v7198_v6 = vsel %vm488_vm1, %v2579_v50, %v2581_v20  ;;  %v2589_v28 = vrot.slane %v9341_v11, 1  ;;  %v9345_v38 = vld [vmem:[#allocation46_spill] sm:$0xff] }
 0x3b2   : > { %9336 = vst [vmem:[#allocation33_spill] sm:$0xff] %v7188_v40  ;;  %9337 = vst [vmem:[#allocation37_spill] sm:$0xff] %v7191_v19  ;;  %v7207_v42 = vsel %vm298_vm0, %v6853_v54, %v2438_v29  ;;  %v7210_v4 = vsel %vm488_vm1, %v2583_v63, %v2584_v56  ;;  %v2588_v50 = vrot.slane %v7195_v5, 1  ;;  %v7215_v20 = vsel %vm488_vm1, %v2584_v56, %v2586_v58  ;;  %v9344_v29 = vld [vmem:[#allocation2_spill] sm:$0xff]  ;;  %v9347_v56 = vld [vmem:[#allocation45_spill] sm:$0xff] }
 0x3b3   : > { %2637 = vrot.lane.b32.xlu0 %v7150_v51, %s4699_s21  ;;  %9339 = vst [vmem:[#allocation55_spill] sm:$0xff] %v7198_v6  ;;  %9340 = vst [vmem:[#allocation65_spill] sm:$0xff] %v7210_v4  ;;  %v2591_v57 = vrot.slane %v7207_v42, 1  ;;  %v2684_v25 = vrot.slane %v9344_v29, 2  ;;  %v2683_v18 = vrot.slane %v9345_v38, 2  ;;  %v2686_v58 = vrot.slane %v9347_v56, 2 }
 0x3b4   : > { %2639 = vrot.lane.b32.xlu1 %v7162_v62, %s4699_s21  ;;  %9342 = vst [vmem:[#allocation9_spill] sm:$0xff] %v7215_v20  ;;  %v7223_v54 = vsel %vm488_vm1, %v2588_v50, %v2589_v28  ;;  %v9348_v50 = vld [vmem:[#allocation17_spill] sm:$0xff]  ;;  %v9349_v40 = vld [vmem:[#allocation48_spill] sm:$0xff]  ;;  %v2708_v51 = vrot.slane %v6953_v3, 2 }
 0x3b5   : > { %9343 = vst [vmem:[#allocation4_spill] sm:$0xff] %v7223_v54  ;;  %v7228_v63 = vsel %vm488_vm1, %v2589_v28, %v2591_v57  ;;  %v7236_v19 = vsel %vm654_vm2, %v2683_v18, %v2684_v25  ;;  %v2689_v12 = vrot.slane %v9348_v50, 2  ;;  %v2688_v0 = vrot.slane %v9349_v40, 2  ;;  %v9350_v28 = vld [vmem:[#allocation25_spill] sm:$0xff] }
 0x3b6   : > { %9346 = vst [vmem:[#allocation83_spill] sm:$0xff] %v7228_v63  ;;  %v7241_v53 = vsel %vm654_vm2, %v2684_v25, %v2686_v58  ;;  %v2691_v57 = vrot.slane %v9350_v28, 2  ;;  %v2694_v18 = vrot.slane %v6893_v60, 2  ;;  %v2696_v25 = vrot.slane %v6908_v1, 2  ;;  %v9351_v28 = vld [vmem:[#allocation58_spill] sm:$0xff] }
 0x3b7   : > { %2641 = vrot.lane.b32.xlu0 %v7184_v16, %s4699_s21  ;;  %v7249_v56 = vsel %vm654_vm2, %v2688_v0, %v2689_v12  ;;  %v2699_v0 = vrot.slane %v6902_v35, 2 }
 0x3b8   : > { %2643 = vrot.lane.b32.xlu1 %v7198_v6, %s4699_s21  ;;  %v9353_v6 = vld [vmem:[#allocation27_spill] sm:$0xff] }
 0x3b9   : > { %v2703_v16 = vrot.slane %v9353_v6, 2 }
 0x3bb   : > { %2645 = vrot.lane.b32.xlu0 %v7210_v4, %s4699_s21  ;;  %v7267_v4 = vsel %vm654_vm2, %v2694_v18, %v2696_v25 }
 0x3bc   : > { %2647 = vrot.lane.b32.xlu1 %v7215_v20, %s4699_s21  ;;  %v2698_v20 = vrot.slane %v9351_v28, 2 }
 0x3be   : > { %v7275_v1 = vsel %vm654_vm2, %v2698_v20, %v2699_v0  ;;  %v2709_v20 = vrot.slane %v6950_v41, 2 }
 0x3bf   : > { %2649 = vrot.lane.b32.xlu0 %v7223_v54, %s4699_s21  ;;  %v7254_v54 = vsel %vm654_vm2, %v2689_v12, %v2691_v57  ;;  %v9352_v12 = vld [vmem:[#allocation49_spill] sm:$0xff] }
 0x3c0   : > { %2651 = vrot.lane.b32.xlu1 %v7228_v63, %s4699_s21  ;;  %v2693_v63 = vrot.slane %v6896_v44, 2  ;;  %v2701_v57 = vrot.slane %v9352_v12, 2 }
 0x3c2   : > { %v7262_v58 = vsel %vm654_vm2, %v2693_v63, %v2694_v18  ;;  %v2704_v63 = vrot.slane %v6922_v59, 2  ;;  %v7280_v62 = vsel %vm654_vm2, %v2699_v0, %v2701_v57  ;;  %v9354_v18 = vld [vmem:[#allocation59_spill] sm:$0xff]  ;;  %v2711_v0 = vrot.slane %v6968_v55, 2 }
 0x3c3   : > { %2758 = vrot.lane.b32.xlu0 %v7236_v19, %s4700_s22  ;;  %v2706_v25 = vrot.slane %v9354_v18, 2  ;;  %v7301_v57 = vsel %vm654_vm2, %v2708_v51, %v2709_v20  ;;  %v2713_v18 = vrot.slane %v6979_v43, 2  ;;  %v2719_v51 = vrot.slane %v6998_v47, 2 }
 0x3c4   : > { %2760 = vrot.lane.b32.xlu1 %v7241_v53, %s4700_s22  ;;  %v7288_v12 = vsel %vm654_vm2, %v2703_v16, %v2704_v63  ;;  %v2714_v16 = vrot.slane %v6976_v21, 2  ;;  %v7306_v8 = vsel %vm654_vm2, %v2709_v20, %v2711_v0  ;;  %v2721_v20 = vrot.slane %v7012_v10, 2 }
 0x3c5   : > { %v7293_v14 = vsel %vm654_vm2, %v2704_v63, %v2706_v25  ;;  %v2716_v63 = vrot.slane %v6990_v46, 2  ;;  %v2718_v25 = vrot.slane %v7001_v34, 2  ;;  %v2724_v0 = vrot.slane %v7020_v23, 2 }
 0x3c6   : > { %v7314_v55 = vsel %vm654_vm2, %v2713_v18, %v2714_v16  ;;  %v2723_v18 = vrot.slane %v7023_v26, 2  ;;  %v7332_v33 = vsel %vm654_vm2, %v2719_v51, %v2721_v20  ;;  %v2734_v20 = vrot.slane %v6864_v37, 2 }
 0x3c7   : > { %2762 = vrot.lane.b32.xlu0 %v7249_v56, %s4700_s22  ;;  %v7319_v49 = vsel %vm654_vm2, %v2714_v16, %v2716_v63  ;;  %v7327_v46 = vsel %vm654_vm2, %v2718_v25, %v2719_v51  ;;  %v2726_v16 = vrot.slane %v7034_v13, 2  ;;  %v2729_v63 = vrot.slane %v7044_v9, 2 }
 0x3c8   : > { %2764 = vrot.lane.b32.xlu1 %v7254_v54, %s4700_s22  ;;  %v7340_v10 = vsel %vm654_vm2, %v2723_v18, %v2724_v0  ;;  %v2728_v25 = vrot.slane %v7047_v32, 2  ;;  %v2731_v51 = vrot.slane %v7060_v48, 2  ;;  %v2733_v18 = vrot.slane %v7071_v45, 2 }
 0x3c9   : > { %v7345_v23 = vsel %vm654_vm2, %v2724_v0, %v2726_v16  ;;  %v2736_v0 = vrot.slane %v7085_v7, 2  ;;  %v2739_v16 = vrot.slane %v6869_v36, 2 }
 0x3ca   : > { %v7353_v13 = vsel %vm654_vm2, %v2728_v25, %v2729_v63  ;;  %v7358_v9 = vsel %vm654_vm2, %v2729_v63, %v2731_v51  ;;  %v7366_v48 = vsel %vm654_vm2, %v2733_v18, %v2734_v20  ;;  %v2738_v25 = vrot.slane %v7089_v61, 2 }
 0x3cb   : > { %2766 = vrot.lane.b32.xlu0 %v7262_v58, %s4700_s22  ;;  %v7371_v37 = vsel %vm654_vm2, %v2734_v20, %v2736_v0  ;;  %v2741_v63 = vrot.slane %v7110_v2, 2  ;;  %v2744_v51 = vrot.slane %v6877_v30, 2  ;;  %v2743_v18 = vrot.slane %v7125_v39, 2 }
 0x3cc   : > { %2768 = vrot.lane.b32.xlu1 %v7267_v4, %s4700_s22  ;;  %v7379_v7 = vsel %vm654_vm2, %v2738_v25, %v2739_v16  ;;  %v2746_v20 = vrot.slane %v7143_v15, 2  ;;  %v2749_v0 = vrot.slane %v6882_v17, 2  ;;  %v2748_v25 = vrot.slane %v7147_v52, 2 }
 0x3cd   : > { %9355 = vst [vmem:[#allocation101_spill] sm:$0xff] %v7379_v7  ;;  %v7384_v36 = vsel %vm654_vm2, %v2739_v16, %v2741_v63  ;;  %v7392_v2 = vsel %vm654_vm2, %v2743_v18, %v2744_v51  ;;  %v2751_v16 = vrot.slane %v7174_v31, 2  ;;  %v2754_v17 = vrot.slane %v9341_v11, 2 }
 0x3ce   : > { %9356 = vst [vmem:[#allocation40_spill] sm:$0xff] %v7384_v36  ;;  %9357 = vst [vmem:[#allocation66_spill] sm:$0xff] %v7392_v2  ;;  %v7397_v30 = vsel %vm654_vm2, %v2744_v51, %v2746_v20  ;;  %v7407_v63 = vsel %vm654_vm2, %v2748_v25, %v2749_v0  ;;  %v2753_v51 = vrot.slane %v7195_v5, 2  ;;  %v2756_v31 = vrot.slane %v7207_v42, 2 }
 0x3cf   : > { %2770 = vrot.lane.b32.xlu0 %v7275_v1, %s4700_s22  ;;  %9358 = vst [vmem:[#allocation8_spill] sm:$0xff] %v7397_v30  ;;  %9359 = vst [vmem:[#allocation56_spill] sm:$0xff] %v7407_v63  ;;  %v7414_v20 = vsel %vm654_vm2, %v2749_v0, %v2751_v16  ;;  %v9363_v16 = vld [vmem:[#allocation57_spill] sm:$0xff] }
 0x3d0   : > { %2772 = vrot.lane.b32.xlu1 %v7280_v62, %s4700_s22  ;;  %9360 = vst [vmem:[#allocation84_spill] sm:$0xff] %v7414_v20  ;;  %v7422_v25 = vsel %vm654_vm2, %v2753_v51, %v2754_v17  ;;  %v7425_v52 = vsel %vm654_vm2, %v2754_v17, %v2756_v31  ;;  %v9364_v51 = vld [vmem:[#allocation47_spill] sm:$0xff] }
 0x3d1   : > { %9361 = vst [vmem:[#allocation85_spill] sm:$0xff] %v7422_v25  ;;  %9362 = vst [vmem:[#allocation5_spill] sm:$0xff] %v7425_v52 }
 0x3d3   : > { %2774 = vrot.lane.b32.xlu0 %v7288_v12, %s4700_s22 }
 0x3d4   : > { %2776 = vrot.lane.b32.xlu1 %v7293_v14, %s4700_s22 }
 0x3d7   : > { %2778 = vrot.lane.b32.xlu0 %v7301_v57, %s4700_s22 }
 0x3d8   : > { %2780 = vrot.lane.b32.xlu1 %v7306_v8, %s4700_s22 }
 0x3db   : > { %2782 = vrot.lane.b32.xlu0 %v7314_v55, %s4700_s22 }
 0x3dc   : > { %2784 = vrot.lane.b32.xlu1 %v7319_v49, %s4700_s22 }
 0x3df   : > { %2786 = vrot.lane.b32.xlu0 %v7327_v46, %s4700_s22 }
 0x3e0   : > { %2788 = vrot.lane.b32.xlu1 %v7332_v33, %s4700_s22 }
 0x3e3   : > { %2790 = vrot.lane.b32.xlu0 %v7340_v10, %s4700_s22 }
 0x3e4   : > { %2792 = vrot.lane.b32.xlu1 %v7345_v23, %s4700_s22 }
 0x3e7   : > { %2794 = vrot.lane.b32.xlu0 %v7353_v13, %s4700_s22 }
 0x3e8   : > { %2796 = vrot.lane.b32.xlu1 %v7358_v9, %s4700_s22  ;;  %v7409_v18 = vpop.permute.xlu1 %2595 }
 0x3ea   : > { %v7404_v15 = vpop.permute.xlu0 %2593 }
 0x3eb   : > { %2798 = vrot.lane.b32.xlu0 %v7366_v48, %s4700_s22 }
 0x3ec   : > { %2800 = vrot.lane.b32.xlu1 %v7371_v37, %s4700_s22 }
 0x3ee   : > { %v7433_v0 = vpop.permute.xlu1 %2599 }
 0x3ef   : > { %2802 = vrot.lane.b32.xlu0 %v7379_v7, %s4700_s22 }
 0x3f0   : > { %2804 = vrot.lane.b32.xlu1 %v7384_v36, %s4700_s22 }
 0x3f3   : > { %2806 = vrot.lane.b32.xlu0 %v7392_v2, %s4700_s22 }
 0x3f4   : > { %2808 = vrot.lane.b32.xlu1 %v7397_v30, %s4700_s22 }
 0x3f7   : > { %2810 = vrot.lane.b32.xlu0 %v7407_v63, %s4700_s22  ;;  %v9368_v63 = vld [vmem:[#allocation18_spill] sm:$0xff] }
 0x3f8   : > { %2812 = vrot.lane.b32.xlu1 %v7414_v20, %s4700_s22  ;;  %v3671_v20 = vld [vmem:[%s8742_s2 + $0x8] sm:$0xff] }
 0x3fb   : > { %2814 = vrot.lane.b32.xlu0 %v7422_v25, %s4700_s22  ;;  %v7429_v11 = vpop.permute.xlu0 %2597  ;;  %v3674_v25 = vld [vmem:[%s8742_s2 + $0x20] sm:$0xf] }
 0x3fc   : > { %2816 = vrot.lane.b32.xlu1 %v7425_v52, %s4700_s22  ;;  %4581 = vmatprep.subr.msk.mxu1 %vm1752_vm3, %v3674_v25 }
 0x3fd   : > { %4582 = vmatpush3.msk.msra.mxu1 %vm1752_vm3, %v3674_v25 }
 0x3ff   : > { %2849 = vrot.lane.b32.xlu0 %v9349_v40, %s4701_s23 }
 0x400   : > { %2851 = vrot.lane.b32.xlu1 %v9348_v50, %s4701_s23 }
 0x401   : > { %v7439_v42 = vpop.permute.xlu0 %2601 }
 0x402   : > { %v7441_v17 = vpop.permute.xlu1 %2603 }
 0x403   : > { %2951 = vrot.lane.b32.xlu0 %v9363_v16, %s4702_s24 }
 0x404   : > { %2953 = vrot.lane.b32.xlu1 %v9364_v51, %s4702_s24  ;;  %v3673_v51 = vld [vmem:[%s8742_s2 + $0x18] sm:$0xff] }
 0x405   : > { %v7447_v31 = vpop.permute.xlu0 %2605  ;;  %4583 = vmatprep.subr.mxu1 %v3673_v51 }
 0x406   : > { %v7449_v52 = vpop.permute.xlu1 %2607  ;;  %4584 = vmatpush3.msra.mxu1 %v3673_v51  ;;  %v3670_v51 = vld [vmem:[%s8742_s2] sm:$0xff] }
 0x407   : > { %3052 = vrot.lane.b32.xlu0 %v7249_v56, %s4703_s5 }
 0x408   : > { %3054 = vrot.lane.b32.xlu1 %v7254_v54, %s4703_s5  ;;  %v3672_v54 = vld [vmem:[%s8742_s2 + $0x10] sm:$0xff] }
 0x409   : > { %v7458_v5 = vpop.permute.xlu0 %2609  ;;  %4585 = vmatprep.subr.mxu1 %v3672_v54 }
 0x40a   : > { %v7461_v16 = vpop.permute.xlu1 %2611  ;;  %4586 = vmatpush3.msra.mxu1 %v3672_v54 }
 0x40b   : > { %9365 = vst [vmem:[#allocation102_spill] sm:$0xff] %v7461_v16  ;;  %3148 = vrot.lane.b32.xlu0 %v9345_v38, %s4704_s10  ;;  %4587 = vmatprep.subr.mxu1 %v3671_v20 }
 0x40c   : > { %2853 = vrot.lane.b32.xlu1 %v9345_v38, %s4701_s23  ;;  %4588 = vmatpush3.msra.mxu1 %v3671_v20 }
 0x40d   : > { %v7474_v56 = vpop.permute.xlu0 %2613  ;;  %4589 = vmatprep.subr.mxu1 %v3670_v51 }
 0x40e   : > { %9366 = vst [vmem:[#allocation67_spill] sm:$0xff] %v7474_v56  ;;  %v7476_v25 = vpop.permute.xlu1 %2615  ;;  %4590 = vmatpush3.msra.mxu1 %v3670_v51  ;;  %v9373_v56 = vld [vmem:[#allocation86_spill] sm:$0xff] }
 0x40f   : > { %9367 = vst [vmem:[#allocation6_spill] sm:$0xff] %v7476_v25  ;;  %3150 = vrot.lane.b32.xlu0 %v9344_v29, %s4704_s10 }
 0x410   : > { %3238 = vrot.lane.b32.xlu1 %v9368_v63, %s4705_s11 }
 0x411   : > { %v7488_v30 = vpop.permute.xlu0 %2617 }
 0x412   : > { %9369 = vst [vmem:[#allocation103_spill] sm:$0xff] %v7488_v30  ;;  %v7490_v2 = vpop.permute.xlu1 %2619  ;;  %v9393_v30 = vld [vmem:[#allocation60_spill] sm:$0xff] }
 0x413   : > { %9370 = vst [vmem:[#allocation41_spill] sm:$0xff] %v7490_v2  ;;  %2855 = vrot.lane.b32.xlu0 %v9344_v29, %s4701_s23 }
 0x414   : > { %2955 = vrot.lane.b32.xlu1 %v9368_v63, %s4702_s24 }
 0x415   : > { %v7496_v54 = vpop.permute.xlu0 %2621 }
 0x416   : > { %9371 = vst [vmem:[#allocation68_spill] sm:$0xff] %v7496_v54  ;;  %v7498_v25 = vpop.permute.xlu1 %2623 }
 0x417   : > { %9372 = vst [vmem:[#allocation7_spill] sm:$0xff] %v7498_v25  ;;  %3240 = vrot.lane.b32.xlu0 %v9373_v56, %s4705_s11 }
 0x418   : > { %3328 = vrot.lane.b32.xlu1 %v7236_v19, %s4706_s12 }
 0x419   : > { %v7504_v20 = vpop.permute.xlu0 %2625 }
 0x41a   : > { %9374 = vst [vmem:[#allocation104_spill] sm:$0xff] %v7504_v20  ;;  %v7506_v2 = vpop.permute.xlu1 %2627 }
 0x41b   : > { %9375 = vst [vmem:[#allocation42_spill] sm:$0xff] %v7506_v2  ;;  %2957 = vrot.lane.b32.xlu0 %v9373_v56, %s4702_s24 }
 0x41c   : > { %3056 = vrot.lane.b32.xlu1 %v7236_v19, %s4703_s5 }
 0x41d   : > { %v7512_v63 = vpop.permute.xlu0 %2629 }
 0x41e   : > { %9376 = vst [vmem:[#allocation69_spill] sm:$0xff] %v7512_v63  ;;  %v7514_v51 = vpop.permute.xlu1 %2631 }
 0x41f   : > { %9377 = vst [vmem:[#allocation10_spill] sm:$0xff] %v7514_v51  ;;  %3330 = vrot.lane.b32.xlu0 %v7241_v53, %s4706_s12  ;;  %v9382_v51 = vld [vmem:[#allocation88_spill] sm:$0xff] }
 0x420   : > { %3058 = vrot.lane.b32.xlu1 %v7241_v53, %s4703_s5 }
 0x421   : > { %v7520_v25 = vpop.permute.xlu0 %2633 }
 0x422   : > { %9378 = vst [vmem:[#allocation105_spill] sm:$0xff] %v7520_v25  ;;  %v7522_v20 = vpop.permute.xlu1 %2635 }
 0x423   : > { %9379 = vst [vmem:[#allocation118_spill] sm:$0xff] %v7522_v20  ;;  %3152 = vrot.lane.b32.xlu0 %v6896_v44, %s4704_s10 }
 0x424   : > { %2857 = vrot.lane.b32.xlu1 %v6896_v44, %s4701_s23 }
 0x425   : > { %v7528_v19 = vpop.permute.xlu0 %2637 }
 0x426   : > { %9380 = vst [vmem:[#allocation70_spill] sm:$0xff] %v7528_v19  ;;  %v7530_v56 = vpop.permute.xlu1 %2639 }
 0x427   : > { %9381 = vst [vmem:[#allocation11_spill] sm:$0xff] %v7530_v56  ;;  %3154 = vrot.lane.b32.xlu0 %v6893_v60, %s4704_s10  ;;  %v9387_v56 = vld [vmem:[#allocation26_spill] sm:$0xff] }
 0x428   : > { %3242 = vrot.lane.b32.xlu1 %v9382_v51, %s4705_s11 }
 0x429   : > { %v7536_v53 = vpop.permute.xlu0 %2641 }
 0x42a   : > { %9383 = vst [vmem:[#allocation106_spill] sm:$0xff] %v7536_v53  ;;  %v7538_v25 = vpop.permute.xlu1 %2643 }
 0x42b   : > { %9384 = vst [vmem:[#allocation119_spill] sm:$0xff] %v7538_v25  ;;  %2859 = vrot.lane.b32.xlu0 %v6893_v60, %s4701_s23 }
 0x42c   : > { %2959 = vrot.lane.b32.xlu1 %v9382_v51, %s4702_s24 }
 0x42d   : > { %v7544_v20 = vpop.permute.xlu0 %2645 }
 0x42e   : > { %9385 = vst [vmem:[#allocation71_spill] sm:$0xff] %v7544_v20  ;;  %v7546_v19 = vpop.permute.xlu1 %2647 }
 0x42f   : > { %9386 = vst [vmem:[#allocation12_spill] sm:$0xff] %v7546_v19  ;;  %3244 = vrot.lane.b32.xlu0 %v9387_v56, %s4705_s11 }
 0x430   : > { %3332 = vrot.lane.b32.xlu1 %v7262_v58, %s4706_s12 }
 0x431   : > { %v7552_v63 = vpop.permute.xlu0 %2649 }
 0x432   : > { %9388 = vst [vmem:[#allocation107_spill] sm:$0xff] %v7552_v63  ;;  %v7554_v53 = vpop.permute.xlu1 %2651 }
 0x433   : > { %9389 = vst [vmem:[#allocation120_spill] sm:$0xff] %v7554_v53  ;;  %2961 = vrot.lane.b32.xlu0 %v9387_v56, %s4702_s24  ;;  %v9390_v53 = vld [vmem:[#allocation31_spill] sm:$0xff] }
 0x434   : > { %3060 = vrot.lane.b32.xlu1 %v7262_v58, %s4703_s5 }
 0x435   : > { %v7560_v51 = vpop.permute.xlu0 %2758 }
 0x436   : > { %v7562_v20 = vpop.permute.xlu1 %2760 }
 0x437   : > { %3334 = vrot.lane.b32.xlu0 %v7267_v4, %s4706_s12 }
 0x438   : > { %3062 = vrot.lane.b32.xlu1 %v7267_v4, %s4703_s5 }
 0x439   : > { %v7568_v19 = vpop.permute.xlu0 %2762 }
 0x43a   : > { %v7570_v63 = vpop.permute.xlu1 %2764 }
 0x43b   : > { %3156 = vrot.lane.b32.xlu0 %v9351_v28, %s4704_s10 }
 0x43c   : > { %2861 = vrot.lane.b32.xlu1 %v9351_v28, %s4701_s23 }
 0x43d   : > { %v7576_v58 = vpop.permute.xlu0 %2766 }
 0x43e   : > { %v7578_v56 = vpop.permute.xlu1 %2768 }
 0x43f   : > { %3158 = vrot.lane.b32.xlu0 %v6902_v35, %s4704_s10 }
 0x440   : > { %3246 = vrot.lane.b32.xlu1 %v9390_v53, %s4705_s11 }
 0x441   : > { %v7584_v4 = vpop.permute.xlu0 %2770 }
 0x442   : > { %v7586_v25 = vpop.permute.xlu1 %2772 }
 0x443   : > { %2863 = vrot.lane.b32.xlu0 %v6902_v35, %s4701_s23 }
 0x444   : > { %2963 = vrot.lane.b32.xlu1 %v9390_v53, %s4702_s24 }
 0x445   : > { %v7592_v2 = vpop.permute.xlu0 %2774 }
 0x446   : > { %9391 = vst [vmem:[#allocation72_spill] sm:$0xff] %v7592_v2  ;;  %v7594_v54 = vpop.permute.xlu1 %2776 }
 0x447   : > { %9392 = vst [vmem:[#allocation13_spill] sm:$0xff] %v7594_v54  ;;  %3248 = vrot.lane.b32.xlu0 %v9393_v30, %s4705_s11 }
 0x448   : > { %3336 = vrot.lane.b32.xlu1 %v7275_v1, %s4706_s12 }
 0x449   : > { %v7600_v39 = vpop.permute.xlu0 %2778 }
 0x44a   : > { %9394 = vst [vmem:[#allocation108_spill] sm:$0xff] %v7600_v39  ;;  %v7602_v36 = vpop.permute.xlu1 %2780 }
 0x44b   : > { %9395 = vst [vmem:[#allocation121_spill] sm:$0xff] %v7602_v36  ;;  %2965 = vrot.lane.b32.xlu0 %v9393_v30, %s4702_s24 }
 0x44c   : > { %3064 = vrot.lane.b32.xlu1 %v7275_v1, %s4703_s5 }
 0x44d   : > { %v7608_v53 = vpop.permute.xlu0 %2782 }
 0x44e   : > { %9396 = vst [vmem:[#allocation73_spill] sm:$0xff] %v7608_v53  ;;  %v7610_v7 = vpop.permute.xlu1 %2784 }
 0x44f   : > { %9397 = vst [vmem:[#allocation14_spill] sm:$0xff] %v7610_v7  ;;  %3338 = vrot.lane.b32.xlu0 %v7280_v62, %s4706_s12  ;;  %v9402_v7 = vld [vmem:[#allocation32_spill] sm:$0xff] }
 0x450   : > { %3066 = vrot.lane.b32.xlu1 %v7280_v62, %s4703_s5 }
 0x451   : > { %v7616_v54 = vpop.permute.xlu0 %2786 }
 0x452   : > { %9398 = vst [vmem:[#allocation109_spill] sm:$0xff] %v7616_v54  ;;  %v7618_v39 = vpop.permute.xlu1 %2788 }
 0x453   : > { %9399 = vst [vmem:[#allocation122_spill] sm:$0xff] %v7618_v39  ;;  %3160 = vrot.lane.b32.xlu0 %v9353_v6, %s4704_s10 }
 0x454   : > { %2865 = vrot.lane.b32.xlu1 %v9353_v6, %s4701_s23 }
 0x455   : > { %v7624_v30 = vpop.permute.xlu0 %2790 }
 0x456   : > { %9400 = vst [vmem:[#allocation74_spill] sm:$0xff] %v7624_v30  ;;  %v7626_v1 = vpop.permute.xlu1 %2792 }
 0x457   : > { %9401 = vst [vmem:[#allocation15_spill] sm:$0xff] %v7626_v1  ;;  %3162 = vrot.lane.b32.xlu0 %v6922_v59, %s4704_s10  ;;  %v9407_v1 = vld [vmem:[#allocation90_spill] sm:$0xff] }
 0x458   : > { %3250 = vrot.lane.b32.xlu1 %v9402_v7, %s4705_s11 }
 0x459   : > { %v7632_v62 = vpop.permute.xlu0 %2794 }
 0x45a   : > { %9403 = vst [vmem:[#allocation110_spill] sm:$0xff] %v7632_v62  ;;  %v7634_v54 = vpop.permute.xlu1 %2796 }
 0x45b   : > { %9404 = vst [vmem:[#allocation123_spill] sm:$0xff] %v7634_v54  ;;  %2867 = vrot.lane.b32.xlu0 %v6922_v59, %s4701_s23 }
 0x45c   : > { %2967 = vrot.lane.b32.xlu1 %v9402_v7, %s4702_s24 }
 0x45d   : > { %v7640_v39 = vpop.permute.xlu0 %2798 }
 0x45e   : > { %9405 = vst [vmem:[#allocation75_spill] sm:$0xff] %v7640_v39  ;;  %v7642_v30 = vpop.permute.xlu1 %2800 }
 0x45f   : > { %9406 = vst [vmem:[#allocation16_spill] sm:$0xff] %v7642_v30  ;;  %3252 = vrot.lane.b32.xlu0 %v9407_v1, %s4705_s11 }
 0x460   : > { %3340 = vrot.lane.b32.xlu1 %v7288_v12, %s4706_s12 }
 0x461   : > { %v7648_v53 = vpop.permute.xlu0 %2802 }
 0x462   : > { %9408 = vst [vmem:[#allocation39_spill] sm:$0xff] %v7648_v53  ;;  %v7650_v62 = vpop.permute.xlu1 %2804 }
 0x463   : > { %9409 = vst [vmem:[#allocation76_spill] sm:$0xff] %v7650_v62  ;;  %2969 = vrot.lane.b32.xlu0 %v9407_v1, %s4702_s24 }
 0x464   : > { %3068 = vrot.lane.b32.xlu1 %v7288_v12, %s4703_s5 }
 0x465   : > { %v7656_v7 = vpop.permute.xlu0 %2806 }
 0x466   : > { %9410 = vst [vmem:[#allocation19_spill] sm:$0xff] %v7656_v7  ;;  %v7658_v39 = vpop.permute.xlu1 %2808 }
 0x467   : > { %9411 = vst [vmem:[#allocation111_spill] sm:$0xff] %v7658_v39  ;;  %3342 = vrot.lane.b32.xlu0 %v7293_v14, %s4706_s12  ;;  %v9416_v39 = vld [vmem:[#allocation51_spill] sm:$0xff] }
 0x468   : > { %3070 = vrot.lane.b32.xlu1 %v7293_v14, %s4703_s5 }
 0x469   : > { %v7664_v30 = vpop.permute.xlu0 %2810 }
 0x46a   : > { %9412 = vst [vmem:[#allocation77_spill] sm:$0xff] %v7664_v30  ;;  %v7666_v53 = vpop.permute.xlu1 %2812 }
 0x46b   : > { %9413 = vst [vmem:[#allocation20_spill] sm:$0xff] %v7666_v53  ;;  %3164 = vrot.lane.b32.xlu0 %v6953_v3, %s4704_s10 }
 0x46c   : > { %2869 = vrot.lane.b32.xlu1 %v6953_v3, %s4701_s23 }
 0x46d   : > { %v7672_v12 = vpop.permute.xlu0 %2814 }
 0x46e   : > { %9414 = vst [vmem:[#allocation112_spill] sm:$0xff] %v7672_v12  ;;  %v7674_v1 = vpop.permute.xlu1 %2816  ;;  %v9417_v12 = vld [vmem:[#allocation99_spill] sm:$0xff] }
 0x46f   : > { %9415 = vst [vmem:[#allocation78_spill] sm:$0xff] %v7674_v1  ;;  %3166 = vrot.lane.b32.xlu0 %v6950_v41, %s4704_s10 }
 0x470   : > { %3254 = vrot.lane.b32.xlu1 %v9416_v39, %s4705_s11 }
 0x471   : > { %v2850_v14 = vpop.permute.xlu0 %2849 }
 0x472   : > { %v2852_v30 = vpop.permute.xlu1 %2851 }
 0x473   : > { %2871 = vrot.lane.b32.xlu0 %v6950_v41, %s4701_s23 }
 0x474   : > { %2971 = vrot.lane.b32.xlu1 %v9416_v39, %s4702_s24 }
 0x475   : > { %v2952_v53 = vpop.permute.xlu0 %2951 }
 0x476   : > { %v2954_v7 = vpop.permute.xlu1 %2953 }
 0x477   : > { %3256 = vrot.lane.b32.xlu0 %v9417_v12, %s4705_s11 }
 0x478   : > { %3344 = vrot.lane.b32.xlu1 %v7301_v57, %s4706_s12 }
 0x479   : > { %v3053_v1 = vpop.permute.xlu0 %3052 }
 0x47a   : > { %v3055_v62 = vpop.permute.xlu1 %3054 }
 0x47b   : > { %2973 = vrot.lane.b32.xlu0 %v9417_v12, %s4702_s24  ;;  %v3418_v12 = vsel %vm1390_vm4, %v9345_v38, %v7404_v15 }
 0x47c   : > { %3072 = vrot.lane.b32.xlu1 %v7301_v57, %s4703_s5  ;;  %v7705_v57 = vsel %vm1421_vm5, %v3418_v12, %v7560_v51 }
 0x47d   : > { %v3149_v54 = vpop.permute.xlu0 %3148 }
 0x47e   : > { %v2854_v36 = vpop.permute.xlu1 %2853 }
 0x47f   : > { %3346 = vrot.lane.b32.xlu0 %v7306_v8, %s4706_s12 }
 0x480   : > { %3074 = vrot.lane.b32.xlu1 %v7306_v8, %s4703_s5  ;;  %v3478_v8 = vsel %vm1452_vm6, %v7705_v57, %v2850_v14  ;;  %v3419_v14 = vsel %vm1390_vm4, %v9344_v29, %v7409_v18 }
 0x481   : > { %v3151_v39 = vpop.permute.xlu0 %3150  ;;  %v3510_v16 = vsel %vm1485_vm7, %v3478_v8, %v2952_v53 }
 0x482   : > { %v3239_v41 = vpop.permute.xlu1 %3238  ;;  %v3542_v2 = vsel %vm1518_vm8, %v3510_v16, %v3053_v1  ;;  %v7725_v16 = vsel %vm1421_vm5, %v3419_v14, %v7562_v20  ;;  %v9418_v1 = vld [vmem:[#allocation61_spill] sm:$0xff] }
 0x483   : > { %3168 = vrot.lane.b32.xlu0 %v6979_v43, %s4704_s10  ;;  %v3574_v38 = vsel %vm1551_vm9, %v3542_v2, %v3149_v54 }
 0x484   : > { %2873 = vrot.lane.b32.xlu1 %v6979_v43, %s4701_s23  ;;  %v3606_v51 = vsel %vm1584_vm10, %v3574_v38, %v3239_v41  ;;  %v3479_v41 = vsel %vm1452_vm6, %v7725_v16, %v2852_v30 }
 0x485   : > { %v2856_v3 = vpop.permute.xlu0 %2855  ;;  %v3511_v29 = vsel %vm1485_vm7, %v3479_v41, %v2954_v7 }
 0x486   : > { %v2956_v59 = vpop.permute.xlu1 %2955  ;;  %v3543_v54 = vsel %vm1518_vm8, %v3511_v29, %v3055_v62 }
 0x487   : > { %3170 = vrot.lane.b32.xlu0 %v6976_v21, %s4704_s10  ;;  %v3575_v20 = vsel %vm1551_vm9, %v3543_v54, %v3151_v39 }
 0x488   : > { %3258 = vrot.lane.b32.xlu1 %v7015_v24, %s4705_s11 }
 0x489   : > { %v3241_v15 = vpop.permute.xlu0 %3240 }
 0x48a   : > { %v3329_v12 = vpop.permute.xlu1 %3328 }
 0x48b   : > { %2875 = vrot.lane.b32.xlu0 %v6976_v21, %s4701_s23  ;;  %v3638_v53 = vsel %vm1617_vm11, %v3606_v51, %v3329_v12  ;;  %v3420_v51 = vsel %vm1390_vm4, %v9349_v40, %v7429_v11 }
 0x48c   : > { %2975 = vrot.lane.b32.xlu1 %v7015_v24, %s4702_s24  ;;  %4591 = vmatprep.mubr.msk.f32.mxu1 %vm1655_vm12, %v3638_v53  ;;  %v3607_v24 = vsel %vm1584_vm10, %v3575_v20, %v3241_v15 }
 0x48d   : > { %v2958_v2 = vpop.permute.xlu0 %2957 }
 0x48e   : > { %v3057_v18 = vpop.permute.xlu1 %3056 }
 0x48f   : > { %3260 = vrot.lane.b32.xlu0 %v9418_v1, %s4705_s11 }
 0x490   : > { %3348 = vrot.lane.b32.xlu1 %v7314_v55, %s4706_s12 }
 0x491   : > { %v3331_v8 = vpop.permute.xlu0 %3330 }
 0x492   : > { %v3059_v38 = vpop.permute.xlu1 %3058  ;;  %v3639_v30 = vsel %vm1617_vm11, %v3607_v24, %v3331_v8 }
 0x493   : > { %2977 = vrot.lane.b32.xlu0 %v9418_v1, %s4702_s24  ;;  %4592 = vmatmul.mubr.msk.f32.vlgmr.msra.gmra.mxu1 %vm1655_vm12, %v3639_v30 }
 0x494   : > { %3076 = vrot.lane.b32.xlu1 %v7314_v55, %s4703_s5  ;;  %v3450_v55 = vsel %vm1421_vm5, %v3420_v51, %v7568_v19  ;;  %v9419_v51 = vld [vmem:[#allocation52_spill] sm:$0xff] }
 0x495   : > { %v3153_v62 = vpop.permute.xlu0 %3152  ;;  %v3480_v14 = vsel %vm1452_vm6, %v3450_v55, %v2854_v36  ;;  %v3421_v36 = vsel %vm1390_vm4, %v9348_v50, %v7433_v0  ;;  %v9420_v55 = vld [vmem:[#allocation91_spill] sm:$0xff] }
 0x496   : > { %v2858_v7 = vpop.permute.xlu1 %2857 }
 0x497   : > { %3350 = vrot.lane.b32.xlu0 %v7319_v49, %s4706_s12 }
 0x498   : > { %3078 = vrot.lane.b32.xlu1 %v7319_v49, %s4703_s5  ;;  %v3512_v49 = vsel %vm1485_vm7, %v3480_v14, %v2956_v59 }
 0x499   : > { %v3155_v39 = vpop.permute.xlu0 %3154  ;;  %v3544_v41 = vsel %vm1518_vm8, %v3512_v49, %v3057_v18  ;;  %v3451_v18 = vsel %vm1421_vm5, %v3421_v36, %v7570_v63  ;;  %v9421_v36 = vld [vmem:[#allocation29_spill] sm:$0xff] }
 0x49a   : > { %v3243_v15 = vpop.permute.xlu1 %3242  ;;  %v3576_v40 = vsel %vm1551_vm9, %v3544_v41, %v3153_v62  ;;  %v3481_v54 = vsel %vm1452_vm6, %v3451_v18, %v2856_v3 }
 0x49b   : > { %3172 = vrot.lane.b32.xlu0 %v7001_v34, %s4704_s10  ;;  %v3608_v29 = vsel %vm1584_vm10, %v3576_v40, %v3243_v15  ;;  %v3513_v20 = vsel %vm1485_vm7, %v3481_v54, %v2958_v2 }
 0x49c   : > { %2877 = vrot.lane.b32.xlu1 %v7001_v34, %s4701_s23  ;;  %v3545_v50 = vsel %vm1518_vm8, %v3513_v20, %v3059_v38 }
 0x49d   : > { %v2860_v12 = vpop.permute.xlu0 %2859  ;;  %v3577_v0 = vsel %vm1551_vm9, %v3545_v50, %v3155_v39 }
 0x49e   : > { %v2960_v53 = vpop.permute.xlu1 %2959 }
 0x49f   : > { %3174 = vrot.lane.b32.xlu0 %v6998_v47, %s4704_s10 }
 0x4a0   : > { %3262 = vrot.lane.b32.xlu1 %v7039_v22, %s4705_s11 }
 0x4a1   : > { %v3245_v11 = vpop.permute.xlu0 %3244 }
 0x4a2   : > { %v3333_v19 = vpop.permute.xlu1 %3332 }
 0x4a3   : > { %v3640_v59 = vsel %vm1617_vm11, %v3608_v29, %v3333_v19  ;;  %2879 = vrot.lane.b32.xlu0 %v6998_v47, %s4701_s23 }
 0x4a4   : > { %2979 = vrot.lane.b32.xlu1 %v7039_v22, %s4702_s24  ;;  %4594 = vmatprep.mubr.msk.f32.mxu1 %vm1655_vm12, %v3640_v59  ;;  %v3609_v22 = vsel %vm1584_vm10, %v3577_v0, %v3245_v11  ;;  %v3422_v0 = vsel %vm1390_vm4, %v6896_v44, %v7439_v42 }
 0x4a5   : > { %v2962_v1 = vpop.permute.xlu0 %2961 }
 0x4a6   : > { %v3061_v24 = vpop.permute.xlu1 %3060 }
 0x4a7   : > { %3264 = vrot.lane.b32.xlu0 %v7050_v27, %s4705_s11 }
 0x4a8   : > { %3352 = vrot.lane.b32.xlu1 %v7327_v46, %s4706_s12 }
 0x4a9   : > { %v3335_v63 = vpop.permute.xlu0 %3334 }
 0x4aa   : > { %v3063_v8 = vpop.permute.xlu1 %3062  ;;  %v3641_v3 = vsel %vm1617_vm11, %v3609_v22, %v3335_v63 }
 0x4ab   : > { %2981 = vrot.lane.b32.xlu0 %v7050_v27, %s4702_s24  ;;  %4595 = vmatmul.mubr.msk.f32.gmra.mxu1 %vm1655_vm12, %v3641_v3  ;;  %v9422_v3 = vld [vmem:[#allocation30_spill] sm:$0xff] }
 0x4ac   : > { %3080 = vrot.lane.b32.xlu1 %v7327_v46, %s4703_s5  ;;  %v3482_v46 = vsel %vm1452_vm6, %v7705_v57, %v2858_v7  ;;  %v3483_v57 = vsel %vm1452_vm6, %v7725_v16, %v2860_v12 }
 0x4ad   : > { %v3157_v2 = vpop.permute.xlu0 %3156  ;;  %v3514_v15 = vsel %vm1485_vm7, %v3482_v46, %v2960_v53  ;;  %v3515_v53 = vsel %vm1485_vm7, %v3483_v57, %v2962_v1 }
 0x4ae   : > { %v2862_v38 = vpop.permute.xlu1 %2861  ;;  %v3547_v19 = vsel %vm1518_vm8, %v3515_v53, %v3063_v8 }
 0x4af   : > { %3354 = vrot.lane.b32.xlu0 %v7332_v33, %s4706_s12 }
 0x4b0   : > { %3082 = vrot.lane.b32.xlu1 %v7332_v33, %s4703_s5  ;;  %v3546_v33 = vsel %vm1518_vm8, %v3514_v15, %v3061_v24 }
 0x4b1   : > { %v3159_v30 = vpop.permute.xlu0 %3158  ;;  %v3578_v14 = vsel %vm1551_vm9, %v3546_v33, %v3157_v2 }
 0x4b2   : > { %v3247_v62 = vpop.permute.xlu1 %3246  ;;  %v3579_v59 = vsel %vm1551_vm9, %v3547_v19, %v3159_v30  ;;  %v9423_v30 = vld [vmem:[#allocation100_spill] sm:$0xff] }
 0x4b3   : > { %3176 = vrot.lane.b32.xlu0 %v7023_v26, %s4704_s10  ;;  %v3610_v41 = vsel %vm1584_vm10, %v3578_v14, %v3247_v62 }
 0x4b4   : > { %2881 = vrot.lane.b32.xlu1 %v7023_v26, %s4701_s23 }
 0x4b5   : > { %v2864_v27 = vpop.permute.xlu0 %2863 }
 0x4b6   : > { %v2964_v39 = vpop.permute.xlu1 %2963 }
 0x4b7   : > { %3178 = vrot.lane.b32.xlu0 %v9419_v51, %s4704_s10 }
 0x4b8   : > { %3266 = vrot.lane.b32.xlu1 %v9420_v55, %s4705_s11 }
 0x4b9   : > { %v3249_v49 = vpop.permute.xlu0 %3248 }
 0x4ba   : > { %v3337_v40 = vpop.permute.xlu1 %3336  ;;  %v3611_v18 = vsel %vm1584_vm10, %v3579_v59, %v3249_v49 }
 0x4bb   : > { %v3642_v11 = vsel %vm1617_vm11, %v3610_v41, %v3337_v40  ;;  %2883 = vrot.lane.b32.xlu0 %v9419_v51, %s4701_s23 }
 0x4bc   : > { %2983 = vrot.lane.b32.xlu1 %v9420_v55, %s4702_s24  ;;  %4597 = vmatprep.mubr.msk.f32.mxu1 %vm1655_vm12, %v3642_v11 }
 0x4bd   : > { %v2966_v7 = vpop.permute.xlu0 %2965 }
 0x4be   : > { %v3065_v29 = vpop.permute.xlu1 %3064 }
 0x4bf   : > { %3268 = vrot.lane.b32.xlu0 %v9421_v36, %s4705_s11 }
 0x4c0   : > { %3356 = vrot.lane.b32.xlu1 %v7340_v10, %s4706_s12 }
 0x4c1   : > { %v3339_v54 = vpop.permute.xlu0 %3338 }
 0x4c2   : > { %v3067_v20 = vpop.permute.xlu1 %3066  ;;  %v3643_v16 = vsel %vm1617_vm11, %v3611_v18, %v3339_v54  ;;  %v9425_v18 = vld [vmem:[#allocation22_spill] sm:$0xff] }
 0x4c3   : > { %2985 = vrot.lane.b32.xlu0 %v9421_v36, %s4702_s24  ;;  %4598 = vmatmul.mubr.msk.f32.gmra.mxu1 %vm1655_vm12, %v3643_v16 }
 0x4c4   : > { %3084 = vrot.lane.b32.xlu1 %v7340_v10, %s4703_s5  ;;  %v3452_v10 = vsel %vm1421_vm5, %v3422_v0, %v7576_v58 }
 0x4c5   : > { %v3161_v12 = vpop.permute.xlu0 %3160  ;;  %v3484_v63 = vsel %vm1452_vm6, %v3452_v10, %v2862_v38  ;;  %v3423_v38 = vsel %vm1390_vm4, %v6893_v60, %v7441_v17  ;;  %v9424_v17 = vld [vmem:[#allocation62_spill] sm:$0xff] }
 0x4c6   : > { %v2866_v1 = vpop.permute.xlu1 %2865 }
 0x4c7   : > { %3358 = vrot.lane.b32.xlu0 %v7345_v23, %s4706_s12 }
 0x4c8   : > { %3086 = vrot.lane.b32.xlu1 %v7345_v23, %s4703_s5  ;;  %v3516_v23 = vsel %vm1485_vm7, %v3484_v63, %v2964_v39  ;;  %v3453_v39 = vsel %vm1421_vm5, %v3423_v38, %v7578_v56 }
 0x4c9   : > { %v3163_v24 = vpop.permute.xlu0 %3162  ;;  %v3548_v2 = vsel %vm1518_vm8, %v3516_v23, %v3065_v29  ;;  %v3485_v15 = vsel %vm1452_vm6, %v3453_v39, %v2864_v27  ;;  %v3424_v29 = vsel %vm1390_vm4, %v9351_v28, %v7447_v31 }
 0x4ca   : > { %v3251_v50 = vpop.permute.xlu1 %3250  ;;  %v3580_v44 = vsel %vm1551_vm9, %v3548_v2, %v3161_v12  ;;  %v3517_v55 = vsel %vm1485_vm7, %v3485_v15, %v2966_v7  ;;  %v3425_v12 = vsel %vm1390_vm4, %v6902_v35, %v7449_v52  ;;  %v9427_v52 = vld [vmem:[#allocation36_spill] sm:$0xff] }
 0x4cb   : > { %3180 = vrot.lane.b32.xlu0 %v7047_v32, %s4704_s10  ;;  %v3612_v62 = vsel %vm1584_vm10, %v3580_v44, %v3251_v50  ;;  %v3549_v60 = vsel %vm1518_vm8, %v3517_v55, %v3067_v20  ;;  %v9426_v20 = vld [vmem:[#allocation35_spill] sm:$0xff] }
 0x4cc   : > { %2885 = vrot.lane.b32.xlu1 %v7047_v32, %s4701_s23  ;;  %v3581_v49 = vsel %vm1551_vm9, %v3549_v60, %v3163_v24  ;;  %v3455_v24 = vsel %vm1421_vm5, %v3425_v12, %v7586_v25 }
 0x4cd   : > { %v2868_v22 = vpop.permute.xlu0 %2867 }
 0x4ce   : > { %v2968_v8 = vpop.permute.xlu1 %2967  ;;  %v3487_v50 = vsel %vm1452_vm6, %v3455_v24, %v2868_v22  ;;  %v9437_v24 = vld [vmem:[#allocation92_spill] sm:$0xff] }
 0x4cf   : > { %3182 = vrot.lane.b32.xlu0 %v9422_v3, %s4704_s10 }
 0x4d0   : > { %3270 = vrot.lane.b32.xlu1 %v9423_v30, %s4705_s11 }
 0x4d1   : > { %v3253_v42 = vpop.permute.xlu0 %3252 }
 0x4d2   : > { %v3341_v58 = vpop.permute.xlu1 %3340  ;;  %v3613_v56 = vsel %vm1584_vm10, %v3581_v49, %v3253_v42  ;;  %v9431_v49 = vld [vmem:[#allocation102_spill] sm:$0xff] }
 0x4d3   : > { %v3644_v46 = vsel %vm1617_vm11, %v3612_v62, %v3341_v58  ;;  %2887 = vrot.lane.b32.xlu0 %v9422_v3, %s4701_s23  ;;  %v3426_v58 = vsel %vm1390_vm4, %v9353_v6, %v7458_v5 }
 0x4d4   : > { %2987 = vrot.lane.b32.xlu1 %v9423_v30, %s4702_s24  ;;  %4600 = vmatprep.mubr.msk.f32.mxu1 %vm1655_vm12, %v3644_v46 }
 0x4d5   : > { %v2970_v33 = vpop.permute.xlu0 %2969 }
 0x4d6   : > { %v3069_v14 = vpop.permute.xlu1 %3068  ;;  %v3519_v10 = vsel %vm1485_vm7, %v3487_v50, %v2970_v33  ;;  %v9429_v33 = vld [vmem:[#allocation21_spill] sm:$0xff]  ;;  %v9438_v50 = vld [vmem:[#allocation67_spill] sm:$0xff] }
 0x4d7   : > { %3272 = vrot.lane.b32.xlu0 %v9424_v17, %s4705_s11 }
 0x4d8   : > { %3360 = vrot.lane.b32.xlu1 %v7353_v13, %s4706_s12 }
 0x4d9   : > { %v3343_v41 = vpop.permute.xlu0 %3342 }
 0x4da   : > { %v3071_v40 = vpop.permute.xlu1 %3070  ;;  %v3645_v27 = vsel %vm1617_vm11, %v3613_v56, %v3343_v41  ;;  %v9432_v56 = vld [vmem:[#allocation50_spill] sm:$0xff] }
 0x4db   : > { %2989 = vrot.lane.b32.xlu0 %v9424_v17, %s4702_s24  ;;  %4601 = vmatmul.mubr.msk.f32.gmra.mxu1 %vm1655_vm12, %v3645_v27  ;;  %v3551_v35 = vsel %vm1518_vm8, %v3519_v10, %v3071_v40  ;;  %v3427_v41 = vsel %vm1390_vm4, %v9432_v56, %v9431_v49  ;;  %v9433_v27 = vld [vmem:[#allocation13_spill] sm:$0xff]  ;;  %v9446_v49 = vld [vmem:[#allocation55_spill] sm:$0xff] }
 0x4dc   : > { %3088 = vrot.lane.b32.xlu1 %v7353_v13, %s4703_s5  ;;  %v3454_v13 = vsel %vm1421_vm5, %v3424_v29, %v7584_v4 }
 0x4dd   : > { %v3165_v11 = vpop.permute.xlu0 %3164  ;;  %v3486_v36 = vsel %vm1452_vm6, %v3454_v13, %v2866_v1 }
 0x4de   : > { %v2870_v57 = vpop.permute.xlu1 %2869 }
 0x4df   : > { %3362 = vrot.lane.b32.xlu0 %v7358_v9, %s4706_s12 }
 0x4e0   : > { %3090 = vrot.lane.b32.xlu1 %v7358_v9, %s4703_s5  ;;  %v3518_v9 = vsel %vm1485_vm7, %v3486_v36, %v2968_v8  ;;  %v9434_v36 = vld [vmem:[#allocation3_spill] sm:$0xff] }
 0x4e1   : > { %v3167_v7 = vpop.permute.xlu0 %3166  ;;  %v3550_v54 = vsel %vm1518_vm8, %v3518_v9, %v3069_v14  ;;  %v9430_v14 = vld [vmem:[#allocation63_spill] sm:$0xff]  ;;  %v9435_v9 = vld [vmem:[#allocation101_spill] sm:$0xff] }
 0x4e2   : > { %v3255_v53 = vpop.permute.xlu1 %3254  ;;  %v3582_v28 = vsel %vm1551_vm9, %v3550_v54, %v3165_v11  ;;  %v3583_v8 = vsel %vm1551_vm9, %v3551_v35, %v3167_v7  ;;  %v3457_v11 = vsel %vm1421_vm5, %v3427_v41, %v9433_v27  ;;  %v9447_v41 = vld [vmem:[#allocation66_spill] sm:$0xff] }
 0x4e3   : > { %3184 = vrot.lane.b32.xlu0 %v7071_v45, %s4704_s10  ;;  %v3614_v16 = vsel %vm1584_vm10, %v3582_v28, %v3255_v53 }
 0x4e4   : > { %2889 = vrot.lane.b32.xlu1 %v7071_v45, %s4701_s23 }
 0x4e5   : > { %v2872_v19 = vpop.permute.xlu0 %2871 }
 0x4e6   : > { %v2972_v59 = vpop.permute.xlu1 %2971 }
 0x4e7   : > { %3186 = vrot.lane.b32.xlu0 %v9425_v18, %s4704_s10 }
 0x4e8   : > { %3274 = vrot.lane.b32.xlu1 %v9426_v20, %s4705_s11 }
 0x4e9   : > { %v3257_v31 = vpop.permute.xlu0 %3256 }
 0x4ea   : > { %v3345_v4 = vpop.permute.xlu1 %3344  ;;  %v3615_v25 = vsel %vm1584_vm10, %v3583_v8, %v3257_v31 }
 0x4eb   : > { %v3646_v1 = vsel %vm1617_vm11, %v3614_v16, %v3345_v4  ;;  %2891 = vrot.lane.b32.xlu0 %v9425_v18, %s4701_s23  ;;  %v9436_v4 = vld [vmem:[#allocation40_spill] sm:$0xff] }
 0x4ec   : > { %2991 = vrot.lane.b32.xlu1 %v9426_v20, %s4702_s24  ;;  %4603 = vmatprep.mubr.msk.f32.mxu1 %vm1655_vm12, %v3646_v1 }
 0x4ed   : > { %v2974_v0 = vpop.permute.xlu0 %2973 }
 0x4ee   : > { %v3073_v63 = vpop.permute.xlu1 %3072 }
 0x4ef   : > { %3276 = vrot.lane.b32.xlu0 %v9427_v52, %s4705_s11 }
 0x4f0   : > { %3364 = vrot.lane.b32.xlu1 %v7366_v48, %s4706_s12 }
 0x4f1   : > { %v3347_v23 = vpop.permute.xlu0 %3346 }
 0x4f2   : > { %v3075_v2 = vpop.permute.xlu1 %3074  ;;  %v3647_v22 = vsel %vm1617_vm11, %v3615_v25, %v3347_v23 }
 0x4f3   : > { %2993 = vrot.lane.b32.xlu0 %v9427_v52, %s4702_s24  ;;  %4604 = vmatmul.mubr.msk.f32.gmra.mxu1 %vm1655_vm12, %v3647_v22 }
 0x4f4   : > { %3092 = vrot.lane.b32.xlu1 %v7366_v48, %s4703_s5  ;;  %v9428_v48 = vld [vmem:[#allocation72_spill] sm:$0xff] }
 0x4f5   : > { %v3169_v30 = vpop.permute.xlu0 %3168  ;;  %v3456_v38 = vsel %vm1421_vm5, %v3426_v58, %v9428_v48 }
 0x4f6   : > { %v2874_v44 = vpop.permute.xlu1 %2873  ;;  %v3488_v39 = vsel %vm1452_vm6, %v3456_v38, %v2870_v57  ;;  %v3489_v57 = vsel %vm1452_vm6, %v3457_v11, %v2872_v19  ;;  %v9443_v38 = vld [vmem:[#allocation6_spill] sm:$0xff] }
 0x4f7   : > { %3366 = vrot.lane.b32.xlu0 %v7371_v37, %s4706_s12  ;;  %v3521_v53 = vsel %vm1485_vm7, %v3489_v57, %v2974_v0  ;;  %v9439_v0 = vld [vmem:[#allocation98_spill] sm:$0xff] }
 0x4f8   : > { %3094 = vrot.lane.b32.xlu1 %v7371_v37, %s4703_s5  ;;  %v3520_v37 = vsel %vm1485_vm7, %v3488_v39, %v2972_v59  ;;  %v3553_v13 = vsel %vm1518_vm8, %v3521_v53, %v3075_v2  ;;  %v3428_v10 = vsel %vm1390_vm4, %v9439_v0, %v9438_v50  ;;  %v9441_v2 = vld [vmem:[#allocation87_spill] sm:$0xff]  ;;  %v9444_v39 = vld [vmem:[#allocation89_spill] sm:$0xff]  ;;  %v9448_v53 = vld [vmem:[#allocation8_spill] sm:$0xff] }
 0x4f9   : > { %v3171_v42 = vpop.permute.xlu0 %3170  ;;  %v3552_v55 = vsel %vm1518_vm8, %v3520_v37, %v3073_v63  ;;  %v9440_v63 = vld [vmem:[#allocation108_spill] sm:$0xff]  ;;  %v9445_v37 = vld [vmem:[#allocation121_spill] sm:$0xff] }
 0x4fa   : > { %v3259_v62 = vpop.permute.xlu1 %3258  ;;  %v3584_v5 = vsel %vm1551_vm9, %v3552_v55, %v3169_v30  ;;  %v3585_v59 = vsel %vm1551_vm9, %v3553_v13, %v3171_v42  ;;  %v3458_v35 = vsel %vm1421_vm5, %v3428_v10, %v9440_v63  ;;  %v9442_v30 = vld [vmem:[#allocation93_spill] sm:$0xff] }
 0x4fb   : > { %3188 = vrot.lane.b32.xlu0 %v7089_v61, %s4704_s10  ;;  %v3616_v60 = vsel %vm1584_vm10, %v3584_v5, %v3259_v62  ;;  %v3490_v8 = vsel %vm1452_vm6, %v3458_v35, %v2874_v44  ;;  %v3429_v44 = vsel %vm1390_vm4, %v9444_v39, %v9443_v38  ;;  %v9453_v50 = vld [vmem:[#allocation65_spill] sm:$0xff]  ;;  %v9457_v38 = vld [vmem:[#allocation56_spill] sm:$0xff] }
 0x4fc   : > { %2893 = vrot.lane.b32.xlu1 %v7089_v61, %s4701_s23  ;;  %v3459_v55 = vsel %vm1421_vm5, %v3429_v44, %v9445_v37  ;;  %v9454_v35 = vld [vmem:[#allocation41_spill] sm:$0xff] }
 0x4fd   : > { %v2876_v46 = vpop.permute.xlu0 %2875 }
 0x4fe   : > { %v2976_v15 = vpop.permute.xlu1 %2975 }
 0x4ff   : > { %3190 = vrot.lane.b32.xlu0 %v9429_v33, %s4704_s10  ;;  %v3522_v23 = vsel %vm1485_vm7, %v3490_v8, %v2976_v15 }
 0x500   : > { %3278 = vrot.lane.b32.xlu1 %v9430_v14, %s4705_s11 }
 0x501   : > { %v3261_v6 = vpop.permute.xlu0 %3260 }
 0x502   : > { %v3349_v17 = vpop.permute.xlu1 %3348  ;;  %v3617_v54 = vsel %vm1584_vm10, %v3585_v59, %v3261_v6  ;;  %v9450_v59 = vld [vmem:[#allocation103_spill] sm:$0xff] }
 0x503   : > { %v3648_v40 = vsel %vm1617_vm11, %v3616_v60, %v3349_v17  ;;  %2895 = vrot.lane.b32.xlu0 %v9429_v33, %s4701_s23 }
 0x504   : > { %2995 = vrot.lane.b32.xlu1 %v9430_v14, %s4702_s24  ;;  %4606 = vmatprep.mubr.msk.f32.mxu1 %vm1655_vm12, %v3648_v40  ;;  %v3491_v14 = vsel %vm1452_vm6, %v3459_v55, %v2876_v46 }
 0x505   : > { %v2978_v7 = vpop.permute.xlu0 %2977 }
 0x506   : > { %v3077_v29 = vpop.permute.xlu1 %3076  ;;  %v3523_v6 = vsel %vm1485_vm7, %v3491_v14, %v2978_v7  ;;  %v9458_v14 = vld [vmem:[#allocation84_spill] sm:$0xff] }
 0x507   : > { %3280 = vrot.lane.b32.xlu0 %v9434_v36, %s4705_s11  ;;  %v3554_v22 = vsel %vm1518_vm8, %v3522_v23, %v3077_v29 }
 0x508   : > { %3368 = vrot.lane.b32.xlu1 %v9435_v9, %s4706_s12 }
 0x509   : > { %v3351_v20 = vpop.permute.xlu0 %3350 }
 0x50a   : > { %v3079_v28 = vpop.permute.xlu1 %3078  ;;  %v3649_v19 = vsel %vm1617_vm11, %v3617_v54, %v3351_v20  ;;  %v9451_v54 = vld [vmem:[#allocation73_spill] sm:$0xff] }
 0x50b   : > { %2997 = vrot.lane.b32.xlu0 %v9434_v36, %s4702_s24  ;;  %4607 = vmatmul.mubr.msk.f32.gmra.mxu1 %vm1655_vm12, %v3649_v19  ;;  %v3555_v17 = vsel %vm1518_vm8, %v3523_v6, %v3079_v28  ;;  %v9449_v36 = vld [vmem:[#allocation53_spill] sm:$0xff] }
 0x50c   : > { %3096 = vrot.lane.b32.xlu1 %v9435_v9, %s4703_s5  ;;  %v3430_v9 = vsel %vm1390_vm4, %v6979_v43, %v9450_v59 }
 0x50d   : > { %v3173_v31 = vpop.permute.xlu0 %3172  ;;  %v3460_v20 = vsel %vm1421_vm5, %v3430_v9, %v9451_v54  ;;  %v9464_v54 = vld [vmem:[#allocation7_spill] sm:$0xff] }
 0x50e   : > { %v2878_v16 = vpop.permute.xlu1 %2877  ;;  %v3586_v42 = vsel %vm1551_vm9, %v3554_v22, %v3173_v31 }
 0x50f   : > { %3370 = vrot.lane.b32.xlu0 %v9436_v4, %s4706_s12  ;;  %v3492_v19 = vsel %vm1452_vm6, %v3460_v20, %v2878_v16  ;;  %v3431_v16 = vsel %vm1390_vm4, %v6976_v21, %v9454_v35 }
 0x510   : > { %3098 = vrot.lane.b32.xlu1 %v9436_v4, %s4703_s5 }
 0x511   : > { %v3175_v12 = vpop.permute.xlu0 %3174 }
 0x512   : > { %v3263_v1 = vpop.permute.xlu1 %3262  ;;  %v3587_v56 = vsel %vm1551_vm9, %v3555_v17, %v3175_v12  ;;  %v9452_v12 = vld [vmem:[#allocation28_spill] sm:$0xff] }
 0x513   : > { %3192 = vrot.lane.b32.xlu0 %v9437_v24, %s4704_s10  ;;  %v3618_v58 = vsel %vm1584_vm10, %v3586_v42, %v3263_v1  ;;  %v9460_v17 = vld [vmem:[#allocation68_spill] sm:$0xff] }
 0x514   : > { %2897 = vrot.lane.b32.xlu1 %v9437_v24, %s4701_s23 }
 0x515   : > { %v2880_v52 = vpop.permute.xlu0 %2879 }
 0x516   : > { %v2980_v25 = vpop.permute.xlu1 %2979 }
 0x517   : > { %3194 = vrot.lane.b32.xlu0 %v9441_v2, %s4704_s10  ;;  %v3524_v4 = vsel %vm1485_vm7, %v3492_v19, %v2980_v25  ;;  %v9455_v25 = vld [vmem:[#allocation14_spill] sm:$0xff] }
 0x518   : > { %3282 = vrot.lane.b32.xlu1 %v9442_v30, %s4705_s11  ;;  %v3461_v23 = vsel %vm1421_vm5, %v3431_v16, %v9455_v25  ;;  %v9465_v19 = vld [vmem:[#allocation122_spill] sm:$0xff] }
 0x519   : > { %v3265_v62 = vpop.permute.xlu0 %3264  ;;  %v3493_v22 = vsel %vm1452_vm6, %v3461_v23, %v2880_v52 }
 0x51a   : > { %v3353_v48 = vpop.permute.xlu1 %3352  ;;  %v3619_v40 = vsel %vm1584_vm10, %v3587_v56, %v3265_v62  ;;  %v9461_v56 = vld [vmem:[#allocation109_spill] sm:$0xff] }
 0x51b   : > { %v3650_v15 = vsel %vm1617_vm11, %v3618_v58, %v3353_v48  ;;  %2899 = vrot.lane.b32.xlu0 %v9441_v2, %s4701_s23  ;;  %v9456_v58 = vld [vmem:[#allocation9_spill] sm:$0xff] }
 0x51c   : > { %2999 = vrot.lane.b32.xlu1 %v9442_v30, %s4702_s24  ;;  %4609 = vmatprep.mubr.msk.f32.mxu1 %vm1655_vm12, %v3650_v15 }
 0x51d   : > { %v2982_v5 = vpop.permute.xlu0 %2981 }
 0x51e   : > { %v3081_v60 = vpop.permute.xlu1 %3080  ;;  %v3525_v42 = vsel %vm1485_vm7, %v3493_v22, %v2982_v5  ;;  %v9468_v22 = vld [vmem:[#allocation5_spill] sm:$0xff] }
 0x51f   : > { %3284 = vrot.lane.b32.xlu0 %v9446_v49, %s4705_s11  ;;  %v3556_v1 = vsel %vm1518_vm8, %v3524_v4, %v3081_v60  ;;  %v9459_v60 = vld [vmem:[#allocation38_spill] sm:$0xff] }
 0x520   : > { %3372 = vrot.lane.b32.xlu1 %v9447_v41, %s4706_s12 }
 0x521   : > { %v3355_v27 = vpop.permute.xlu0 %3354 }
 0x522   : > { %v3083_v11 = vpop.permute.xlu1 %3082  ;;  %v3651_v46 = vsel %vm1617_vm11, %v3619_v40, %v3355_v27 }
 0x523   : > { %3001 = vrot.lane.b32.xlu0 %v9446_v49, %s4702_s24  ;;  %4610 = vmatmul.mubr.msk.f32.gmra.mxu1 %vm1655_vm12, %v3651_v46  ;;  %v3557_v21 = vsel %vm1518_vm8, %v3525_v42, %v3083_v11  ;;  %v3432_v49 = vsel %vm1390_vm4, %v7001_v34, %v9460_v17 }
 0x524   : > { %3100 = vrot.lane.b32.xlu1 %v9447_v41, %s4703_s5  ;;  %v3462_v41 = vsel %vm1421_vm5, %v3432_v49, %v9461_v56  ;;  %v9474_v56 = vld [vmem:[#allocation42_spill] sm:$0xff] }
 0x525   : > { %v3177_v57 = vpop.permute.xlu0 %3176 }
 0x526   : > { %v2882_v7 = vpop.permute.xlu1 %2881  ;;  %v3588_v43 = vsel %vm1551_vm9, %v3556_v1, %v3177_v57  ;;  %v9462_v57 = vld [vmem:[#allocation97_spill] sm:$0xff] }
 0x527   : > { %3374 = vrot.lane.b32.xlu0 %v9448_v53, %s4706_s12  ;;  %v3494_v27 = vsel %vm1452_vm6, %v3462_v41, %v2882_v7  ;;  %v3433_v7 = vsel %vm1390_vm4, %v6998_v47, %v9464_v54 }
 0x528   : > { %3102 = vrot.lane.b32.xlu1 %v9448_v53, %s4703_s5 }
 0x529   : > { %v3179_v29 = vpop.permute.xlu0 %3178 }
 0x52a   : > { %v3267_v13 = vpop.permute.xlu1 %3266  ;;  %v3589_v48 = vsel %vm1551_vm9, %v3557_v21, %v3179_v29  ;;  %v9463_v29 = vld [vmem:[#allocation4_spill] sm:$0xff] }
 0x52b   : > { %3196 = vrot.lane.b32.xlu0 %v9449_v36, %s4704_s10  ;;  %v3620_v10 = vsel %vm1584_vm10, %v3588_v43, %v3267_v13  ;;  %v9470_v21 = vld [vmem:[#allocation104_spill] sm:$0xff] }
 0x52c   : > { %2901 = vrot.lane.b32.xlu1 %v9449_v36, %s4701_s23 }
 0x52d   : > { %v2884_v28 = vpop.permute.xlu0 %2883 }
 0x52e   : > { %v2984_v31 = vpop.permute.xlu1 %2983 }
 0x52f   : > { %3198 = vrot.lane.b32.xlu0 %v9452_v12, %s4704_s10  ;;  %v3526_v46 = vsel %vm1485_vm7, %v3494_v27, %v2984_v31  ;;  %v3463_v31 = vsel %vm1421_vm5, %v3433_v7, %v9465_v19  ;;  %v9475_v27 = vld [vmem:[#allocation15_spill] sm:$0xff] }
 0x530   : > { %3286 = vrot.lane.b32.xlu1 %v9453_v50, %s4705_s11  ;;  %v3495_v4 = vsel %vm1452_vm6, %v3463_v31, %v2884_v28 }
 0x531   : > { %v3269_v0 = vpop.permute.xlu0 %3268 }
 0x532   : > { %v3357_v63 = vpop.permute.xlu1 %3356  ;;  %v3621_v39 = vsel %vm1584_vm10, %v3589_v48, %v3269_v0  ;;  %v9466_v0 = vld [vmem:[#allocation83_spill] sm:$0xff]  ;;  %v9471_v48 = vld [vmem:[#allocation74_spill] sm:$0xff] }
 0x533   : > { %v3652_v8 = vsel %vm1617_vm11, %v3620_v10, %v3357_v63  ;;  %2903 = vrot.lane.b32.xlu0 %v9452_v12, %s4701_s23  ;;  %v9467_v63 = vld [vmem:[#allocation85_spill] sm:$0xff] }
 0x534   : > { %3003 = vrot.lane.b32.xlu1 %v9453_v50, %s4702_s24  ;;  %4612 = vmatprep.mubr.msk.f32.mxu1 %vm1655_vm12, %v3652_v8 }
 0x535   : > { %v2986_v30 = vpop.permute.xlu0 %2985 }
 0x536   : > { %v3085_v62 = vpop.permute.xlu1 %3084  ;;  %v3527_v50 = vsel %vm1485_vm7, %v3495_v4, %v2986_v30  ;;  %v9478_v4 = vld [vmem:[#allocation37_spill] sm:$0xff] }
 0x537   : > { %3288 = vrot.lane.b32.xlu0 %v9456_v58, %s4705_s11  ;;  %v3558_v53 = vsel %vm1518_vm8, %v3526_v46, %v3085_v62  ;;  %v9469_v62 = vld [vmem:[#allocation54_spill] sm:$0xff] }
 0x538   : > { %3376 = vrot.lane.b32.xlu1 %v9457_v38, %s4706_s12 }
 0x539   : > { %v3359_v44 = vpop.permute.xlu0 %3358 }
 0x53a   : > { %v3087_v15 = vpop.permute.xlu1 %3086  ;;  %v3653_v52 = vsel %vm1617_vm11, %v3621_v39, %v3359_v44 }
 0x53b   : > { %3005 = vrot.lane.b32.xlu0 %v9456_v58, %s4702_s24  ;;  %4613 = vmatmul.mubr.msk.f32.gmra.mxu1 %vm1655_vm12, %v3653_v52  ;;  %v3559_v47 = vsel %vm1518_vm8, %v3527_v50, %v3087_v15  ;;  %v3434_v58 = vsel %vm1390_vm4, %v7023_v26, %v9470_v21 }
 0x53c   : > { %3104 = vrot.lane.b32.xlu1 %v9457_v38, %s4703_s5  ;;  %v3464_v38 = vsel %vm1421_vm5, %v3434_v58, %v9471_v48  ;;  %v9482_v58 = vld [vmem:[#allocation123_spill] sm:$0xff] }
 0x53d   : > { %v3181_v37 = vpop.permute.xlu0 %3180 }
 0x53e   : > { %v2886_v55 = vpop.permute.xlu1 %2885  ;;  %v3590_v34 = vsel %vm1551_vm9, %v3558_v53, %v3181_v37  ;;  %v9472_v37 = vld [vmem:[#allocation44_spill] sm:$0xff] }
 0x53f   : > { %3378 = vrot.lane.b32.xlu0 %v9458_v14, %s4706_s12  ;;  %v3496_v44 = vsel %vm1452_vm6, %v3464_v38, %v2886_v55  ;;  %v3435_v55 = vsel %vm1390_vm4, %v9419_v51, %v9474_v56  ;;  %v9483_v56 = vld [vmem:[#allocation105_spill] sm:$0xff] }
 0x540   : > { %3106 = vrot.lane.b32.xlu1 %v9458_v14, %s4703_s5 }
 0x541   : > { %v3183_v5 = vpop.permute.xlu0 %3182 }
 0x542   : > { %v3271_v6 = vpop.permute.xlu1 %3270  ;;  %v3591_v10 = vsel %vm1551_vm9, %v3559_v47, %v3183_v5  ;;  %v9473_v5 = vld [vmem:[#allocation64_spill] sm:$0xff] }
 0x543   : > { %3200 = vrot.lane.b32.xlu0 %v9459_v60, %s4704_s10  ;;  %v3622_v59 = vsel %vm1584_vm10, %v3590_v34, %v3271_v6 }
 0x544   : > { %2905 = vrot.lane.b32.xlu1 %v9459_v60, %s4701_s23 }
 0x545   : > { %v2888_v40 = vpop.permute.xlu0 %2887 }
 0x546   : > { %v2988_v11 = vpop.permute.xlu1 %2987 }
 0x547   : > { %3202 = vrot.lane.b32.xlu0 %v9462_v57, %s4704_s10  ;;  %v3528_v52 = vsel %vm1485_vm7, %v3496_v44, %v2988_v11  ;;  %v3465_v11 = vsel %vm1421_vm5, %v3435_v55, %v9475_v27  ;;  %v3438_v55 = vsel %vm1390_vm4, %v7071_v45, %v9483_v56 }
 0x548   : > { %3290 = vrot.lane.b32.xlu1 %v9463_v29, %s4705_s11  ;;  %v3497_v46 = vsel %vm1452_vm6, %v3465_v11, %v2888_v40 }
 0x549   : > { %v3273_v13 = vpop.permute.xlu0 %3272 }
 0x54a   : > { %v3361_v9 = vpop.permute.xlu1 %3360  ;;  %v3623_v35 = vsel %vm1584_vm10, %v3591_v10, %v3273_v13  ;;  %v9476_v13 = vld [vmem:[#allocation33_spill] sm:$0xff] }
 0x54b   : > { %v3654_v20 = vsel %vm1617_vm11, %v3622_v59, %v3361_v9  ;;  %2907 = vrot.lane.b32.xlu0 %v9462_v57, %s4701_s23  ;;  %v9477_v9 = vld [vmem:[#allocation34_spill] sm:$0xff] }
 0x54c   : > { %3007 = vrot.lane.b32.xlu1 %v9463_v29, %s4702_s24  ;;  %4615 = vmatprep.mubr.msk.f32.mxu1 %vm1655_vm12, %v3654_v20 }
 0x54d   : > { %v2990_v1 = vpop.permute.xlu0 %2989 }
 0x54e   : > { %v3089_v43 = vpop.permute.xlu1 %3088  ;;  %v3529_v29 = vsel %vm1485_vm7, %v3497_v46, %v2990_v1 }
 0x54f   : > { %3292 = vrot.lane.b32.xlu0 %v9466_v0, %s4705_s11  ;;  %v3560_v14 = vsel %vm1518_vm8, %v3528_v52, %v3089_v43  ;;  %v9479_v43 = vld [vmem:[#allocation69_spill] sm:$0xff] }
 0x550   : > { %3380 = vrot.lane.b32.xlu1 %v9467_v63, %s4706_s12  ;;  %v3436_v47 = vsel %vm1390_vm4, %v7047_v32, %v9479_v43 }
 0x551   : > { %v3363_v16 = vpop.permute.xlu0 %3362 }
 0x552   : > { %v3091_v8 = vpop.permute.xlu1 %3090  ;;  %v3655_v28 = vsel %vm1617_vm11, %v3623_v35, %v3363_v16 }
 0x553   : > { %3009 = vrot.lane.b32.xlu0 %v9466_v0, %s4702_s24  ;;  %4616 = vmatmul.mubr.msk.f32.gmra.mxu1 %vm1655_vm12, %v3655_v28  ;;  %v3561_v51 = vsel %vm1518_vm8, %v3529_v29, %v3091_v8  ;;  %v9480_v0 = vld [vmem:[#allocation110_spill] sm:$0xff] }
 0x554   : > { %3108 = vrot.lane.b32.xlu1 %v9467_v63, %s4703_s5  ;;  %v3466_v10 = vsel %vm1421_vm5, %v3436_v47, %v9480_v0 }
 0x555   : > { %v3185_v25 = vpop.permute.xlu0 %3184 }
 0x556   : > { %v2890_v23 = vpop.permute.xlu1 %2889  ;;  %v3592_v26 = vsel %vm1551_vm9, %v3560_v14, %v3185_v25 }
 0x557   : > { %3382 = vrot.lane.b32.xlu0 %v9468_v22, %s4706_s12  ;;  %v3498_v35 = vsel %vm1452_vm6, %v3466_v10, %v2890_v23 }
 0x558   : > { %3110 = vrot.lane.b32.xlu1 %v9468_v22, %s4703_s5 }
 0x559   : > { %v3187_v30 = vpop.permute.xlu0 %3186 }
 0x55a   : > { %v3275_v42 = vpop.permute.xlu1 %3274  ;;  %v3593_v59 = vsel %vm1551_vm9, %v3561_v51, %v3187_v30 }
 0x55b   : > { %3204 = vrot.lane.b32.xlu0 %v9469_v62, %s4704_s10  ;;  %v3624_v17 = vsel %vm1584_vm10, %v3592_v26, %v3275_v42 }
 0x55c   : > { %2909 = vrot.lane.b32.xlu1 %v9469_v62, %s4701_s23  ;;  %v9481_v62 = vld [vmem:[#allocation10_spill] sm:$0xff] }
 0x55d   : > { %v2892_v39 = vpop.permute.xlu0 %2891  ;;  %v3437_v32 = vsel %vm1390_vm4, %v9422_v3, %v9481_v62 }
 0x55e   : > { %v2992_v15 = vpop.permute.xlu1 %2991  ;;  %v3467_v23 = vsel %vm1421_vm5, %v3437_v32, %v9482_v58 }
 0x55f   : > { %3206 = vrot.lane.b32.xlu0 %v9472_v37, %s4704_s10  ;;  %v3530_v8 = vsel %vm1485_vm7, %v3498_v35, %v2992_v15  ;;  %v3499_v48 = vsel %vm1452_vm6, %v3467_v23, %v2892_v39 }
 0x560   : > { %3294 = vrot.lane.b32.xlu1 %v9473_v5, %s4705_s11 }
 0x561   : > { %v3277_v6 = vpop.permute.xlu0 %3276 }
 0x562   : > { %v3365_v49 = vpop.permute.xlu1 %3364  ;;  %v3625_v54 = vsel %vm1584_vm10, %v3593_v59, %v3277_v6 }
 0x563   : > { %v3656_v41 = vsel %vm1617_vm11, %v3624_v17, %v3365_v49  ;;  %2911 = vrot.lane.b32.xlu0 %v9472_v37, %s4701_s23 }
 0x564   : > { %3011 = vrot.lane.b32.xlu1 %v9473_v5, %s4702_s24  ;;  %4618 = vmatprep.mubr.msk.f32.mxu1 %vm1655_vm12, %v3656_v41  ;;  %v9484_v41 = vld [vmem:[#allocation75_spill] sm:$0xff] }
 0x565   : > { %v2994_v53 = vpop.permute.xlu0 %2993  ;;  %v3468_v27 = vsel %vm1421_vm5, %v3438_v55, %v9484_v41 }
 0x566   : > { %v3093_v34 = vpop.permute.xlu1 %3092  ;;  %v3531_v44 = vsel %vm1485_vm7, %v3499_v48, %v2994_v53 }
 0x567   : > { %3296 = vrot.lane.b32.xlu0 %v9476_v13, %s4705_s11  ;;  %v3562_v28 = vsel %vm1518_vm8, %v3530_v8, %v3093_v34  ;;  %s8619_s11 = scalar_lea.vmem %s8744_s4, %s4447_s17 }
 0x568   : > { %3384 = vrot.lane.b32.xlu1 %v9477_v9, %s4706_s12 }
 0x569   : > { %v3367_v7 = vpop.permute.xlu0 %3366 }
 0x56a   : > { %v3095_v20 = vpop.permute.xlu1 %3094  ;;  %v3657_v40 = vsel %vm1617_vm11, %v3625_v54, %v3367_v7  ;;  %v9485_v54 = vld [vmem:[#allocation118_spill] sm:$0xff] }
 0x56b   : > { %3013 = vrot.lane.b32.xlu0 %v9476_v13, %s4702_s24  ;;  %4619 = vmatmul.mubr.msk.f32.gmra.mxu1 %vm1655_vm12, %v3657_v40  ;;  %v3563_v52 = vsel %vm1518_vm8, %v3531_v44, %v3095_v20  ;;  %v3439_v45 = vsel %vm1390_vm4, %v9425_v18, %v9485_v54  ;;  %v9486_v20 = vld [vmem:[#allocation16_spill] sm:$0xff] }
 0x56c   : > { %3112 = vrot.lane.b32.xlu1 %v9477_v9, %s4703_s5  ;;  %v3469_v40 = vsel %vm1421_vm5, %v3439_v45, %v9486_v20 }
 0x56d   : > { %v3189_v19 = vpop.permute.xlu0 %3188 }
 0x56e   : > { %v2894_v31 = vpop.permute.xlu1 %2893  ;;  %v3594_v25 = vsel %vm1551_vm9, %v3562_v28, %v3189_v19  ;;  %v9487_v28 = vld [vmem:[#allocation70_spill] sm:$0xff] }
 0x56f   : > { %3386 = vrot.lane.b32.xlu0 %v9478_v4, %s4706_s12  ;;  %v3500_v46 = vsel %vm1452_vm6, %v3468_v27, %v2894_v31 }
 0x570   : > { %3114 = vrot.lane.b32.xlu1 %v9478_v4, %s4703_s5 }
 0x571   : > { %v3191_v1 = vpop.permute.xlu0 %3190 }
 0x572   : > { %v3279_v50 = vpop.permute.xlu1 %3278  ;;  %v3595_v37 = vsel %vm1551_vm9, %v3563_v52, %v3191_v1 }
 0x573   : > { %v3626_v30 = vsel %vm1584_vm10, %v3594_v25, %v3279_v50  ;;  %v3440_v25 = vsel %vm1390_vm4, %v7089_v61, %v9487_v28 }
 0x575   : > { %v2896_v63 = vpop.permute.xlu0 %2895 }
 0x576   : > { %v2996_v16 = vpop.permute.xlu1 %2995  ;;  %v3501_v19 = vsel %vm1452_vm6, %v3469_v40, %v2896_v63 }
 0x577   : > { %v3532_v29 = vsel %vm1485_vm7, %v3500_v46, %v2996_v16 }
 0x579   : > { %v3281_v22 = vpop.permute.xlu0 %3280 }
 0x57a   : > { %v3369_v42 = vpop.permute.xlu1 %3368  ;;  %v3627_v14 = vsel %vm1584_vm10, %v3595_v37, %v3281_v22  ;;  %v9488_v22 = vld [vmem:[#allocation39_spill] sm:$0xff]  ;;  %v9490_v37 = vld [vmem:[#allocation76_spill] sm:$0xff] }
 0x57b   : > { %v3658_v21 = vsel %vm1617_vm11, %v3626_v30, %v3369_v42  ;;  %v3470_v30 = vsel %vm1421_vm5, %v3440_v25, %v9488_v22 }
 0x57c   : > { %4621 = vmatprep.mubr.msk.f32.mxu1 %vm1655_vm12, %v3658_v21 }
 0x57d   : > { %v2998_v38 = vpop.permute.xlu0 %2997 }
 0x57e   : > { %v3097_v15 = vpop.permute.xlu1 %3096  ;;  %v3533_v4 = vsel %vm1485_vm7, %v3501_v19, %v2998_v38  ;;  %v9493_v19 = vld [vmem:[#allocation119_spill] sm:$0xff] }
 0x57f   : > { %v3564_v34 = vsel %vm1518_vm8, %v3532_v29, %v3097_v15  ;;  %v9489_v15 = vld [vmem:[#allocation11_spill] sm:$0xff] }
 0x580   : > { %v3441_v61 = vsel %vm1390_vm4, %v9429_v33, %v9489_v15 }
 0x581   : > { %v3371_v3 = vpop.permute.xlu0 %3370 }
 0x582   : > { %v3099_v5 = vpop.permute.xlu1 %3098  ;;  %v3659_v26 = vsel %vm1617_vm11, %v3627_v14, %v3371_v3  ;;  %v3471_v14 = vsel %vm1421_vm5, %v3441_v61, %v9490_v37 }
 0x583   : > { %4622 = vmatmul.mubr.msk.f32.gmra.mxu1 %vm1655_vm12, %v3659_v26  ;;  %v3565_v50 = vsel %vm1518_vm8, %v3533_v4, %v3099_v5 }
 0x585   : > { %v3193_v6 = vpop.permute.xlu0 %3192 }
 0x586   : > { %v2898_v17 = vpop.permute.xlu1 %2897  ;;  %v3596_v51 = vsel %vm1551_vm9, %v3564_v34, %v3193_v6  ;;  %v9492_v34 = vld [vmem:[#allocation19_spill] sm:$0xff] }
 0x587   : > { %v3502_v62 = vsel %vm1452_vm6, %v3470_v30, %v2898_v17 }
 0x589   : > { %v3195_v49 = vpop.permute.xlu0 %3194 }
 0x58a   : > { %v3283_v39 = vpop.permute.xlu1 %3282  ;;  %v3597_v43 = vsel %vm1551_vm9, %v3565_v50, %v3195_v49 }
 0x58b   : > { %v3628_v59 = vsel %vm1584_vm10, %v3596_v51, %v3283_v39 }
 0x58d   : > { %v2900_v11 = vpop.permute.xlu0 %2899 }
 0x58e   : > { %v3000_v53 = vpop.permute.xlu1 %2999  ;;  %v3503_v3 = vsel %vm1452_vm6, %v3471_v14, %v2900_v11  ;;  %v9497_v14 = vld [vmem:[#allocation12_spill] sm:$0xff] }
 0x58f   : > { %v3534_v21 = vsel %vm1485_vm7, %v3502_v62, %v3000_v53  ;;  %v9491_v53 = vld [vmem:[#allocation106_spill] sm:$0xff] }
 0x590   : > { %v3442_v29 = vsel %vm1390_vm4, %v9437_v24, %v9491_v53  ;;  %v9501_v53 = vld [vmem:[#allocation120_spill] sm:$0xff] }
 0x591   : > { %v3285_v13 = vpop.permute.xlu0 %3284  ;;  %v3472_v51 = vsel %vm1421_vm5, %v3442_v29, %v9492_v34  ;;  %v3447_v29 = vsel %vm1390_vm4, %v9462_v57, %v9501_v53 }
 0x592   : > { %v3373_v9 = vpop.permute.xlu1 %3372  ;;  %v3629_v47 = vsel %vm1584_vm10, %v3597_v43, %v3285_v13 }
 0x593   : > { %v3660_v7 = vsel %vm1617_vm11, %v3628_v59, %v3373_v9 }
 0x594   : > { %4624 = vmatprep.mubr.msk.f32.mxu1 %vm1655_vm12, %v3660_v7 }
 0x595   : > { %v3002_v31 = vpop.permute.xlu0 %3001 }
 0x596   : > { %v3101_v1 = vpop.permute.xlu1 %3100  ;;  %v3535_v26 = vsel %vm1485_vm7, %v3503_v3, %v3002_v31  ;;  %v3443_v31 = vsel %vm1390_vm4, %v9441_v2, %v9493_v19  ;;  %v9498_v3 = vld [vmem:[#allocation107_spill] sm:$0xff] }
 0x597   : > { %v3566_v58 = vsel %vm1518_vm8, %v3534_v21, %v3101_v1  ;;  %v9494_v1 = vld [vmem:[#allocation111_spill] sm:$0xff] }
 0x598   : > { %v3473_v50 = vsel %vm1421_vm5, %v3443_v31, %v9494_v1 }
 0x599   : > { %v3375_v18 = vpop.permute.xlu0 %3374 }
 0x59a   : > { %v3103_v0 = vpop.permute.xlu1 %3102  ;;  %v3661_v10 = vsel %vm1617_vm11, %v3629_v47, %v3375_v18 }
 0x59b   : > { %4625 = vmatmul.mubr.msk.f32.gmra.mxu1 %vm1655_vm12, %v3661_v10  ;;  %v3567_v17 = vsel %vm1518_vm8, %v3535_v26, %v3103_v0 }
 0x59d   : > { %v3197_v35 = vpop.permute.xlu0 %3196 }
 0x59e   : > { %v2902_v16 = vpop.permute.xlu1 %2901  ;;  %v3598_v23 = vsel %vm1551_vm9, %v3566_v58, %v3197_v35 }
 0x59f   : > { %v3504_v59 = vsel %vm1452_vm6, %v3472_v51, %v2902_v16 }
 0x5a1   : > { %v3199_v8 = vpop.permute.xlu0 %3198 }
 0x5a2   : > { %v3287_v63 = vpop.permute.xlu1 %3286  ;;  %v3599_v49 = vsel %vm1551_vm9, %v3567_v17, %v3199_v8 }
 0x5a3   : > { %v3630_v38 = vsel %vm1584_vm10, %v3598_v23, %v3287_v63 }
 0x5a5   : > { %v2904_v42 = vpop.permute.xlu0 %2903 }
 0x5a6   : > { %v3004_v32 = vpop.permute.xlu1 %3003  ;;  %v3505_v43 = vsel %vm1452_vm6, %v3473_v50, %v2904_v42  ;;  %v9495_v42 = vld [vmem:[#allocation71_spill] sm:$0xff] }
 0x5a7   : > { %v3536_v54 = vsel %vm1485_vm7, %v3504_v59, %v3004_v32  ;;  %v3444_v62 = vsel %vm1390_vm4, %v9449_v36, %v9495_v42  ;;  %v9496_v32 = vld [vmem:[#allocation77_spill] sm:$0xff]  ;;  %v3445_v36 = vsel %vm1390_vm4, %v9452_v12, %v9497_v14  ;;  %v9502_v59 = vld [vmem:[#allocation78_spill] sm:$0xff] }
 0x5a8   : > { %v3474_v21 = vsel %vm1421_vm5, %v3444_v62, %v9496_v32 }
 0x5a9   : > { %v3289_v48 = vpop.permute.xlu0 %3288 }
 0x5aa   : > { %v3377_v44 = vpop.permute.xlu1 %3376  ;;  %v3631_v39 = vsel %vm1584_vm10, %v3599_v49, %v3289_v48  ;;  %v9500_v49 = vld [vmem:[#allocation112_spill] sm:$0xff] }
 0x5ab   : > { %v3662_v52 = vsel %vm1617_vm11, %v3630_v38, %v3377_v44 }
 0x5ac   : > { %4627 = vmatprep.mubr.msk.f32.mxu1 %vm1655_vm12, %v3662_v52 }
 0x5ad   : > { %v3006_v5 = vpop.permute.xlu0 %3005 }
 0x5ae   : > { %v3105_v6 = vpop.permute.xlu1 %3104  ;;  %v3537_v18 = vsel %vm1485_vm7, %v3505_v43, %v3006_v5  ;;  %v3446_v5 = vsel %vm1390_vm4, %v9459_v60, %v9498_v3 }
 0x5af   : > { %v3568_v45 = vsel %vm1518_vm8, %v3536_v54, %v3105_v6  ;;  %v9499_v6 = vld [vmem:[#allocation20_spill] sm:$0xff] }
 0x5b0   : > { %v3475_v17 = vsel %vm1421_vm5, %v3445_v36, %v9499_v6 }
 0x5b1   : > { %v3379_v33 = vpop.permute.xlu0 %3378 }
 0x5b2   : > { %v3107_v56 = vpop.permute.xlu1 %3106  ;;  %v3663_v55 = vsel %vm1617_vm11, %v3631_v39, %v3379_v33  ;;  %v3476_v39 = vsel %vm1421_vm5, %v3446_v5, %v9500_v49 }
 0x5b3   : > { %4628 = vmatmul.mubr.msk.f32.gmra.mxu1 %vm1655_vm12, %v3663_v55  ;;  %v3569_v10 = vsel %vm1518_vm8, %v3537_v18, %v3107_v56 }
 0x5b5   : > { %v8246_v41 = vpop.permute.xlu0 %3200 }
 0x5b6   : > { %v2906_v27 = vpop.permute.xlu1 %2905  ;;  %v3600_v7 = vsel %vm1551_vm9, %v3568_v45, %v8246_v41 }
 0x5b7   : > { %v3506_v23 = vsel %vm1452_vm6, %v3474_v21, %v2906_v27 }
 0x5b9   : > { %v8248_v11 = vpop.permute.xlu0 %3202 }
 0x5ba   : > { %v8250_v46 = vpop.permute.xlu1 %3290  ;;  %v3601_v35 = vsel %vm1551_vm9, %v3569_v10, %v8248_v11 }
 0x5bb   : > { %v3632_v40 = vsel %vm1584_vm10, %v3600_v7, %v8250_v46 }
 0x5bd   : > { %v2908_v13 = vpop.permute.xlu0 %2907 }
 0x5be   : > { %v3008_v9 = vpop.permute.xlu1 %3007  ;;  %v3507_v33 = vsel %vm1452_vm6, %v3475_v17, %v2908_v13 }
 0x5bf   : > { %v3538_v38 = vsel %vm1485_vm7, %v3506_v23, %v3008_v9  ;;  %v3477_v9 = vsel %vm1421_vm5, %v3447_v29, %v9502_v59 }
 0x5c1   : > { %v8262_v20 = vpop.permute.xlu0 %3292 }
 0x5c2   : > { %v3381_v24 = vpop.permute.xlu1 %3380  ;;  %v3633_v2 = vsel %vm1584_vm10, %v3601_v35, %v8262_v20 }
 0x5c3   : > { %v3664_v4 = vsel %vm1617_vm11, %v3632_v40, %v3381_v24 }
 0x5c4   : > { %4630 = vmatprep.mubr.msk.f32.mxu1 %vm1655_vm12, %v3664_v4 }
 0x5c5   : > { %v3010_v47 = vpop.permute.xlu0 %3009 }
 0x5c6   : > { %v3109_v0 = vpop.permute.xlu1 %3108  ;;  %v3539_v12 = vsel %vm1485_vm7, %v3507_v33, %v3010_v47  ;;  %v8334_v47 = vpop.f32.mrf.mxu1 }
 0x5c7   : > { %v3570_v44 = vsel %vm1518_vm8, %v3538_v38, %v3109_v0 }
 0x5c8   : > { %v8336_v18 = vpop.f32.mrf.mxu1 }
 0x5c9   : > { %v3383_v16 = vpop.permute.xlu0 %3382  ;;  %v3999_v35 = vsel %vm1390_vm4, %v8336_v18, 0.0 }
 0x5ca   : > { %v3111_v8 = vpop.permute.xlu1 %3110  ;;  %v3665_v63 = vsel %vm1617_vm11, %v3633_v2, %v3383_v16  ;;  %v8338_v0 = vpop.f32.mrf.mxu1 }
 0x5cb   : > { %4631 = vmatmul.mubr.msk.f32.gmra.mxu1 %vm1655_vm12, %v3665_v63  ;;  %v3571_v34 = vsel %vm1518_vm8, %v3539_v12, %v3111_v8  ;;  %v4072_v21 = vmul.f32 %v8338_v0, %v8338_v0 }
 0x5cc   : > { %v8340_v10 = vpop.f32.mrf.mxu1 }
 0x5cd   : > { %v3205_v28 = vpop.permute.xlu0 %3204  ;;  %v4071_v2 = vmul.f32 %v8340_v10, %v8340_v10  ;;  %v4002_v63 = vsel %vm1390_vm4, %v8340_v10, 0.0 }
 0x5ce   : > { %v2910_v25 = vpop.permute.xlu1 %2909  ;;  %v3602_v15 = vsel %vm1551_vm9, %v3570_v44, %v3205_v28 }
 0x5cf   : > { %v3508_v56 = vsel %vm1452_vm6, %v3476_v39, %v2910_v25 }
 0x5d1   : > { %v3207_v22 = vpop.permute.xlu0 %3206 }
 0x5d2   : > { %v3295_v30 = vpop.permute.xlu1 %3294  ;;  %v3603_v13 = vsel %vm1551_vm9, %v3571_v34, %v3207_v22 }
 0x5d3   : > { %v3634_v52 = vsel %vm1584_vm10, %v3602_v15, %v3295_v30  ;;  %v4104_v30 = vsel %vm1390_vm4, %v4071_v2, 0.0 }
 0x5d5   : > { %v2912_v58 = vpop.permute.xlu0 %2911 }
 0x5d6   : > { %v3012_v48 = vpop.permute.xlu1 %3011  ;;  %v3509_v45 = vsel %vm1452_vm6, %v3477_v9, %v2912_v58 }
 0x5d7   : > { %v3540_v27 = vsel %vm1485_vm7, %v3508_v56, %v3012_v48  ;;  %v4004_v48 = vsel %vm1390_vm4, %v8338_v0, 0.0 }
 0x5d9   : > { %v3297_v61 = vpop.permute.xlu0 %3296 }
 0x5da   : > { %v3385_v37 = vpop.permute.xlu1 %3384  ;;  %v3635_v7 = vsel %vm1584_vm10, %v3603_v13, %v3297_v61  ;;  %v4106_v61 = vsel %vm1390_vm4, %v4072_v21, 0.0 }
 0x5db   : > { %v3666_v26 = vsel %vm1617_vm11, %v3634_v52, %v3385_v37 }
 0x5dc   : > { %4633 = vmatprep.mubr.msk.f32.mxu1 %vm1655_vm12, %v3666_v26 }
 0x5dd   : > { %v3014_v55 = vpop.permute.xlu0 %3013 }
 0x5de   : > { %v3113_v60 = vpop.permute.xlu1 %3112  ;;  %v3541_v19 = vsel %vm1485_vm7, %v3509_v45, %v3014_v55 }
 0x5df   : > { %v3572_v51 = vsel %vm1518_vm8, %v3540_v27, %v3113_v60 }
 0x5e0   : > { %v3604_v54 = vsel %vm1551_vm9, %v3572_v51, %v8246_v41 }
 0x5e1   : > { %v3387_v40 = vpop.permute.xlu0 %3386  ;;  %v3636_v57 = vsel %vm1584_vm10, %v3604_v54, %v8250_v46 }
 0x5e2   : > { %v3115_v31 = vpop.permute.xlu1 %3114  ;;  %v3667_v4 = vsel %vm1617_vm11, %v3635_v7, %v3387_v40  ;;  %v3668_v50 = vsel %vm1617_vm11, %v3636_v57, %v3381_v24  ;;  %v8344_v24 = vpop.f32.mrf.mxu1 }
 0x5e3   : > { %v3573_v1 = vsel %vm1518_vm8, %v3541_v19, %v3115_v31  ;;  %4634 = vmatmul.mubr.msk.f32.gmra.mxu1 %vm1655_vm12, %v3667_v4  ;;  %v4074_v3 = vmul.f32 %v8344_v24, %v8344_v24  ;;  %v4008_v6 = vsel %vm1390_vm4, %v8344_v24, 0.0 }
 0x5e4   : > { %v3605_v41 = vsel %vm1551_vm9, %v3573_v1, %v8248_v11  ;;  %4636 = vmatprep.mubr.msk.f32.mxu1 %vm1655_vm12, %v3668_v50  ;;  %v4069_v11 = vmul.f32 %v8336_v18, %v8336_v18  ;;  %v8357_v25 = vpop.f32.mrf.mxu1 }
 0x5e5   : > { %v3637_v43 = vsel %vm1584_vm10, %v3605_v41, %v8262_v20  ;;  %v4070_v20 = vmul.f32 %v8334_v47, %v8334_v47  ;;  %v4073_v58 = vmul.f32 %v8357_v25, %v8357_v25  ;;  %v4006_v38 = vsel %vm1390_vm4, %v8357_v25, 0.0 }
 0x5e6   : > { %v3669_v46 = vsel %vm1617_vm11, %v3637_v43, %v3383_v16  ;;  %v4000_v16 = vsel %vm1390_vm4, %v8334_v47, 0.0  ;;  %v4101_v8 = vsel %vm1390_vm4, %v4069_v11, 0.0  ;;  %v8361_v32 = vpop.f32.mrf.mxu1  ;;  %v4110_v33 = vsel %vm1390_vm4, %v4074_v3, 0.0 }
 0x5e7   : > { %4637 = vmatmul.mubr.msk.f32.gmra.mxu1 %vm1655_vm12, %v3669_v46  ;;  %v4001_v28 = vadd.f32 %v4000_v16, %v3999_v35  ;;  %v4102_v22 = vsel %vm1390_vm4, %v4070_v20, 0.0  ;;  %v4108_v52 = vsel %vm1390_vm4, %v4073_v58, 0.0  ;;  %v4076_v60 = vmul.f32 %v8361_v32, %v8361_v32 }
 0x5e8   : > { %v4103_v42 = vadd.f32 %v4102_v22, %v4101_v8  ;;  %v8371_v15 = vpop.f32.mrf.mxu1  ;;  %v4012_v34 = vsel %vm1390_vm4, %v8361_v32, 0.0 }
 0x5e9   : > { %v4003_v62 = vadd.f32 %v4002_v63, %v4001_v28  ;;  %v4075_v5 = vmul.f32 %v8371_v15, %v8371_v15  ;;  %v4010_v17 = vsel %vm1390_vm4, %v8371_v15, 0.0  ;;  %v4114_v13 = vsel %vm1390_vm4, %v4076_v60, 0.0 }
 0x5ea   : > { %v4105_v23 = vadd.f32 %v4104_v30, %v4103_v42  ;;  %v8375_v36 = vpop.f32.mrf.mxu1 }
 0x5eb   : > { %v4005_v44 = vadd.f32 %v4004_v48, %v4003_v62  ;;  %v4112_v56 = vsel %vm1390_vm4, %v4075_v5, 0.0  ;;  %v4078_v57 = vmul.f32 %v8375_v36, %v8375_v36  ;;  %v4016_v4 = vsel %vm1390_vm4, %v8375_v36, 0.0 }
 0x5ec   : > { %v4107_v14 = vadd.f32 %v4106_v61, %v4105_v23  ;;  %v8385_v39 = vpop.f32.mrf.mxu1 }
 0x5ed   : > { %v4007_v37 = vadd.f32 %v4006_v38, %v4005_v44  ;;  %v4077_v53 = vmul.f32 %v8385_v39, %v8385_v39  ;;  %v4014_v51 = vsel %vm1390_vm4, %v8385_v39, 0.0  ;;  %v4118_v43 = vsel %vm1390_vm4, %v4078_v57, 0.0 }
 0x5ee   : > { %v4109_v26 = vadd.f32 %v4108_v52, %v4107_v14  ;;  %v8389_v27 = vpop.f32.mrf.mxu1 }
 0x5ef   : > { %v4009_v49 = vadd.f32 %v4008_v6, %v4007_v37  ;;  %v4116_v54 = vsel %vm1390_vm4, %v4077_v53, 0.0  ;;  %v4080_v2 = vmul.f32 %v8389_v27, %v8389_v27  ;;  %v4020_v63 = vsel %vm1390_vm4, %v8389_v27, 0.0 }
 0x5f0   : > { %v4111_v12 = vadd.f32 %v4110_v33, %v4109_v26  ;;  %v8399_v9 = vpop.f32.mrf.mxu1 }
 0x5f1   : > { %v4011_v55 = vadd.f32 %v4010_v17, %v4009_v49  ;;  %v4079_v19 = vmul.f32 %v8399_v9, %v8399_v9  ;;  %v4018_v1 = vsel %vm1390_vm4, %v8399_v9, 0.0  ;;  %v4122_v42 = vsel %vm1390_vm4, %v4080_v2, 0.0 }
 0x5f2   : > { %v4113_v29 = vadd.f32 %v4112_v56, %v4111_v12  ;;  %v8403_v40 = vpop.f32.mrf.mxu1 }
 0x5f3   : > { %v4013_v59 = vadd.f32 %v4012_v34, %v4011_v55  ;;  %v4120_v46 = vsel %vm1390_vm4, %v4079_v19, 0.0  ;;  %v4082_v48 = vmul.f32 %v8403_v40, %v8403_v40  ;;  %v4024_v61 = vsel %vm1390_vm4, %v8403_v40, 0.0 }
 0x5f4   : > { %v4115_v7 = vadd.f32 %v4114_v13, %v4113_v29  ;;  %v8413_v41 = vpop.f32.mrf.mxu1 }
 0x5f5   : > { %v4015_v45 = vadd.f32 %v4014_v51, %v4013_v59  ;;  %v4081_v16 = vmul.f32 %v8413_v41, %v8413_v41  ;;  %v4022_v28 = vsel %vm1390_vm4, %v8413_v41, 0.0  ;;  %v4126_v3 = vsel %vm1390_vm4, %v4082_v48, 0.0 }
 0x5f6   : > { %v4117_v31 = vadd.f32 %v4116_v54, %v4115_v7 }
 0x5f7   : > { %v4017_v50 = vadd.f32 %v4016_v4, %v4015_v45  ;;  %v4124_v62 = vsel %vm1390_vm4, %v4081_v16, 0.0 }
 0x5f8   : > { %v4119_v20 = vadd.f32 %v4118_v43, %v4117_v31 }
 0x5f9   : > { %v4019_v11 = vadd.f32 %v4018_v1, %v4017_v50 }
 0x5fa   : > { %v4121_v8 = vadd.f32 %v4120_v46, %v4119_v20 }
 0x5fb   : > { %v8417_v35 = vpop.f32.mrf.mxu1  ;;  %v4021_v22 = vadd.f32 %v4020_v63, %v4019_v11 }
 0x5fc   : > { %v4123_v58 = vadd.f32 %v4122_v42, %v4121_v8  ;;  %v4084_v49 = vmul.f32 %v8417_v35, %v8417_v35  ;;  %v4028_v55 = vsel %vm1390_vm4, %v8417_v35, 0.0 }
 0x5fd   : > { %v8427_v30 = vpop.f32.mrf.mxu1  ;;  %v4023_v21 = vadd.f32 %v4022_v28, %v4021_v22 }
 0x5fe   : > { %v4083_v38 = vmul.f32 %v8427_v30, %v8427_v30  ;;  %v4125_v44 = vadd.f32 %v4124_v62, %v4123_v58  ;;  %v4026_v52 = vsel %vm1390_vm4, %v8427_v30, 0.0  ;;  %v4130_v29 = vsel %vm1390_vm4, %v4084_v49, 0.0 }
 0x5ff   : > { %v4025_v37 = vadd.f32 %v4024_v61, %v4023_v21 }
 0x600   : > { %v4128_v5 = vsel %vm1390_vm4, %v4083_v38, 0.0  ;;  %v4127_v6 = vadd.f32 %v4126_v3, %v4125_v44 }
 0x601   : > { %v4027_v26 = vadd.f32 %v4026_v52, %v4025_v37 }
 0x602   : > { %v4129_v56 = vadd.f32 %v4128_v5, %v4127_v6 }
 0x603   : > { %v4029_v60 = vadd.f32 %v4028_v55, %v4027_v26 }
 0x604   : > { %v4131_v59 = vadd.f32 %v4130_v29, %v4129_v56 }
 0x613   : > { %v8431_v23 = vpop.f32.mrf.mxu1 }
 0x614   : > { %v4086_v54 = vmul.f32 %v8431_v23, %v8431_v23  ;;  %v4032_v57 = vsel %vm1390_vm4, %v8431_v23, 0.0 }
 0x615   : > { %v8441_v14 = vpop.f32.mrf.mxu1 }
 0x616   : > { %v4085_v33 = vmul.f32 %v8441_v14, %v8441_v14  ;;  %v4030_v12 = vsel %vm1390_vm4, %v8441_v14, 0.0  ;;  %v4134_v1 = vsel %vm1390_vm4, %v4086_v54, 0.0 }
 0x617   : > { %v4031_v51 = vadd.f32 %v4030_v12, %v4029_v60 }
 0x618   : > { %v4132_v34 = vsel %vm1390_vm4, %v4085_v33, 0.0 }
 0x619   : > { %v4133_v7 = vadd.f32 %v4132_v34, %v4131_v59  ;;  %v4033_v31 = vadd.f32 %v4032_v57, %v4031_v51 }
 0x61b   : > { %v4135_v46 = vadd.f32 %v4134_v1, %v4133_v7 }
 0x62b   : > { %v8445_v17 = vpop.f32.mrf.mxu1 }
 0x62c   : > { %v4088_v20 = vmul.f32 %v8445_v17, %v8445_v17  ;;  %v4036_v8 = vsel %vm1390_vm4, %v8445_v17, 0.0 }
 0x62d   : > { %v8455_v53 = vpop.f32.mrf.mxu1 }
 0x62e   : > { %v4087_v45 = vmul.f32 %v8455_v53, %v8455_v53  ;;  %v4034_v19 = vsel %vm1390_vm4, %v8455_v53, 0.0  ;;  %v4138_v42 = vsel %vm1390_vm4, %v4088_v20, 0.0 }
 0x62f   : > { %v4035_v43 = vadd.f32 %v4034_v19, %v4033_v31 }
 0x630   : > { %v4136_v50 = vsel %vm1390_vm4, %v4087_v45, 0.0 }
 0x631   : > { %v4137_v16 = vadd.f32 %v4136_v50, %v4135_v46  ;;  %v4037_v28 = vadd.f32 %v4036_v8, %v4035_v43 }
 0x633   : > { %v4139_v58 = vadd.f32 %v4138_v42, %v4137_v16 }
 0x643   : > { %v8459_v13 = vpop.f32.mrf.mxu1 }
 0x644   : > { %v4090_v38 = vmul.f32 %v8459_v13, %v8459_v13  ;;  %v4040_v52 = vsel %vm1390_vm4, %v8459_v13, 0.0 }
 0x645   : > { %v8469_v4 = vpop.f32.mrf.mxu1 }
 0x646   : > { %v4089_v2 = vmul.f32 %v8469_v4, %v8469_v4  ;;  %v4038_v63 = vsel %vm1390_vm4, %v8469_v4, 0.0  ;;  %v4142_v26 = vsel %vm1390_vm4, %v4090_v38, 0.0 }
 0x647   : > { %v4039_v21 = vadd.f32 %v4038_v63, %v4037_v28 }
 0x648   : > { %v4140_v62 = vsel %vm1390_vm4, %v4089_v2, 0.0 }
 0x649   : > { %v4141_v61 = vadd.f32 %v4140_v62, %v4139_v58  ;;  %v4041_v3 = vadd.f32 %v4040_v52, %v4039_v21 }
 0x64b   : > { %v4143_v33 = vadd.f32 %v4142_v26, %v4141_v61 }
 0x65b   : > { %v8473_v11 = vpop.f32.mrf.mxu1 }
 0x65c   : > { %v4092_v55 = vmul.f32 %v8473_v11, %v8473_v11  ;;  %v4044_v29 = vsel %vm1390_vm4, %v8473_v11, 0.0 }
 0x65d   : > { %v8483_v22 = vpop.f32.mrf.mxu1 }
 0x65e   : > { %v4091_v44 = vmul.f32 %v8483_v22, %v8483_v22  ;;  %v4042_v37 = vsel %vm1390_vm4, %v8483_v22, 0.0  ;;  %v4146_v54 = vsel %vm1390_vm4, %v4092_v55, 0.0 }
 0x65f   : > { %v4043_v49 = vadd.f32 %v4042_v37, %v4041_v3 }
 0x660   : > { %v4144_v6 = vsel %vm1390_vm4, %v4091_v44, 0.0 }
 0x661   : > { %v4145_v60 = vadd.f32 %v4144_v6, %v4143_v33  ;;  %v4045_v51 = vadd.f32 %v4044_v29, %v4043_v49 }
 0x663   : > { %v4147_v57 = vadd.f32 %v4146_v54, %v4145_v60 }
 0x673   : > { %v8487_v48 = vpop.f32.mrf.mxu1 }
 0x674   : > { %v4094_v19 = vmul.f32 %v8487_v48, %v8487_v48  ;;  %v4048_v50 = vsel %vm1390_vm4, %v8487_v48, 0.0 }
 0x675   : > { %v8497_v5 = vpop.f32.mrf.mxu1 }
 0x676   : > { %v4093_v12 = vmul.f32 %v8497_v5, %v8497_v5  ;;  %v4046_v34 = vsel %vm1390_vm4, %v8497_v5, 0.0  ;;  %v4150_v20 = vsel %vm1390_vm4, %v4094_v19, 0.0 }
 0x677   : > { %v4047_v7 = vadd.f32 %v4046_v34, %v4045_v51 }
 0x678   : > { %v4148_v45 = vsel %vm1390_vm4, %v4093_v12, 0.0 }
 0x679   : > { %v4149_v1 = vadd.f32 %v4148_v45, %v4147_v57  ;;  %v4049_v46 = vadd.f32 %v4048_v50, %v4047_v7 }
 0x67b   : > { %v4151_v8 = vadd.f32 %v4150_v20, %v4149_v1 }
 0x68b   : > { %v8501_v56 = vpop.f32.mrf.mxu1 }
 0x68c   : > { %v4096_v63 = vmul.f32 %v8501_v56, %v8501_v56  ;;  %v4052_v62 = vsel %vm1390_vm4, %v8501_v56, 0.0 }
 0x68d   : > { %v8511_v59 = vpop.f32.mrf.mxu1 }
 0x68e   : > { %v4095_v31 = vmul.f32 %v8511_v59, %v8511_v59  ;;  %v4050_v43 = vsel %vm1390_vm4, %v8511_v59, 0.0  ;;  %v4154_v38 = vsel %vm1390_vm4, %v4096_v63, 0.0 }
 0x68f   : > { %v4051_v16 = vadd.f32 %v4050_v43, %v4049_v46 }
 0x690   : > { %v4152_v2 = vsel %vm1390_vm4, %v4095_v31, 0.0 }
 0x691   : > { %v4153_v28 = vadd.f32 %v4152_v2, %v4151_v8  ;;  %v4053_v58 = vadd.f32 %v4052_v62, %v4051_v16 }
 0x693   : > { %v4155_v3 = vadd.f32 %v4154_v38, %v4153_v28 }
 0x6a3   : > { %v8527_v42 = vpop.f32.mrf.mxu1 }
 0x6a4   : > { %v4098_v44 = vmul.f32 %v8527_v42, %v8527_v42  ;;  %v4056_v6 = vsel %vm1390_vm4, %v8527_v42, 0.0 }
 0x6a5   : > { %v8531_v21 = vpop.f32.mrf.mxu1 }
 0x6a6   : > { %v4054_v61 = vsel %vm1390_vm4, %v8531_v21, 0.0  ;;  %v4097_v52 = vmul.f32 %v8531_v21, %v8531_v21  ;;  %v4158_v60 = vsel %vm1390_vm4, %v4098_v44, 0.0 }
 0x6a7   : > { %v4055_v37 = vadd.f32 %v4054_v61, %v4053_v58  ;;  %v8540_v26 = vpop.f32.mrf.mxu1 }
 0x6a8   : > { %v4156_v49 = vsel %vm1390_vm4, %v4097_v52, 0.0  ;;  %v4100_v29 = vmul.f32 %v8540_v26, %v8540_v26  ;;  %v4060_v7 = vsel %vm1390_vm4, %v8540_v26, 0.0 }
 0x6a9   : > { %v4157_v33 = vadd.f32 %v4156_v49, %v4155_v3  ;;  %v8545_v55 = vpop.f32.mrf.mxu1  ;;  %v4057_v12 = vadd.f32 %v4056_v6, %v4055_v37 }
 0x6aa   : > { %v4058_v34 = vsel %vm1390_vm4, %v8545_v55, 0.0  ;;  %v4099_v51 = vmul.f32 %v8545_v55, %v8545_v55  ;;  %v4162_v1 = vsel %vm1390_vm4, %v4100_v29, 0.0  ;;  %v233_v29 = vld [vmem:[%s8743_s3 + $0x3] sm:$0x1] }
 0x6ab   : > { %v4059_v54 = vadd.f32 %v4058_v34, %v4057_v12  ;;  %v4159_v45 = vadd.f32 %v4158_v60, %v4157_v33  ;;  %v232_v33 = vld [vmem:[%s8743_s3 + $0x2] sm:$0x1] }
 0x6ac   : > { %v4160_v57 = vsel %vm1390_vm4, %v4099_v51, 0.0  ;;  %v9503_v51 = vld [vmem:[#allocation43_spill] sm:$0xff] }
 0x6ad   : > { %v4061_v19 = vadd.f32 %v4060_v7, %v4059_v54  ;;  %v4161_v31 = vadd.f32 %v4160_v57, %v4159_v45 }
 0x6af   : > { %v4062_v50 = vrot.slane %v4061_v19, 4  ;;  %v4163_v43 = vadd.f32 %v4162_v1, %v4161_v31 }
 0x6b1   : > { %v4063_v46 = vadd.f32 %v4062_v50, %v4061_v19  ;;  %v4164_v20 = vrot.slane %v4163_v43, 4 }
 0x6b3   : > { %v4064_v2 = vrot.slane %v4063_v46, 2  ;;  %v4165_v16 = vadd.f32 %v4164_v20, %v4163_v43 }
 0x6b5   : > { %v4065_v8 = vadd.f32 %v4064_v2, %v4063_v46  ;;  %v4166_v63 = vrot.slane %v4165_v16, 2 }
 0x6b7   : > { %v4066_v28 = vrot.slane %v4065_v8, 1  ;;  %v4167_v62 = vadd.f32 %v4166_v63, %v4165_v16 }
 0x6b9   : > { %v4067_v58 = vadd.f32 %v4066_v28, %v4065_v8  ;;  %v4168_v38 = vrot.slane %v4167_v62, 1 }
 0x6bb   : > { %v4068_v44 = vmul.f32 0.00390625, %v4067_v58  ;;  %v4169_v61 = vadd.f32 %v4168_v38, %v4167_v62 }
 0x6bd   : > { %v4170_v52 = vmul.f32 0.00390625, %v4169_v61  ;;  %v4171_v37 = vmul.f32 %v4068_v44, %v4068_v44 }
 0x6bf   : > { %v4172_v3 = vsub.f32 %v4170_v52, %v4171_v37 }
 0x6c1   : > { %v4173_v6 = vmax.f32 %v4172_v3, 0.0 }
 0x6c3   : > { %v4174_v49 = vadd.f32 1e-05, %v4173_v6 }
 0x6c5   : > { %4657 = vrsqrt.f32 %v4174_v49 }
 0x6d2   : > { %v4658_v12 = vpop.eup %4657 }
 0x6d3   : > { %v4176_v60 = vmul.f32 %v4658_v12, %v232_v33 }
 0x6d5   : > { %v4177_v34 = vmul.f32 %v4176_v60, %v4068_v44  ;;  %v4182_v54 = vrot.slane %v4176_v60, %v9503_v51 }
 0x6d7   : > { %v4178_v45 = vsub.f32 %v233_v29, %v4177_v34  ;;  %v4183_v7 = vmul.f32 %v4182_v54, %v8336_v18  ;;  %v4184_v57 = vmul.f32 %v8334_v47, %v4182_v54  ;;  %v4185_v19 = vmul.f32 %v4182_v54, %v8340_v10 }
 0x6d8   : > { %v4186_v31 = vmul.f32 %v8338_v0, %v4182_v54  ;;  %v4187_v1 = vmul.f32 %v4182_v54, %v8357_v25  ;;  %v4188_v50 = vmul.f32 %v8344_v24, %v4182_v54  ;;  %v4189_v43 = vmul.f32 %v4182_v54, %v8371_v15 }
 0x6d9   : > { %v4190_v46 = vmul.f32 %v8361_v32, %v4182_v54  ;;  %v4191_v20 = vmul.f32 %v4182_v54, %v8385_v39  ;;  %v4192_v2 = vmul.f32 %v8375_v36, %v4182_v54  ;;  %v4193_v18 = vmul.f32 %v4182_v54, %v8399_v9 }
 0x6da   : > { %v4194_v47 = vmul.f32 %v8389_v27, %v4182_v54  ;;  %v4195_v10 = vmul.f32 %v4182_v54, %v8413_v41  ;;  %v4196_v0 = vmul.f32 %v8403_v40, %v4182_v54  ;;  %v4197_v25 = vmul.f32 %v4182_v54, %v8427_v30 }
 0x6db   : > { %v4198_v24 = vmul.f32 %v8417_v35, %v4182_v54  ;;  %v4199_v15 = vmul.f32 %v4182_v54, %v8441_v14  ;;  %v4200_v32 = vmul.f32 %v8431_v23, %v4182_v54  ;;  %v4201_v39 = vmul.f32 %v4182_v54, %v8455_v53 }
 0x6dc   : > { %v4202_v36 = vmul.f32 %v8445_v17, %v4182_v54  ;;  %v4203_v9 = vmul.f32 %v4182_v54, %v8469_v4  ;;  %v4204_v27 = vmul.f32 %v8459_v13, %v4182_v54  ;;  %v4205_v41 = vmul.f32 %v4182_v54, %v8483_v22 }
 0x6dd   : > { %v4206_v40 = vmul.f32 %v8473_v11, %v4182_v54  ;;  %v4207_v30 = vmul.f32 %v4182_v54, %v8497_v5  ;;  %v4208_v35 = vmul.f32 %v8487_v48, %v4182_v54  ;;  %v4209_v14 = vmul.f32 %v4182_v54, %v8511_v59 }
 0x6de   : > { %v4210_v23 = vmul.f32 %v8501_v56, %v4182_v54  ;;  %v4218_v53 = vrot.slane %v4178_v45, %v9503_v51  ;;  %v4211_v17 = vmul.f32 %v4182_v54, %v8531_v21  ;;  %v4212_v4 = vmul.f32 %v8527_v42, %v4182_v54 }
 0x6df   : > { %v4213_v13 = vmul.f32 %v4182_v54, %v8545_v55  ;;  %v4214_v22 = vmul.f32 %v8540_v26, %v4182_v54 }
 0x6e0   : > { %v4219_v16 = vadd.f32 %v4218_v53, %v4183_v7  ;;  %v4220_v11 = vadd.f32 %v4218_v53, %v4184_v57  ;;  %v4221_v8 = vadd.f32 %v4218_v53, %v4185_v19  ;;  %v4222_v5 = vadd.f32 %v4218_v53, %v4186_v31  ;;  %v4659_v57 = vld [vmem:[%s4748_s20] sm:$0xff]  ;;  %v4660_v31 = vld [vmem:[%s4748_s20 + $0x8] sm:$0xff] }
 0x6e1   : > { %v4223_v63 = vadd.f32 %v4218_v53, %v4187_v1  ;;  %v4224_v48 = vadd.f32 %v4218_v53, %v4188_v50  ;;  %v4225_v28 = vadd.f32 %v4218_v53, %v4189_v43  ;;  %v4226_v59 = vadd.f32 %v4218_v53, %v4190_v46  ;;  %v4661_v50 = vld [vmem:[%s4748_s20 + $0x10] sm:$0xff]  ;;  %v4662_v46 = vld [vmem:[%s4748_s20 + $0x18] sm:$0xff] }
 0x6e2   : > { %v4227_v62 = vadd.f32 %v4218_v53, %v4191_v20  ;;  %v4228_v56 = vadd.f32 %v4218_v53, %v4192_v2  ;;  %v4229_v58 = vadd.f32 %v4218_v53, %v4193_v18  ;;  %v4230_v38 = vadd.f32 %v4218_v53, %v4194_v47  ;;  %v4663_v2 = vld [vmem:[%s4748_s20 + $0x20] sm:$0xff]  ;;  %v4664_v47 = vld [vmem:[%s4748_s20 + $0x28] sm:$0xff] }
 0x6e3   : > { %v4231_v44 = vadd.f32 %v4218_v53, %v4195_v10  ;;  %v4232_v21 = vadd.f32 %v4218_v53, %v4196_v0  ;;  %v4233_v42 = vadd.f32 %v4218_v53, %v4197_v25  ;;  %v4234_v61 = vadd.f32 %v4218_v53, %v4198_v24  ;;  %v4665_v0 = vld [vmem:[%s4748_s20 + $0x30] sm:$0xff]  ;;  %v4666_v24 = vld [vmem:[%s4748_s20 + $0x38] sm:$0xff] }
 0x6e4   : > { %v4235_v55 = vadd.f32 %v4218_v53, %v4199_v15  ;;  %v4236_v52 = vadd.f32 %v4218_v53, %v4200_v32  ;;  %v4237_v26 = vadd.f32 %v4218_v53, %v4201_v39  ;;  %v4238_v37 = vadd.f32 %v4218_v53, %v4202_v36  ;;  %v4667_v32 = vld [vmem:[%s4748_s20 + $0x40] sm:$0xff]  ;;  %v4668_v36 = vld [vmem:[%s4748_s20 + $0x48] sm:$0xff] }
 0x6e5   : > { %v8598_v3 = vadd.f32 %v4218_v53, %v4203_v9  ;;  %v8600_v6 = vadd.f32 %v4218_v53, %v4204_v27  ;;  %v8602_v49 = vadd.f32 %v4218_v53, %v4205_v41  ;;  %v8604_v33 = vadd.f32 %v4218_v53, %v4206_v40  ;;  %v4669_v27 = vld [vmem:[%s4748_s20 + $0x50] sm:$0xff]  ;;  %v4670_v40 = vld [vmem:[%s4748_s20 + $0x58] sm:$0xff] }
 0x6e6   : > { %v8606_v12 = vadd.f32 %v4218_v53, %v4207_v30  ;;  %v8608_v60 = vadd.f32 %v4218_v53, %v4208_v35  ;;  %v8610_v29 = vadd.f32 %v4218_v53, %v4209_v14  ;;  %v8612_v34 = vadd.f32 %v4218_v53, %v4210_v23  ;;  %v4671_v35 = vld [vmem:[%s4748_s20 + $0x60] sm:$0xff]  ;;  %v4672_v23 = vld [vmem:[%s4748_s20 + $0x68] sm:$0xff] }
 0x6e7   : > { %v8621_v51 = vadd.f32 %v4218_v53, %v4211_v17  ;;  %v8623_v54 = vadd.f32 %v4218_v53, %v4212_v4  ;;  %v8625_v45 = vadd.f32 %v4218_v53, %v4213_v13  ;;  %v8627_v7 = vadd.f32 %v4218_v53, %v4214_v22  ;;  %v4673_v17 = vld [vmem:[%s4748_s20 + $0x70] sm:$0xff]  ;;  %v4674_v13 = vld [vmem:[%s4748_s20 + $0x78] sm:$0xff] }
 0x6e8   : > { %v4251_v19 = vadd.f32 %v4659_v57, %v4219_v16  ;;  %v4252_v1 = vadd.f32 %v4660_v31, %v4220_v11  ;;  %v4253_v43 = vadd.f32 %v4661_v50, %v4221_v8  ;;  %v4254_v20 = vadd.f32 %v4662_v46, %v4222_v5  ;;  %v4675_v16 = vld [vmem:[%s4748_s20 + $0x80] sm:$0xff]  ;;  %v4676_v8 = vld [vmem:[%s4748_s20 + $0x88] sm:$0xff]  ;;  %v4689_v57 = vld [vmem:[%s4748_s20 + $0xf0] sm:$0xff] }
 0x6e9   : > { %v4255_v18 = vadd.f32 %v4663_v2, %v4223_v63  ;;  %v4256_v10 = vadd.f32 %v4664_v47, %v4224_v48  ;;  %v4257_v25 = vadd.f32 %v4665_v0, %v4225_v28  ;;  %v4258_v15 = vadd.f32 %v4666_v24, %v4226_v59  ;;  %v4677_v63 = vld [vmem:[%s4748_s20 + $0x90] sm:$0xff]  ;;  %v4678_v28 = vld [vmem:[%s4748_s20 + $0x98] sm:$0xff] }
 0x6ea   : > { %v4259_v39 = vadd.f32 %v4667_v32, %v4227_v62  ;;  %v4260_v9 = vadd.f32 %v4668_v36, %v4228_v56  ;;  %v4261_v41 = vadd.f32 %v4669_v27, %v4229_v58  ;;  %v4262_v30 = vadd.f32 %v4670_v40, %v4230_v38  ;;  %4283 = vst.msk [vmem:[%s8619_s11] sm:$0xff] %vm1390_vm4, %v4251_v19  ;;  %v4679_v62 = vld [vmem:[%s4748_s20 + $0xa0] sm:$0xff]  ;;  %v4680_v58 = vld [vmem:[%s4748_s20 + $0xa8] sm:$0xff]  ;;  %v4690_v31 = vld [vmem:[%s4748_s20 + $0xf8] sm:$0xff] }
 0x6eb   : > { %4284 = vst.msk [vmem:[%s8619_s11 + $0x8] sm:$0xff] %vm1390_vm4, %v4252_v1  ;;  %4285 = vst.msk [vmem:[%s8619_s11 + $0x10] sm:$0xff] %vm1390_vm4, %v4253_v43  ;;  %v4263_v14 = vadd.f32 %v4671_v35, %v4231_v44  ;;  %v4264_v53 = vadd.f32 %v4672_v23, %v4232_v21  ;;  %v4265_v4 = vadd.f32 %v4673_v17, %v4233_v42  ;;  %v4681_v44 = vld [vmem:[%s4748_s20 + $0xb0] sm:$0xff]  ;;  %v4682_v42 = vld [vmem:[%s4748_s20 + $0xb8] sm:$0xff] }
 0x6ec   : > { %4286 = vst.msk [vmem:[%s8619_s11 + $0x18] sm:$0xff] %vm1390_vm4, %v4254_v20  ;;  %v4266_v22 = vadd.f32 %v4674_v13, %v4234_v61  ;;  %4287 = vst.msk [vmem:[%s8619_s11 + $0x20] sm:$0xff] %vm1390_vm4, %v4255_v18  ;;  %v4267_v11 = vadd.f32 %v4675_v16, %v4235_v55  ;;  %v4268_v5 = vadd.f32 %v4676_v8, %v4236_v52  ;;  %v4683_v55 = vld [vmem:[%s4748_s20 + $0xc0] sm:$0xff] }
 0x6ed   : > { %4288 = vst.msk [vmem:[%s8619_s11 + $0x28] sm:$0xff] %vm1390_vm4, %v4256_v10  ;;  %4289 = vst.msk [vmem:[%s8619_s11 + $0x30] sm:$0xff] %vm1390_vm4, %v4257_v25  ;;  %v4269_v48 = vadd.f32 %v4677_v63, %v4237_v26  ;;  %v4270_v59 = vadd.f32 %v4678_v28, %v4238_v37  ;;  %v4271_v56 = vadd.f32 %v4679_v62, %v8598_v3  ;;  %v4684_v26 = vld [vmem:[%s4748_s20 + $0xc8] sm:$0xff]  ;;  %v4685_v3 = vld [vmem:[%s4748_s20 + $0xd0] sm:$0xff] }
 0x6ee   : > { %4290 = vst.msk [vmem:[%s8619_s11 + $0x38] sm:$0xff] %vm1390_vm4, %v4258_v15  ;;  %4291 = vst.msk [vmem:[%s8619_s11 + $0x40] sm:$0xff] %vm1390_vm4, %v4259_v39  ;;  %v4272_v38 = vadd.f32 %v4680_v58, %v8600_v6  ;;  %v4273_v21 = vadd.f32 %v4681_v44, %v8602_v49  ;;  %v4274_v61 = vadd.f32 %v4682_v42, %v8604_v33  ;;  %v4686_v49 = vld [vmem:[%s4748_s20 + $0xd8] sm:$0xff] }
 0x6ef   : > { %4292 = vst.msk [vmem:[%s8619_s11 + $0x48] sm:$0xff] %vm1390_vm4, %v4260_v9  ;;  %4293 = vst.msk [vmem:[%s8619_s11 + $0x50] sm:$0xff] %vm1390_vm4, %v4261_v41  ;;  %v4275_v52 = vadd.f32 %v4683_v55, %v8606_v12  ;;  %v4276_v37 = vadd.f32 %v4684_v26, %v8608_v60  ;;  %v4277_v6 = vadd.f32 %v4685_v3, %v8610_v29  ;;  %v4687_v12 = vld [vmem:[%s4748_s20 + $0xe0] sm:$0xff]  ;;  %v4688_v29 = vld [vmem:[%s4748_s20 + $0xe8] sm:$0xff] }
 0x6f0   : > { %4294 = vst.msk [vmem:[%s8619_s11 + $0x58] sm:$0xff] %vm1390_vm4, %v4262_v30  ;;  %4295 = vst.msk [vmem:[%s8619_s11 + $0x60] sm:$0xff] %vm1390_vm4, %v4263_v14  ;;  %v4278_v33 = vadd.f32 %v4686_v49, %v8612_v34  ;;  %v4279_v60 = vadd.f32 %v4687_v12, %v8621_v51  ;;  %v4280_v34 = vadd.f32 %v4688_v29, %v8623_v54 }
 0x6f1   : > { %4296 = vst.msk [vmem:[%s8619_s11 + $0x68] sm:$0xff] %vm1390_vm4, %v4264_v53  ;;  %4297 = vst.msk [vmem:[%s8619_s11 + $0x70] sm:$0xff] %vm1390_vm4, %v4265_v4  ;;  %v4281_v19 = vadd.f32 %v4689_v57, %v8625_v45  ;;  %v4282_v1 = vadd.f32 %v4690_v31, %v8627_v7 }
 0x6f2   : > { %4298 = vst.msk [vmem:[%s8619_s11 + $0x78] sm:$0xff] %vm1390_vm4, %v4266_v22  ;;  %4299 = vst.msk [vmem:[%s8619_s11 + $0x80] sm:$0xff] %vm1390_vm4, %v4267_v11 }
 0x6f3   : > { %4300 = vst.msk [vmem:[%s8619_s11 + $0x88] sm:$0xff] %vm1390_vm4, %v4268_v5  ;;  %4301 = vst.msk [vmem:[%s8619_s11 + $0x90] sm:$0xff] %vm1390_vm4, %v4269_v48 }
 0x6f4   : > { %4302 = vst.msk [vmem:[%s8619_s11 + $0x98] sm:$0xff] %vm1390_vm4, %v4270_v59  ;;  %4303 = vst.msk [vmem:[%s8619_s11 + $0xa0] sm:$0xff] %vm1390_vm4, %v4271_v56 }
 0x6f5   : > { %4304 = vst.msk [vmem:[%s8619_s11 + $0xa8] sm:$0xff] %vm1390_vm4, %v4272_v38  ;;  %4305 = vst.msk [vmem:[%s8619_s11 + $0xb0] sm:$0xff] %vm1390_vm4, %v4273_v21 }
 0x6f6   : > { %4306 = vst.msk [vmem:[%s8619_s11 + $0xb8] sm:$0xff] %vm1390_vm4, %v4274_v61  ;;  %4307 = vst.msk [vmem:[%s8619_s11 + $0xc0] sm:$0xff] %vm1390_vm4, %v4275_v52 }
 0x6f7   : > { %4308 = vst.msk [vmem:[%s8619_s11 + $0xc8] sm:$0xff] %vm1390_vm4, %v4276_v37  ;;  %4309 = vst.msk [vmem:[%s8619_s11 + $0xd0] sm:$0xff] %vm1390_vm4, %v4277_v6 }
 0x6f8   : > { %4310 = vst.msk [vmem:[%s8619_s11 + $0xd8] sm:$0xff] %vm1390_vm4, %v4278_v33  ;;  %4311 = vst.msk [vmem:[%s8619_s11 + $0xe0] sm:$0xff] %vm1390_vm4, %v4279_v60 }
 0x6f9   : > { %4312 = vst.msk [vmem:[%s8619_s11 + $0xe8] sm:$0xff] %vm1390_vm4, %v4280_v34  ;;  %4313 = vst.msk [vmem:[%s8619_s11 + $0xf0] sm:$0xff] %vm1390_vm4, %v4281_v19 }
 0x6fa   : > { %4314 = vst.msk [vmem:[%s8619_s11 + $0xf8] sm:$0xff] %vm1390_vm4, %v4282_v1 }
 0x6fb PF: > { %s14_s15 = sadd.s32 1, %s4697_s15  }
 0x6fc   : > { %p11_p4 = scmp.ge.s32.totalorder %s14_s15, 4  }
 0x6fe   :  { %13 = sbr.rel (!%p11_p4) target bundleno = 1 (0x1), region = 66 }

</bundles_post_ra>
